<compile_context>
chip_gen: v7x
topology: tpu7x:2x2x1
jax: 0.10.0
libtpu: 0.0.40
codegen_flags: <defaults>
</compile_context>

<pallas_src>
import jax
import jax.numpy as jnp
import numpy as np
from jax import lax
from jax.experimental import pallas as pl
from jax.experimental.pallas import tpu as pltpu

H = 64           # hidden_size
HP = 128         # hidden padded to one full 128-lane group
D_IN = 1         # input_size
D_OUT = 1        # output_size
G = 4 * H        # PyTorch gate width (i, f, g, o)
GP = 4 * HP      # padded gate width (each gate owns a full 128-lane group)


def _sigmoid(x):
    # Single-EUP form of the logistic (exact math): sigmoid(x) = 0.5*tanh(0.5*x) + 0.5.
    return 0.5 * jnp.tanh(0.5 * x) + 0.5


def _lstm_kernel(x_ref,        # (T, B)            time-major input (D_IN == 1 squeezed)
                 wih0_ref,     # (1, GP)            W_ih0^T, gate-padded
                 b0_ref,       # (1, GP)            b_ih0 + b_hh0, gate-padded
                 wf_ref,       # (2*HP, 2*GP)       fused [W_ih1^T | W_hh0^T ; W_hh1^T | 0]
                 b1_ref,       # (1, GP)            b_ih1 + b_hh1, gate-padded
                 wfc_ref,      # (D_OUT, HP)        fc weight, lane-padded
                 bfc_ref,      # (1, D_OUT)
                 out_ref,      # (B, D_OUT)
                 xwb0_ref):    # (T, B, GP) VMEM scratch: precomputed layer-0 input term
    T = x_ref.shape[0]
    B = x_ref.shape[1]

    # ---- Off-the-critical-path precompute (item 1): layer-0 input contribution + bias
    # for ALL timesteps, vectorized over T. (T,B,1)*(1,1,GP) -> (T,B,GP).
    xwb0_ref[...] = x_ref[...][:, :, None] * wih0_ref[...] + b0_ref[...]

    # Loop-invariant broadcast hoisted (broadcast_in_dim is not CSE'd). B==8 -> 4 vregs.
    b1 = jnp.broadcast_to(b1_ref[...], (B, GP))

    def gate_update(gates, c):
        # Each gate is a full 128-lane group -> slicing is vreg-aligned and free.
        i = _sigmoid(gates[:, 0 * HP:1 * HP])
        f = _sigmoid(gates[:, 1 * HP:2 * HP])
        g = jnp.tanh(gates[:, 2 * HP:3 * HP])
        o = _sigmoid(gates[:, 3 * HP:4 * HP])
        c_new = f * c + i * g
        h_new = o * jnp.tanh(c_new)
        return h_new, c_new

    def step(t, carry):
        # hrec0 = h0(t-1) @ W_hh0^T, produced by the previous step's fused matmul.
        h1, c0, c1, hrec0 = carry

        # Layer 0 at time t: gates are just (precomputed input term) + (carried h-rec term).
        g0 = xwb0_ref[t] + hrec0                               # (B, GP)
        h0_new, c0_new = gate_update(g0, c0)

        # One fused MXU contraction (item 3): produces layer-1 gates for time t AND the
        # layer-0 h-recurrent term for time t+1.
        hin = jnp.concatenate([h0_new, h1], axis=-1)           # (B, 2*HP), lane-aligned
        fused = jnp.dot(hin, wf_ref[...],
                        preferred_element_type=jnp.float32)    # (B, 2*GP)
        g1 = fused[:, :GP] + b1
        hrec0_next = fused[:, GP:]

        h1_new, c1_new = gate_update(g1, c1)
        return h1_new, c0_new, c1_new, hrec0_next

    zH = jnp.zeros((B, HP), jnp.float32)
    zG = jnp.zeros((B, GP), jnp.float32)   # h0(-1)=0 => initial h-recurrent term is 0
    unroll = True if T <= 64 else 8        # full unroll for short sequences (LLO visibility)
    h1, _, _, _ = lax.fori_loop(0, T, step, (zH, zH, zH, zG), unroll=unroll)

    # Final Linear on the last hidden state: D_OUT == 1 -> VPU multiply + lane reduce.
    out_ref[...] = (jnp.sum(h1 * wfc_ref[...], axis=-1, keepdims=True)
                    + bfc_ref[...]).astype(out_ref.dtype)


def lstm_model_forward(x, packed_params):
    """x: (B, T, D_IN) float32, batch_first like PyTorch. Returns (B, D_OUT)."""
    B, T, _ = x.shape
    x_tm = jnp.transpose(x, (1, 0, 2)).reshape(T, B)   # time-major (T, B)

    vmem = pl.BlockSpec(memory_space=pltpu.MemorySpace.VMEM)
    out = pl.pallas_call(
        _lstm_kernel,
        out_shape=jax.ShapeDtypeStruct((B, D_OUT), jnp.float32),
        in_specs=[vmem] * 7,
        out_specs=vmem,
        scratch_shapes=[pltpu.VMEM((T, B, GP), jnp.float32)],
    )(x_tm, *packed_params)
    return out


# ---------------------------------------------------------------------------
# Parameter construction / packing
# ---------------------------------------------------------------------------

def init_raw_params(key):
    """PyTorch-layout parameters (gate order along 4H axis: [i, f, g, o])."""
    k = jax.random.split(key, 10)
    bound = 1.0 / np.sqrt(H)
    u = lambda kk, shape: jax.random.uniform(kk, shape, jnp.float32, -bound, bound)
    w_ih0 = u(k[0], (G, D_IN))
    w_hh0 = u(k[1], (G, H))
    b_ih0 = u(k[2], (G,))
    b_hh0 = u(k[3], (G,))
    w_ih1 = u(k[4], (G, H))
    w_hh1 = u(k[5], (G, H))
    b_ih1 = u(k[6], (G,))
    b_hh1 = u(k[7], (G,))
    w_fc = u(k[8], (D_OUT, H))
    b_fc = u(k[9], (D_OUT,))
    return (w_ih0, w_hh0, b_ih0, b_hh0, w_ih1, w_hh1, b_ih1, b_hh1, w_fc, b_fc)


def _pad_gate_cols(w):
    """(in_dim, 4*H) -> (in_dim, 4*HP): each 64-wide gate zero-padded to a 128-lane group."""
    in_dim = w.shape[0]
    out = jnp.zeros((in_dim, 4, HP), w.dtype)
    out = out.at[:, :, :H].set(w.reshape(in_dim, 4, H))
    return out.reshape(in_dim, 4 * HP)


def _pad_rows(w, rows):
    """Zero-pad the leading (contraction) axis from H to `rows`."""
    out = jnp.zeros((rows,) + w.shape[1:], w.dtype)
    return out.at[: w.shape[0]].set(w)


def pack_params(raw):
    """Transpose / pad / fuse PyTorch-layout weights into the kernel layout."""
    (w_ih0, w_hh0, b_ih0, b_hh0,
     w_ih1, w_hh1, b_ih1, b_hh1, w_fc, b_fc) = raw

    wih0_p = _pad_gate_cols(w_ih0.T)                          # (1, GP)
    b0_p = _pad_gate_cols((b_ih0 + b_hh0).reshape(1, G))      # (1, GP)
    b1_p = _pad_gate_cols((b_ih1 + b_hh1).reshape(1, G))      # (1, GP)

    wih1_p = _pad_rows(_pad_gate_cols(w_ih1.T), HP)           # (HP, GP) consumes h0(t)
    whh1_p = _pad_rows(_pad_gate_cols(w_hh1.T), HP)           # (HP, GP) consumes h1(t-1)
    whh0_p = _pad_rows(_pad_gate_cols(w_hh0.T), HP)           # (HP, GP) consumes h0(t)

    # Fused per-step weight (2*HP, 2*GP):
    #   lanes [0:GP]      -> gates1(t)   h-recurrent part (W_ih1 rows + W_hh1 rows)
    #   lanes [GP:2*GP]   -> gates0(t+1) h-recurrent part (W_hh0 rows; h1 rows are zero)
    top = jnp.concatenate([wih1_p, whh0_p], axis=1)           # h0(t) rows
    bot = jnp.concatenate([whh1_p, jnp.zeros_like(whh0_p)], axis=1)  # h1(t-1) rows
    wf_p = jnp.concatenate([top, bot], axis=0)                # (2*HP, 2*GP)

    wfc_p = jnp.zeros((D_OUT, HP), w_fc.dtype).at[:, :H].set(w_fc)   # (1, HP)
    bfc_p = b_fc.reshape(1, D_OUT)                                   # (1, 1)
    return (wih0_p, b0_p, wf_p, b1_p, wfc_p, bfc_p)


# ---------------------------------------------------------------------------
# Plain-JAX reference (PyTorch semantics) for correctness check
# ---------------------------------------------------------------------------

def reference_forward(x, raw):
    (w_ih0, w_hh0, b_ih0, b_hh0,
     w_ih1, w_hh1, b_ih1, b_hh1, w_fc, b_fc) = raw
    B, T, _ = x.shape

    def cell(x_in, h, c, w_ih, w_hh, b_ih, b_hh):
        gates = x_in @ w_ih.T + h @ w_hh.T + b_ih + b_hh
        i = jax.nn.sigmoid(gates[:, 0 * H:1 * H])
        f = jax.nn.sigmoid(gates[:, 1 * H:2 * H])
        g = jnp.tanh(gates[:, 2 * H:3 * H])
        o = jax.nn.sigmoid(gates[:, 3 * H:4 * H])
        c = f * c + i * g
        h = o * jnp.tanh(c)
        return h, c

    h0 = c0 = h1 = c1 = jnp.zeros((B, H), jnp.float32)
    for t in range(T):
        h0, c0 = cell(x[:, t, :], h0, c0, w_ih0, w_hh0, b_ih0, b_hh0)
        h1, c1 = cell(h0, h1, c1, w_ih1, w_hh1, b_ih1, b_hh1)
    return h1 @ w_fc.T + b_fc


if __name__ == "__main__":
    key = jax.random.PRNGKey(0)
    k_param, k_x = jax.random.split(key)

    B, T = 8, 8
    raw_params = init_raw_params(k_param)
    packed_params = pack_params(raw_params)
    x = jax.random.normal(k_x, (B, T, D_IN), jnp.float32)

    out = lstm_model_forward(x, packed_params)
    out = jax.block_until_ready(out)

    ref = reference_forward(x, raw_params)
    assert out.shape == (B, D_OUT)
    assert np.allclose(np.asarray(out), np.asarray(ref), atol=5e-5, rtol=5e-5)

    print("KERNEL_OK")
</pallas_src>

<mosaic_0001>
module attributes {stable_mosaic.version = 11 : i64} {
  func.func @_lstm_kernel(%arg0: memref<8x8xf32, #tpu.memory_space<vmem>>, %arg1: memref<1x512xf32, #tpu.memory_space<vmem>>, %arg2: memref<1x512xf32, #tpu.memory_space<vmem>>, %arg3: memref<256x1024xf32, #tpu.memory_space<vmem>>, %arg4: memref<1x512xf32, #tpu.memory_space<vmem>>, %arg5: memref<1x128xf32, #tpu.memory_space<vmem>>, %arg6: memref<1x1xf32, #tpu.memory_space<vmem>>, %arg7: memref<8x1xf32, #tpu.memory_space<vmem>>, %arg8: memref<8x8x512xf32, #tpu.memory_space<vmem>>) attributes {dimension_semantics = [], scalar_prefetch = 0 : i64, scratch_operands = 1 : i64, tpu.core_type = #tpu.core_type<tc>} {
    %c0 = arith.constant 0 : index
    %c0_0 = arith.constant 0 : index
    %0 = vector.load %arg0[%c0, %c0_0] : memref<8x8xf32, #tpu.memory_space<vmem>>, vector<8x8xf32>
    %1 = vector.shape_cast %0 : vector<8x8xf32> to vector<8x8x1xf32>
    %c0_1 = arith.constant 0 : index
    %c0_2 = arith.constant 0 : index
    %2 = vector.load %arg1[%c0_1, %c0_2] : memref<1x512xf32, #tpu.memory_space<vmem>>, vector<1x512xf32>
    %3 = vector.shape_cast %2 : vector<1x512xf32> to vector<1x1x512xf32>
    %4 = vector.broadcast %1 : vector<8x8x1xf32> to vector<8x8x512xf32>
    %5 = vector.broadcast %3 : vector<1x1x512xf32> to vector<8x8x512xf32>
    %6 = arith.mulf %4, %5 : vector<8x8x512xf32>
    %c0_3 = arith.constant 0 : index
    %c0_4 = arith.constant 0 : index
    %7 = vector.load %arg2[%c0_3, %c0_4] : memref<1x512xf32, #tpu.memory_space<vmem>>, vector<1x512xf32>
    %8 = vector.shape_cast %7 : vector<1x512xf32> to vector<1x1x512xf32>
    %9 = vector.broadcast %8 : vector<1x1x512xf32> to vector<8x8x512xf32>
    %10 = arith.addf %6, %9 : vector<8x8x512xf32>
    %c0_5 = arith.constant 0 : index
    %c0_6 = arith.constant 0 : index
    %c0_7 = arith.constant 0 : index
    %11 = vector.load %arg8[%c0_5, %c0_6, %c0_7] : memref<8x8x512xf32, #tpu.memory_space<vmem>>, vector<8x8x512xf32>
    tpu.vector_store %arg8[%c0_5, %c0_6, %c0_7], %10 {strides = array<i32>} : memref<8x8x512xf32, #tpu.memory_space<vmem>>, vector<8x8x512xf32>,
    %c0_8 = arith.constant 0 : index
    %c0_9 = arith.constant 0 : index
    %12 = vector.load %arg4[%c0_8, %c0_9] : memref<1x512xf32, #tpu.memory_space<vmem>>, vector<1x512xf32>
    %13 = vector.shape_cast %12 : vector<1x512xf32> to vector<1x512xf32>
    %14 = vector.broadcast %13 : vector<1x512xf32> to vector<8x512xf32>
    %cst = arith.constant 0.000000e+00 : f32
    %15 = vector.broadcast %cst : f32 to vector<8x128xf32>
    %cst_10 = arith.constant 0.000000e+00 : f32
    %16 = vector.broadcast %cst_10 : f32 to vector<8x512xf32>
    %c0_i32 = arith.constant 0 : i32
    %17 = arith.index_cast %c0_i32 : i32 to index
    %c0_11 = arith.constant 0 : index
    %c0_12 = arith.constant 0 : index
    %18 = vector.load %arg8[%17, %c0_11, %c0_12] : memref<8x8x512xf32, #tpu.memory_space<vmem>>, vector<1x8x512xf32>
    %19 = vector.shape_cast %18 : vector<1x8x512xf32> to vector<8x512xf32>
    %20 = arith.addf %19, %16 : vector<8x512xf32>
    %21 = vector.extract_strided_slice %20 {offsets = [0, 0], sizes = [8, 128], strides = [1, 1]} : vector<8x512xf32> to vector<8x128xf32>
    %cst_13 = arith.constant 5.000000e-01 : f32
    %22 = vector.broadcast %cst_13 : f32 to vector<8x128xf32>
    %23 = arith.mulf %22, %21 : vector<8x128xf32>
    %24 = math.tanh %23 : vector<8x128xf32>
    %cst_14 = arith.constant 5.000000e-01 : f32
    %25 = vector.broadcast %cst_14 : f32 to vector<8x128xf32>
    %26 = arith.mulf %25, %24 : vector<8x128xf32>
    %cst_15 = arith.constant 5.000000e-01 : f32
    %27 = vector.broadcast %cst_15 : f32 to vector<8x128xf32>
    %28 = arith.addf %26, %27 : vector<8x128xf32>
    %29 = vector.extract_strided_slice %20 {offsets = [0, 128], sizes = [8, 128], strides = [1, 1]} : vector<8x512xf32> to vector<8x128xf32>
    %cst_16 = arith.constant 5.000000e-01 : f32
    %30 = vector.broadcast %cst_16 : f32 to vector<8x128xf32>
    %31 = arith.mulf %30, %29 : vector<8x128xf32>
    %32 = math.tanh %31 : vector<8x128xf32>
    %cst_17 = arith.constant 5.000000e-01 : f32
    %33 = vector.broadcast %cst_17 : f32 to vector<8x128xf32>
    %34 = arith.mulf %33, %32 : vector<8x128xf32>
    %cst_18 = arith.constant 5.000000e-01 : f32
    %35 = vector.broadcast %cst_18 : f32 to vector<8x128xf32>
    %36 = arith.addf %34, %35 : vector<8x128xf32>
    %37 = vector.extract_strided_slice %20 {offsets = [0, 256], sizes = [8, 128], strides = [1, 1]} : vector<8x512xf32> to vector<8x128xf32>
    %38 = math.tanh %37 : vector<8x128xf32>
    %39 = vector.extract_strided_slice %20 {offsets = [0, 384], sizes = [8, 128], strides = [1, 1]} : vector<8x512xf32> to vector<8x128xf32>
    %cst_19 = arith.constant 5.000000e-01 : f32
    %40 = vector.broadcast %cst_19 : f32 to vector<8x128xf32>
    %41 = arith.mulf %40, %39 : vector<8x128xf32>
    %42 = math.tanh %41 : vector<8x128xf32>
    %cst_20 = arith.constant 5.000000e-01 : f32
    %43 = vector.broadcast %cst_20 : f32 to vector<8x128xf32>
    %44 = arith.mulf %43, %42 : vector<8x128xf32>
    %cst_21 = arith.constant 5.000000e-01 : f32
    %45 = vector.broadcast %cst_21 : f32 to vector<8x128xf32>
    %46 = arith.addf %44, %45 : vector<8x128xf32>
    %47 = arith.mulf %36, %15 : vector<8x128xf32>
    %48 = arith.mulf %28, %38 : vector<8x128xf32>
    %49 = arith.addf %47, %48 : vector<8x128xf32>
    %50 = math.tanh %49 : vector<8x128xf32>
    %51 = arith.mulf %46, %50 : vector<8x128xf32>
    %52 = tpu.concatenate %51, %15 in 1 : vector<8x128xf32>, vector<8x128xf32> -> vector<8x256xf32>
    %c0_22 = arith.constant 0 : index
    %c0_23 = arith.constant 0 : index
    %53 = vector.load %arg3[%c0_22, %c0_23] : memref<256x1024xf32, #tpu.memory_space<vmem>>, vector<256x1024xf32>
    %cst_24 = arith.constant dense<0.000000e+00> : vector<8x1024xf32>
    %54 = tpu.matmul %52, %53, %cst_24 {dimension_numbers = #tpu.dot_dimension_numbers<[1], [0], [0], [1], [0, 0, 1, 1], [], []>} : vector<8x256xf32>, vector<256x1024xf32>, vector<8x1024xf32> -> vector<8x1024xf32>
    %55 = vector.extract_strided_slice %54 {offsets = [0, 0], sizes = [8, 512], strides = [1, 1]} : vector<8x1024xf32> to vector<8x512xf32>
    %56 = arith.addf %55, %14 : vector<8x512xf32>
    %57 = vector.extract_strided_slice %54 {offsets = [0, 512], sizes = [8, 512], strides = [1, 1]} : vector<8x1024xf32> to vector<8x512xf32>
    %58 = vector.extract_strided_slice %56 {offsets = [0, 0], sizes = [8, 128], strides = [1, 1]} : vector<8x512xf32> to vector<8x128xf32>
    %cst_25 = arith.constant 5.000000e-01 : f32
    %59 = vector.broadcast %cst_25 : f32 to vector<8x128xf32>
    %60 = arith.mulf %59, %58 : vector<8x128xf32>
    %61 = math.tanh %60 : vector<8x128xf32>
    %cst_26 = arith.constant 5.000000e-01 : f32
    %62 = vector.broadcast %cst_26 : f32 to vector<8x128xf32>
    %63 = arith.mulf %62, %61 : vector<8x128xf32>
    %cst_27 = arith.constant 5.000000e-01 : f32
    %64 = vector.broadcast %cst_27 : f32 to vector<8x128xf32>
    %65 = arith.addf %63, %64 : vector<8x128xf32>
    %66 = vector.extract_strided_slice %56 {offsets = [0, 128], sizes = [8, 128], strides = [1, 1]} : vector<8x512xf32> to vector<8x128xf32>
    %cst_28 = arith.constant 5.000000e-01 : f32
    %67 = vector.broadcast %cst_28 : f32 to vector<8x128xf32>
    %68 = arith.mulf %67, %66 : vector<8x128xf32>
    %69 = math.tanh %68 : vector<8x128xf32>
    %cst_29 = arith.constant 5.000000e-01 : f32
    %70 = vector.broadcast %cst_29 : f32 to vector<8x128xf32>
    %71 = arith.mulf %70, %69 : vector<8x128xf32>
    %cst_30 = arith.constant 5.000000e-01 : f32
    %72 = vector.broadcast %cst_30 : f32 to vector<8x128xf32>
    %73 = arith.addf %71, %72 : vector<8x128xf32>
    %74 = vector.extract_strided_slice %56 {offsets = [0, 256], sizes = [8, 128], strides = [1, 1]} : vector<8x512xf32> to vector<8x128xf32>
    %75 = math.tanh %74 : vector<8x128xf32>
    %76 = vector.extract_strided_slice %56 {offsets = [0, 384], sizes = [8, 128], strides = [1, 1]} : vector<8x512xf32> to vector<8x128xf32>
    %cst_31 = arith.constant 5.000000e-01 : f32
    %77 = vector.broadcast %cst_31 : f32 to vector<8x128xf32>
    %78 = arith.mulf %77, %76 : vector<8x128xf32>
    %79 = math.tanh %78 : vector<8x128xf32>
    %cst_32 = arith.constant 5.000000e-01 : f32
    %80 = vector.broadcast %cst_32 : f32 to vector<8x128xf32>
    %81 = arith.mulf %80, %79 : vector<8x128xf32>
    %cst_33 = arith.constant 5.000000e-01 : f32
    %82 = vector.broadcast %cst_33 : f32 to vector<8x128xf32>
    %83 = arith.addf %81, %82 : vector<8x128xf32>
    %84 = arith.mulf %73, %15 : vector<8x128xf32>
    %85 = arith.mulf %65, %75 : vector<8x128xf32>
    %86 = arith.addf %84, %85 : vector<8x128xf32>
    %87 = math.tanh %86 : vector<8x128xf32>
    %88 = arith.mulf %83, %87 : vector<8x128xf32>
    %c1_i32 = arith.constant 1 : i32
    %89 = arith.index_cast %c1_i32 : i32 to index
    %c0_34 = arith.constant 0 : index
    %c0_35 = arith.constant 0 : index
    %90 = vector.load %arg8[%89, %c0_34, %c0_35] : memref<8x8x512xf32, #tpu.memory_space<vmem>>, vector<1x8x512xf32>
    %91 = vector.shape_cast %90 : vector<1x8x512xf32> to vector<8x512xf32>
    %92 = arith.addf %91, %57 : vector<8x512xf32>
    %93 = vector.extract_strided_slice %92 {offsets = [0, 0], sizes = [8, 128], strides = [1, 1]} : vector<8x512xf32> to vector<8x128xf32>
    %cst_36 = arith.constant 5.000000e-01 : f32
    %94 = vector.broadcast %cst_36 : f32 to vector<8x128xf32>
    %95 = arith.mulf %94, %93 : vector<8x128xf32>
    %96 = math.tanh %95 : vector<8x128xf32>
    %cst_37 = arith.constant 5.000000e-01 : f32
    %97 = vector.broadcast %cst_37 : f32 to vector<8x128xf32>
    %98 = arith.mulf %97, %96 : vector<8x128xf32>
    %cst_38 = arith.constant 5.000000e-01 : f32
    %99 = vector.broadcast %cst_38 : f32 to vector<8x128xf32>
    %100 = arith.addf %98, %99 : vector<8x128xf32>
    %101 = vector.extract_strided_slice %92 {offsets = [0, 128], sizes = [8, 128], strides = [1, 1]} : vector<8x512xf32> to vector<8x128xf32>
    %cst_39 = arith.constant 5.000000e-01 : f32
    %102 = vector.broadcast %cst_39 : f32 to vector<8x128xf32>
    %103 = arith.mulf %102, %101 : vector<8x128xf32>
    %104 = math.tanh %103 : vector<8x128xf32>
    %cst_40 = arith.constant 5.000000e-01 : f32
    %105 = vector.broadcast %cst_40 : f32 to vector<8x128xf32>
    %106 = arith.mulf %105, %104 : vector<8x128xf32>
    %cst_41 = arith.constant 5.000000e-01 : f32
    %107 = vector.broadcast %cst_41 : f32 to vector<8x128xf32>
    %108 = arith.addf %106, %107 : vector<8x128xf32>
    %109 = vector.extract_strided_slice %92 {offsets = [0, 256], sizes = [8, 128], strides = [1, 1]} : vector<8x512xf32> to vector<8x128xf32>
    %110 = math.tanh %109 : vector<8x128xf32>
    %111 = vector.extract_strided_slice %92 {offsets = [0, 384], sizes = [8, 128], strides = [1, 1]} : vector<8x512xf32> to vector<8x128xf32>
    %cst_42 = arith.constant 5.000000e-01 : f32
    %112 = vector.broadcast %cst_42 : f32 to vector<8x128xf32>
    %113 = arith.mulf %112, %111 : vector<8x128xf32>
    %114 = math.tanh %113 : vector<8x128xf32>
    %cst_43 = arith.constant 5.000000e-01 : f32
    %115 = vector.broadcast %cst_43 : f32 to vector<8x128xf32>
    %116 = arith.mulf %115, %114 : vector<8x128xf32>
    %cst_44 = arith.constant 5.000000e-01 : f32
    %117 = vector.broadcast %cst_44 : f32 to vector<8x128xf32>
    %118 = arith.addf %116, %117 : vector<8x128xf32>
    %119 = arith.mulf %108, %49 : vector<8x128xf32>
    %120 = arith.mulf %100, %110 : vector<8x128xf32>
    %121 = arith.addf %119, %120 : vector<8x128xf32>
    %122 = math.tanh %121 : vector<8x128xf32>
    %123 = arith.mulf %118, %122 : vector<8x128xf32>
    %124 = tpu.concatenate %123, %88 in 1 : vector<8x128xf32>, vector<8x128xf32> -> vector<8x256xf32>
    %c0_45 = arith.constant 0 : index
    %c0_46 = arith.constant 0 : index
    %125 = vector.load %arg3[%c0_45, %c0_46] : memref<256x1024xf32, #tpu.memory_space<vmem>>, vector<256x1024xf32>
    %cst_47 = arith.constant dense<0.000000e+00> : vector<8x1024xf32>
    %126 = tpu.matmul %124, %125, %cst_47 {dimension_numbers = #tpu.dot_dimension_numbers<[1], [0], [0], [1], [0, 0, 1, 1], [], []>} : vector<8x256xf32>, vector<256x1024xf32>, vector<8x1024xf32> -> vector<8x1024xf32>
    %127 = vector.extract_strided_slice %126 {offsets = [0, 0], sizes = [8, 512], strides = [1, 1]} : vector<8x1024xf32> to vector<8x512xf32>
    %128 = arith.addf %127, %14 : vector<8x512xf32>
    %129 = vector.extract_strided_slice %126 {offsets = [0, 512], sizes = [8, 512], strides = [1, 1]} : vector<8x1024xf32> to vector<8x512xf32>
    %130 = vector.extract_strided_slice %128 {offsets = [0, 0], sizes = [8, 128], strides = [1, 1]} : vector<8x512xf32> to vector<8x128xf32>
    %cst_48 = arith.constant 5.000000e-01 : f32
    %131 = vector.broadcast %cst_48 : f32 to vector<8x128xf32>
    %132 = arith.mulf %131, %130 : vector<8x128xf32>
    %133 = math.tanh %132 : vector<8x128xf32>
    %cst_49 = arith.constant 5.000000e-01 : f32
    %134 = vector.broadcast %cst_49 : f32 to vector<8x128xf32>
    %135 = arith.mulf %134, %133 : vector<8x128xf32>
    %cst_50 = arith.constant 5.000000e-01 : f32
    %136 = vector.broadcast %cst_50 : f32 to vector<8x128xf32>
    %137 = arith.addf %135, %136 : vector<8x128xf32>
    %138 = vector.extract_strided_slice %128 {offsets = [0, 128], sizes = [8, 128], strides = [1, 1]} : vector<8x512xf32> to vector<8x128xf32>
    %cst_51 = arith.constant 5.000000e-01 : f32
    %139 = vector.broadcast %cst_51 : f32 to vector<8x128xf32>
    %140 = arith.mulf %139, %138 : vector<8x128xf32>
    %141 = math.tanh %140 : vector<8x128xf32>
    %cst_52 = arith.constant 5.000000e-01 : f32
    %142 = vector.broadcast %cst_52 : f32 to vector<8x128xf32>
    %143 = arith.mulf %142, %141 : vector<8x128xf32>
    %cst_53 = arith.constant 5.000000e-01 : f32
    %144 = vector.broadcast %cst_53 : f32 to vector<8x128xf32>
    %145 = arith.addf %143, %144 : vector<8x128xf32>
    %146 = vector.extract_strided_slice %128 {offsets = [0, 256], sizes = [8, 128], strides = [1, 1]} : vector<8x512xf32> to vector<8x128xf32>
    %147 = math.tanh %146 : vector<8x128xf32>
    %148 = vector.extract_strided_slice %128 {offsets = [0, 384], sizes = [8, 128], strides = [1, 1]} : vector<8x512xf32> to vector<8x128xf32>
    %cst_54 = arith.constant 5.000000e-01 : f32
    %149 = vector.broadcast %cst_54 : f32 to vector<8x128xf32>
    %150 = arith.mulf %149, %148 : vector<8x128xf32>
    %151 = math.tanh %150 : vector<8x128xf32>
    %cst_55 = arith.constant 5.000000e-01 : f32
    %152 = vector.broadcast %cst_55 : f32 to vector<8x128xf32>
    %153 = arith.mulf %152, %151 : vector<8x128xf32>
    %cst_56 = arith.constant 5.000000e-01 : f32
    %154 = vector.broadcast %cst_56 : f32 to vector<8x128xf32>
    %155 = arith.addf %153, %154 : vector<8x128xf32>
    %156 = arith.mulf %145, %86 : vector<8x128xf32>
    %157 = arith.mulf %137, %147 : vector<8x128xf32>
    %158 = arith.addf %156, %157 : vector<8x128xf32>
    %159 = math.tanh %158 : vector<8x128xf32>
    %160 = arith.mulf %155, %159 : vector<8x128xf32>
    %c2_i32 = arith.constant 2 : i32
    %161 = arith.index_cast %c2_i32 : i32 to index
    %c0_57 = arith.constant 0 : index
    %c0_58 = arith.constant 0 : index
    %162 = vector.load %arg8[%161, %c0_57, %c0_58] : memref<8x8x512xf32, #tpu.memory_space<vmem>>, vector<1x8x512xf32>
    %163 = vector.shape_cast %162 : vector<1x8x512xf32> to vector<8x512xf32>
    %164 = arith.addf %163, %129 : vector<8x512xf32>
    %165 = vector.extract_strided_slice %164 {offsets = [0, 0], sizes = [8, 128], strides = [1, 1]} : vector<8x512xf32> to vector<8x128xf32>
    %cst_59 = arith.constant 5.000000e-01 : f32
    %166 = vector.broadcast %cst_59 : f32 to vector<8x128xf32>
    %167 = arith.mulf %166, %165 : vector<8x128xf32>
    %168 = math.tanh %167 : vector<8x128xf32>
    %cst_60 = arith.constant 5.000000e-01 : f32
    %169 = vector.broadcast %cst_60 : f32 to vector<8x128xf32>
    %170 = arith.mulf %169, %168 : vector<8x128xf32>
    %cst_61 = arith.constant 5.000000e-01 : f32
    %171 = vector.broadcast %cst_61 : f32 to vector<8x128xf32>
    %172 = arith.addf %170, %171 : vector<8x128xf32>
    %173 = vector.extract_strided_slice %164 {offsets = [0, 128], sizes = [8, 128], strides = [1, 1]} : vector<8x512xf32> to vector<8x128xf32>
    %cst_62 = arith.constant 5.000000e-01 : f32
    %174 = vector.broadcast %cst_62 : f32 to vector<8x128xf32>
    %175 = arith.mulf %174, %173 : vector<8x128xf32>
    %176 = math.tanh %175 : vector<8x128xf32>
    %cst_63 = arith.constant 5.000000e-01 : f32
    %177 = vector.broadcast %cst_63 : f32 to vector<8x128xf32>
    %178 = arith.mulf %177, %176 : vector<8x128xf32>
    %cst_64 = arith.constant 5.000000e-01 : f32
    %179 = vector.broadcast %cst_64 : f32 to vector<8x128xf32>
    %180 = arith.addf %178, %179 : vector<8x128xf32>
    %181 = vector.extract_strided_slice %164 {offsets = [0, 256], sizes = [8, 128], strides = [1, 1]} : vector<8x512xf32> to vector<8x128xf32>
    %182 = math.tanh %181 : vector<8x128xf32>
    %183 = vector.extract_strided_slice %164 {offsets = [0, 384], sizes = [8, 128], strides = [1, 1]} : vector<8x512xf32> to vector<8x128xf32>
    %cst_65 = arith.constant 5.000000e-01 : f32
    %184 = vector.broadcast %cst_65 : f32 to vector<8x128xf32>
    %185 = arith.mulf %184, %183 : vector<8x128xf32>
    %186 = math.tanh %185 : vector<8x128xf32>
    %cst_66 = arith.constant 5.000000e-01 : f32
    %187 = vector.broadcast %cst_66 : f32 to vector<8x128xf32>
    %188 = arith.mulf %187, %186 : vector<8x128xf32>
    %cst_67 = arith.constant 5.000000e-01 : f32
    %189 = vector.broadcast %cst_67 : f32 to vector<8x128xf32>
    %190 = arith.addf %188, %189 : vector<8x128xf32>
    %191 = arith.mulf %180, %121 : vector<8x128xf32>
    %192 = arith.mulf %172, %182 : vector<8x128xf32>
    %193 = arith.addf %191, %192 : vector<8x128xf32>
    %194 = math.tanh %193 : vector<8x128xf32>
    %195 = arith.mulf %190, %194 : vector<8x128xf32>
    %196 = tpu.concatenate %195, %160 in 1 : vector<8x128xf32>, vector<8x128xf32> -> vector<8x256xf32>
    %c0_68 = arith.constant 0 : index
    %c0_69 = arith.constant 0 : index
    %197 = vector.load %arg3[%c0_68, %c0_69] : memref<256x1024xf32, #tpu.memory_space<vmem>>, vector<256x1024xf32>
    %cst_70 = arith.constant dense<0.000000e+00> : vector<8x1024xf32>
    %198 = tpu.matmul %196, %197, %cst_70 {dimension_numbers = #tpu.dot_dimension_numbers<[1], [0], [0], [1], [0, 0, 1, 1], [], []>} : vector<8x256xf32>, vector<256x1024xf32>, vector<8x1024xf32> -> vector<8x1024xf32>
    %199 = vector.extract_strided_slice %198 {offsets = [0, 0], sizes = [8, 512], strides = [1, 1]} : vector<8x1024xf32> to vector<8x512xf32>
    %200 = arith.addf %199, %14 : vector<8x512xf32>
    %201 = vector.extract_strided_slice %198 {offsets = [0, 512], sizes = [8, 512], strides = [1, 1]} : vector<8x1024xf32> to vector<8x512xf32>
    %202 = vector.extract_strided_slice %200 {offsets = [0, 0], sizes = [8, 128], strides = [1, 1]} : vector<8x512xf32> to vector<8x128xf32>
    %cst_71 = arith.constant 5.000000e-01 : f32
    %203 = vector.broadcast %cst_71 : f32 to vector<8x128xf32>
    %204 = arith.mulf %203, %202 : vector<8x128xf32>
    %205 = math.tanh %204 : vector<8x128xf32>
    %cst_72 = arith.constant 5.000000e-01 : f32
    %206 = vector.broadcast %cst_72 : f32 to vector<8x128xf32>
    %207 = arith.mulf %206, %205 : vector<8x128xf32>
    %cst_73 = arith.constant 5.000000e-01 : f32
    %208 = vector.broadcast %cst_73 : f32 to vector<8x128xf32>
    %209 = arith.addf %207, %208 : vector<8x128xf32>
    %210 = vector.extract_strided_slice %200 {offsets = [0, 128], sizes = [8, 128], strides = [1, 1]} : vector<8x512xf32> to vector<8x128xf32>
    %cst_74 = arith.constant 5.000000e-01 : f32
    %211 = vector.broadcast %cst_74 : f32 to vector<8x128xf32>
    %212 = arith.mulf %211, %210 : vector<8x128xf32>
    %213 = math.tanh %212 : vector<8x128xf32>
    %cst_75 = arith.constant 5.000000e-01 : f32
    %214 = vector.broadcast %cst_75 : f32 to vector<8x128xf32>
    %215 = arith.mulf %214, %213 : vector<8x128xf32>
    %cst_76 = arith.constant 5.000000e-01 : f32
    %216 = vector.broadcast %cst_76 : f32 to vector<8x128xf32>
    %217 = arith.addf %215, %216 : vector<8x128xf32>
    %218 = vector.extract_strided_slice %200 {offsets = [0, 256], sizes = [8, 128], strides = [1, 1]} : vector<8x512xf32> to vector<8x128xf32>
    %219 = math.tanh %218 : vector<8x128xf32>
    %220 = vector.extract_strided_slice %200 {offsets = [0, 384], sizes = [8, 128], strides = [1, 1]} : vector<8x512xf32> to vector<8x128xf32>
    %cst_77 = arith.constant 5.000000e-01 : f32
    %221 = vector.broadcast %cst_77 : f32 to vector<8x128xf32>
    %222 = arith.mulf %221, %220 : vector<8x128xf32>
    %223 = math.tanh %222 : vector<8x128xf32>
    %cst_78 = arith.constant 5.000000e-01 : f32
    %224 = vector.broadcast %cst_78 : f32 to vector<8x128xf32>
    %225 = arith.mulf %224, %223 : vector<8x128xf32>
    %cst_79 = arith.constant 5.000000e-01 : f32
    %226 = vector.broadcast %cst_79 : f32 to vector<8x128xf32>
    %227 = arith.addf %225, %226 : vector<8x128xf32>
    %228 = arith.mulf %217, %158 : vector<8x128xf32>
    %229 = arith.mulf %209, %219 : vector<8x128xf32>
    %230 = arith.addf %228, %229 : vector<8x128xf32>
    %231 = math.tanh %230 : vector<8x128xf32>
    %232 = arith.mulf %227, %231 : vector<8x128xf32>
    %c3_i32 = arith.constant 3 : i32
    %233 = arith.index_cast %c3_i32 : i32 to index
    %c0_80 = arith.constant 0 : index
    %c0_81 = arith.constant 0 : index
    %234 = vector.load %arg8[%233, %c0_80, %c0_81] : memref<8x8x512xf32, #tpu.memory_space<vmem>>, vector<1x8x512xf32>
    %235 = vector.shape_cast %234 : vector<1x8x512xf32> to vector<8x512xf32>
    %236 = arith.addf %235, %201 : vector<8x512xf32>
    %237 = vector.extract_strided_slice %236 {offsets = [0, 0], sizes = [8, 128], strides = [1, 1]} : vector<8x512xf32> to vector<8x128xf32>
    %cst_82 = arith.constant 5.000000e-01 : f32
    %238 = vector.broadcast %cst_82 : f32 to vector<8x128xf32>
    %239 = arith.mulf %238, %237 : vector<8x128xf32>
    %240 = math.tanh %239 : vector<8x128xf32>
    %cst_83 = arith.constant 5.000000e-01 : f32
    %241 = vector.broadcast %cst_83 : f32 to vector<8x128xf32>
    %242 = arith.mulf %241, %240 : vector<8x128xf32>
    %cst_84 = arith.constant 5.000000e-01 : f32
    %243 = vector.broadcast %cst_84 : f32 to vector<8x128xf32>
    %244 = arith.addf %242, %243 : vector<8x128xf32>
    %245 = vector.extract_strided_slice %236 {offsets = [0, 128], sizes = [8, 128], strides = [1, 1]} : vector<8x512xf32> to vector<8x128xf32>
    %cst_85 = arith.constant 5.000000e-01 : f32
    %246 = vector.broadcast %cst_85 : f32 to vector<8x128xf32>
    %247 = arith.mulf %246, %245 : vector<8x128xf32>
    %248 = math.tanh %247 : vector<8x128xf32>
    %cst_86 = arith.constant 5.000000e-01 : f32
    %249 = vector.broadcast %cst_86 : f32 to vector<8x128xf32>
    %250 = arith.mulf %249, %248 : vector<8x128xf32>
    %cst_87 = arith.constant 5.000000e-01 : f32
    %251 = vector.broadcast %cst_87 : f32 to vector<8x128xf32>
    %252 = arith.addf %250, %251 : vector<8x128xf32>
    %253 = vector.extract_strided_slice %236 {offsets = [0, 256], sizes = [8, 128], strides = [1, 1]} : vector<8x512xf32> to vector<8x128xf32>
    %254 = math.tanh %253 : vector<8x128xf32>
    %255 = vector.extract_strided_slice %236 {offsets = [0, 384], sizes = [8, 128], strides = [1, 1]} : vector<8x512xf32> to vector<8x128xf32>
    %cst_88 = arith.constant 5.000000e-01 : f32
    %256 = vector.broadcast %cst_88 : f32 to vector<8x128xf32>
    %257 = arith.mulf %256, %255 : vector<8x128xf32>
    %258 = math.tanh %257 : vector<8x128xf32>
    %cst_89 = arith.constant 5.000000e-01 : f32
    %259 = vector.broadcast %cst_89 : f32 to vector<8x128xf32>
    %260 = arith.mulf %259, %258 : vector<8x128xf32>
    %cst_90 = arith.constant 5.000000e-01 : f32
    %261 = vector.broadcast %cst_90 : f32 to vector<8x128xf32>
    %262 = arith.addf %260, %261 : vector<8x128xf32>
    %263 = arith.mulf %252, %193 : vector<8x128xf32>
    %264 = arith.mulf %244, %254 : vector<8x128xf32>
    %265 = arith.addf %263, %264 : vector<8x128xf32>
    %266 = math.tanh %265 : vector<8x128xf32>
    %267 = arith.mulf %262, %266 : vector<8x128xf32>
    %268 = tpu.concatenate %267, %232 in 1 : vector<8x128xf32>, vector<8x128xf32> -> vector<8x256xf32>
    %c0_91 = arith.constant 0 : index
    %c0_92 = arith.constant 0 : index
    %269 = vector.load %arg3[%c0_91, %c0_92] : memref<256x1024xf32, #tpu.memory_space<vmem>>, vector<256x1024xf32>
    %cst_93 = arith.constant dense<0.000000e+00> : vector<8x1024xf32>
    %270 = tpu.matmul %268, %269, %cst_93 {dimension_numbers = #tpu.dot_dimension_numbers<[1], [0], [0], [1], [0, 0, 1, 1], [], []>} : vector<8x256xf32>, vector<256x1024xf32>, vector<8x1024xf32> -> vector<8x1024xf32>
    %271 = vector.extract_strided_slice %270 {offsets = [0, 0], sizes = [8, 512], strides = [1, 1]} : vector<8x1024xf32> to vector<8x512xf32>
    %272 = arith.addf %271, %14 : vector<8x512xf32>
    %273 = vector.extract_strided_slice %270 {offsets = [0, 512], sizes = [8, 512], strides = [1, 1]} : vector<8x1024xf32> to vector<8x512xf32>
    %274 = vector.extract_strided_slice %272 {offsets = [0, 0], sizes = [8, 128], strides = [1, 1]} : vector<8x512xf32> to vector<8x128xf32>
    %cst_94 = arith.constant 5.000000e-01 : f32
    %275 = vector.broadcast %cst_94 : f32 to vector<8x128xf32>
    %276 = arith.mulf %275, %274 : vector<8x128xf32>
    %277 = math.tanh %276 : vector<8x128xf32>
    %cst_95 = arith.constant 5.000000e-01 : f32
    %278 = vector.broadcast %cst_95 : f32 to vector<8x128xf32>
    %279 = arith.mulf %278, %277 : vector<8x128xf32>
    %cst_96 = arith.constant 5.000000e-01 : f32
    %280 = vector.broadcast %cst_96 : f32 to vector<8x128xf32>
    %281 = arith.addf %279, %280 : vector<8x128xf32>
    %282 = vector.extract_strided_slice %272 {offsets = [0, 128], sizes = [8, 128], strides = [1, 1]} : vector<8x512xf32> to vector<8x128xf32>
    %cst_97 = arith.constant 5.000000e-01 : f32
    %283 = vector.broadcast %cst_97 : f32 to vector<8x128xf32>
    %284 = arith.mulf %283, %282 : vector<8x128xf32>
    %285 = math.tanh %284 : vector<8x128xf32>
    %cst_98 = arith.constant 5.000000e-01 : f32
    %286 = vector.broadcast %cst_98 : f32 to vector<8x128xf32>
    %287 = arith.mulf %286, %285 : vector<8x128xf32>
    %cst_99 = arith.constant 5.000000e-01 : f32
    %288 = vector.broadcast %cst_99 : f32 to vector<8x128xf32>
    %289 = arith.addf %287, %288 : vector<8x128xf32>
    %290 = vector.extract_strided_slice %272 {offsets = [0, 256], sizes = [8, 128], strides = [1, 1]} : vector<8x512xf32> to vector<8x128xf32>
    %291 = math.tanh %290 : vector<8x128xf32>
    %292 = vector.extract_strided_slice %272 {offsets = [0, 384], sizes = [8, 128], strides = [1, 1]} : vector<8x512xf32> to vector<8x128xf32>
    %cst_100 = arith.constant 5.000000e-01 : f32
    %293 = vector.broadcast %cst_100 : f32 to vector<8x128xf32>
    %294 = arith.mulf %293, %292 : vector<8x128xf32>
    %295 = math.tanh %294 : vector<8x128xf32>
    %cst_101 = arith.constant 5.000000e-01 : f32
    %296 = vector.broadcast %cst_101 : f32 to vector<8x128xf32>
    %297 = arith.mulf %296, %295 : vector<8x128xf32>
    %cst_102 = arith.constant 5.000000e-01 : f32
    %298 = vector.broadcast %cst_102 : f32 to vector<8x128xf32>
    %299 = arith.addf %297, %298 : vector<8x128xf32>
    %300 = arith.mulf %289, %230 : vector<8x128xf32>
    %301 = arith.mulf %281, %291 : vector<8x128xf32>
    %302 = arith.addf %300, %301 : vector<8x128xf32>
    %303 = math.tanh %302 : vector<8x128xf32>
    %304 = arith.mulf %299, %303 : vector<8x128xf32>
    %c4_i32 = arith.constant 4 : i32
    %305 = arith.index_cast %c4_i32 : i32 to index
    %c0_103 = arith.constant 0 : index
    %c0_104 = arith.constant 0 : index
    %306 = vector.load %arg8[%305, %c0_103, %c0_104] : memref<8x8x512xf32, #tpu.memory_space<vmem>>, vector<1x8x512xf32>
    %307 = vector.shape_cast %306 : vector<1x8x512xf32> to vector<8x512xf32>
    %308 = arith.addf %307, %273 : vector<8x512xf32>
    %309 = vector.extract_strided_slice %308 {offsets = [0, 0], sizes = [8, 128], strides = [1, 1]} : vector<8x512xf32> to vector<8x128xf32>
    %cst_105 = arith.constant 5.000000e-01 : f32
    %310 = vector.broadcast %cst_105 : f32 to vector<8x128xf32>
    %311 = arith.mulf %310, %309 : vector<8x128xf32>
    %312 = math.tanh %311 : vector<8x128xf32>
    %cst_106 = arith.constant 5.000000e-01 : f32
    %313 = vector.broadcast %cst_106 : f32 to vector<8x128xf32>
    %314 = arith.mulf %313, %312 : vector<8x128xf32>
    %cst_107 = arith.constant 5.000000e-01 : f32
    %315 = vector.broadcast %cst_107 : f32 to vector<8x128xf32>
    %316 = arith.addf %314, %315 : vector<8x128xf32>
    %317 = vector.extract_strided_slice %308 {offsets = [0, 128], sizes = [8, 128], strides = [1, 1]} : vector<8x512xf32> to vector<8x128xf32>
    %cst_108 = arith.constant 5.000000e-01 : f32
    %318 = vector.broadcast %cst_108 : f32 to vector<8x128xf32>
    %319 = arith.mulf %318, %317 : vector<8x128xf32>
    %320 = math.tanh %319 : vector<8x128xf32>
    %cst_109 = arith.constant 5.000000e-01 : f32
    %321 = vector.broadcast %cst_109 : f32 to vector<8x128xf32>
    %322 = arith.mulf %321, %320 : vector<8x128xf32>
    %cst_110 = arith.constant 5.000000e-01 : f32
    %323 = vector.broadcast %cst_110 : f32 to vector<8x128xf32>
    %324 = arith.addf %322, %323 : vector<8x128xf32>
    %325 = vector.extract_strided_slice %308 {offsets = [0, 256], sizes = [8, 128], strides = [1, 1]} : vector<8x512xf32> to vector<8x128xf32>
    %326 = math.tanh %325 : vector<8x128xf32>
    %327 = vector.extract_strided_slice %308 {offsets = [0, 384], sizes = [8, 128], strides = [1, 1]} : vector<8x512xf32> to vector<8x128xf32>
    %cst_111 = arith.constant 5.000000e-01 : f32
    %328 = vector.broadcast %cst_111 : f32 to vector<8x128xf32>
    %329 = arith.mulf %328, %327 : vector<8x128xf32>
    %330 = math.tanh %329 : vector<8x128xf32>
    %cst_112 = arith.constant 5.000000e-01 : f32
    %331 = vector.broadcast %cst_112 : f32 to vector<8x128xf32>
    %332 = arith.mulf %331, %330 : vector<8x128xf32>
    %cst_113 = arith.constant 5.000000e-01 : f32
    %333 = vector.broadcast %cst_113 : f32 to vector<8x128xf32>
    %334 = arith.addf %332, %333 : vector<8x128xf32>
    %335 = arith.mulf %324, %265 : vector<8x128xf32>
    %336 = arith.mulf %316, %326 : vector<8x128xf32>
    %337 = arith.addf %335, %336 : vector<8x128xf32>
    %338 = math.tanh %337 : vector<8x128xf32>
    %339 = arith.mulf %334, %338 : vector<8x128xf32>
    %340 = tpu.concatenate %339, %304 in 1 : vector<8x128xf32>, vector<8x128xf32> -> vector<8x256xf32>
    %c0_114 = arith.constant 0 : index
    %c0_115 = arith.constant 0 : index
    %341 = vector.load %arg3[%c0_114, %c0_115] : memref<256x1024xf32, #tpu.memory_space<vmem>>, vector<256x1024xf32>
    %cst_116 = arith.constant dense<0.000000e+00> : vector<8x1024xf32>
    %342 = tpu.matmul %340, %341, %cst_116 {dimension_numbers = #tpu.dot_dimension_numbers<[1], [0], [0], [1], [0, 0, 1, 1], [], []>} : vector<8x256xf32>, vector<256x1024xf32>, vector<8x1024xf32> -> vector<8x1024xf32>
    %343 = vector.extract_strided_slice %342 {offsets = [0, 0], sizes = [8, 512], strides = [1, 1]} : vector<8x1024xf32> to vector<8x512xf32>
    %344 = arith.addf %343, %14 : vector<8x512xf32>
    %345 = vector.extract_strided_slice %342 {offsets = [0, 512], sizes = [8, 512], strides = [1, 1]} : vector<8x1024xf32> to vector<8x512xf32>
    %346 = vector.extract_strided_slice %344 {offsets = [0, 0], sizes = [8, 128], strides = [1, 1]} : vector<8x512xf32> to vector<8x128xf32>
    %cst_117 = arith.constant 5.000000e-01 : f32
    %347 = vector.broadcast %cst_117 : f32 to vector<8x128xf32>
    %348 = arith.mulf %347, %346 : vector<8x128xf32>
    %349 = math.tanh %348 : vector<8x128xf32>
    %cst_118 = arith.constant 5.000000e-01 : f32
    %350 = vector.broadcast %cst_118 : f32 to vector<8x128xf32>
    %351 = arith.mulf %350, %349 : vector<8x128xf32>
    %cst_119 = arith.constant 5.000000e-01 : f32
    %352 = vector.broadcast %cst_119 : f32 to vector<8x128xf32>
    %353 = arith.addf %351, %352 : vector<8x128xf32>
    %354 = vector.extract_strided_slice %344 {offsets = [0, 128], sizes = [8, 128], strides = [1, 1]} : vector<8x512xf32> to vector<8x128xf32>
    %cst_120 = arith.constant 5.000000e-01 : f32
    %355 = vector.broadcast %cst_120 : f32 to vector<8x128xf32>
    %356 = arith.mulf %355, %354 : vector<8x128xf32>
    %357 = math.tanh %356 : vector<8x128xf32>
    %cst_121 = arith.constant 5.000000e-01 : f32
    %358 = vector.broadcast %cst_121 : f32 to vector<8x128xf32>
    %359 = arith.mulf %358, %357 : vector<8x128xf32>
    %cst_122 = arith.constant 5.000000e-01 : f32
    %360 = vector.broadcast %cst_122 : f32 to vector<8x128xf32>
    %361 = arith.addf %359, %360 : vector<8x128xf32>
    %362 = vector.extract_strided_slice %344 {offsets = [0, 256], sizes = [8, 128], strides = [1, 1]} : vector<8x512xf32> to vector<8x128xf32>
    %363 = math.tanh %362 : vector<8x128xf32>
    %364 = vector.extract_strided_slice %344 {offsets = [0, 384], sizes = [8, 128], strides = [1, 1]} : vector<8x512xf32> to vector<8x128xf32>
    %cst_123 = arith.constant 5.000000e-01 : f32
    %365 = vector.broadcast %cst_123 : f32 to vector<8x128xf32>
    %366 = arith.mulf %365, %364 : vector<8x128xf32>
    %367 = math.tanh %366 : vector<8x128xf32>
    %cst_124 = arith.constant 5.000000e-01 : f32
    %368 = vector.broadcast %cst_124 : f32 to vector<8x128xf32>
    %369 = arith.mulf %368, %367 : vector<8x128xf32>
    %cst_125 = arith.constant 5.000000e-01 : f32
    %370 = vector.broadcast %cst_125 : f32 to vector<8x128xf32>
    %371 = arith.addf %369, %370 : vector<8x128xf32>
    %372 = arith.mulf %361, %302 : vector<8x128xf32>
    %373 = arith.mulf %353, %363 : vector<8x128xf32>
    %374 = arith.addf %372, %373 : vector<8x128xf32>
    %375 = math.tanh %374 : vector<8x128xf32>
    %376 = arith.mulf %371, %375 : vector<8x128xf32>
    %c5_i32 = arith.constant 5 : i32
    %377 = arith.index_cast %c5_i32 : i32 to index
    %c0_126 = arith.constant 0 : index
    %c0_127 = arith.constant 0 : index
    %378 = vector.load %arg8[%377, %c0_126, %c0_127] : memref<8x8x512xf32, #tpu.memory_space<vmem>>, vector<1x8x512xf32>
    %379 = vector.shape_cast %378 : vector<1x8x512xf32> to vector<8x512xf32>
    %380 = arith.addf %379, %345 : vector<8x512xf32>
    %381 = vector.extract_strided_slice %380 {offsets = [0, 0], sizes = [8, 128], strides = [1, 1]} : vector<8x512xf32> to vector<8x128xf32>
    %cst_128 = arith.constant 5.000000e-01 : f32
    %382 = vector.broadcast %cst_128 : f32 to vector<8x128xf32>
    %383 = arith.mulf %382, %381 : vector<8x128xf32>
    %384 = math.tanh %383 : vector<8x128xf32>
    %cst_129 = arith.constant 5.000000e-01 : f32
    %385 = vector.broadcast %cst_129 : f32 to vector<8x128xf32>
    %386 = arith.mulf %385, %384 : vector<8x128xf32>
    %cst_130 = arith.constant 5.000000e-01 : f32
    %387 = vector.broadcast %cst_130 : f32 to vector<8x128xf32>
    %388 = arith.addf %386, %387 : vector<8x128xf32>
    %389 = vector.extract_strided_slice %380 {offsets = [0, 128], sizes = [8, 128], strides = [1, 1]} : vector<8x512xf32> to vector<8x128xf32>
    %cst_131 = arith.constant 5.000000e-01 : f32
    %390 = vector.broadcast %cst_131 : f32 to vector<8x128xf32>
    %391 = arith.mulf %390, %389 : vector<8x128xf32>
    %392 = math.tanh %391 : vector<8x128xf32>
    %cst_132 = arith.constant 5.000000e-01 : f32
    %393 = vector.broadcast %cst_132 : f32 to vector<8x128xf32>
    %394 = arith.mulf %393, %392 : vector<8x128xf32>
    %cst_133 = arith.constant 5.000000e-01 : f32
    %395 = vector.broadcast %cst_133 : f32 to vector<8x128xf32>
    %396 = arith.addf %394, %395 : vector<8x128xf32>
    %397 = vector.extract_strided_slice %380 {offsets = [0, 256], sizes = [8, 128], strides = [1, 1]} : vector<8x512xf32> to vector<8x128xf32>
    %398 = math.tanh %397 : vector<8x128xf32>
    %399 = vector.extract_strided_slice %380 {offsets = [0, 384], sizes = [8, 128], strides = [1, 1]} : vector<8x512xf32> to vector<8x128xf32>
    %cst_134 = arith.constant 5.000000e-01 : f32
    %400 = vector.broadcast %cst_134 : f32 to vector<8x128xf32>
    %401 = arith.mulf %400, %399 : vector<8x128xf32>
    %402 = math.tanh %401 : vector<8x128xf32>
    %cst_135 = arith.constant 5.000000e-01 : f32
    %403 = vector.broadcast %cst_135 : f32 to vector<8x128xf32>
    %404 = arith.mulf %403, %402 : vector<8x128xf32>
    %cst_136 = arith.constant 5.000000e-01 : f32
    %405 = vector.broadcast %cst_136 : f32 to vector<8x128xf32>
    %406 = arith.addf %404, %405 : vector<8x128xf32>
    %407 = arith.mulf %396, %337 : vector<8x128xf32>
    %408 = arith.mulf %388, %398 : vector<8x128xf32>
    %409 = arith.addf %407, %408 : vector<8x128xf32>
    %410 = math.tanh %409 : vector<8x128xf32>
    %411 = arith.mulf %406, %410 : vector<8x128xf32>
    %412 = tpu.concatenate %411, %376 in 1 : vector<8x128xf32>, vector<8x128xf32> -> vector<8x256xf32>
    %c0_137 = arith.constant 0 : index
    %c0_138 = arith.constant 0 : index
    %413 = vector.load %arg3[%c0_137, %c0_138] : memref<256x1024xf32, #tpu.memory_space<vmem>>, vector<256x1024xf32>
    %cst_139 = arith.constant dense<0.000000e+00> : vector<8x1024xf32>
    %414 = tpu.matmul %412, %413, %cst_139 {dimension_numbers = #tpu.dot_dimension_numbers<[1], [0], [0], [1], [0, 0, 1, 1], [], []>} : vector<8x256xf32>, vector<256x1024xf32>, vector<8x1024xf32> -> vector<8x1024xf32>
    %415 = vector.extract_strided_slice %414 {offsets = [0, 0], sizes = [8, 512], strides = [1, 1]} : vector<8x1024xf32> to vector<8x512xf32>
    %416 = arith.addf %415, %14 : vector<8x512xf32>
    %417 = vector.extract_strided_slice %414 {offsets = [0, 512], sizes = [8, 512], strides = [1, 1]} : vector<8x1024xf32> to vector<8x512xf32>
    %418 = vector.extract_strided_slice %416 {offsets = [0, 0], sizes = [8, 128], strides = [1, 1]} : vector<8x512xf32> to vector<8x128xf32>
    %cst_140 = arith.constant 5.000000e-01 : f32
    %419 = vector.broadcast %cst_140 : f32 to vector<8x128xf32>
    %420 = arith.mulf %419, %418 : vector<8x128xf32>
    %421 = math.tanh %420 : vector<8x128xf32>
    %cst_141 = arith.constant 5.000000e-01 : f32
    %422 = vector.broadcast %cst_141 : f32 to vector<8x128xf32>
    %423 = arith.mulf %422, %421 : vector<8x128xf32>
    %cst_142 = arith.constant 5.000000e-01 : f32
    %424 = vector.broadcast %cst_142 : f32 to vector<8x128xf32>
    %425 = arith.addf %423, %424 : vector<8x128xf32>
    %426 = vector.extract_strided_slice %416 {offsets = [0, 128], sizes = [8, 128], strides = [1, 1]} : vector<8x512xf32> to vector<8x128xf32>
    %cst_143 = arith.constant 5.000000e-01 : f32
    %427 = vector.broadcast %cst_143 : f32 to vector<8x128xf32>
    %428 = arith.mulf %427, %426 : vector<8x128xf32>
    %429 = math.tanh %428 : vector<8x128xf32>
    %cst_144 = arith.constant 5.000000e-01 : f32
    %430 = vector.broadcast %cst_144 : f32 to vector<8x128xf32>
    %431 = arith.mulf %430, %429 : vector<8x128xf32>
    %cst_145 = arith.constant 5.000000e-01 : f32
    %432 = vector.broadcast %cst_145 : f32 to vector<8x128xf32>
    %433 = arith.addf %431, %432 : vector<8x128xf32>
    %434 = vector.extract_strided_slice %416 {offsets = [0, 256], sizes = [8, 128], strides = [1, 1]} : vector<8x512xf32> to vector<8x128xf32>
    %435 = math.tanh %434 : vector<8x128xf32>
    %436 = vector.extract_strided_slice %416 {offsets = [0, 384], sizes = [8, 128], strides = [1, 1]} : vector<8x512xf32> to vector<8x128xf32>
    %cst_146 = arith.constant 5.000000e-01 : f32
    %437 = vector.broadcast %cst_146 : f32 to vector<8x128xf32>
    %438 = arith.mulf %437, %436 : vector<8x128xf32>
    %439 = math.tanh %438 : vector<8x128xf32>
    %cst_147 = arith.constant 5.000000e-01 : f32
    %440 = vector.broadcast %cst_147 : f32 to vector<8x128xf32>
    %441 = arith.mulf %440, %439 : vector<8x128xf32>
    %cst_148 = arith.constant 5.000000e-01 : f32
    %442 = vector.broadcast %cst_148 : f32 to vector<8x128xf32>
    %443 = arith.addf %441, %442 : vector<8x128xf32>
    %444 = arith.mulf %433, %374 : vector<8x128xf32>
    %445 = arith.mulf %425, %435 : vector<8x128xf32>
    %446 = arith.addf %444, %445 : vector<8x128xf32>
    %447 = math.tanh %446 : vector<8x128xf32>
    %448 = arith.mulf %443, %447 : vector<8x128xf32>
    %c6_i32 = arith.constant 6 : i32
    %449 = arith.index_cast %c6_i32 : i32 to index
    %c0_149 = arith.constant 0 : index
    %c0_150 = arith.constant 0 : index
    %450 = vector.load %arg8[%449, %c0_149, %c0_150] : memref<8x8x512xf32, #tpu.memory_space<vmem>>, vector<1x8x512xf32>
    %451 = vector.shape_cast %450 : vector<1x8x512xf32> to vector<8x512xf32>
    %452 = arith.addf %451, %417 : vector<8x512xf32>
    %453 = vector.extract_strided_slice %452 {offsets = [0, 0], sizes = [8, 128], strides = [1, 1]} : vector<8x512xf32> to vector<8x128xf32>
    %cst_151 = arith.constant 5.000000e-01 : f32
    %454 = vector.broadcast %cst_151 : f32 to vector<8x128xf32>
    %455 = arith.mulf %454, %453 : vector<8x128xf32>
    %456 = math.tanh %455 : vector<8x128xf32>
    %cst_152 = arith.constant 5.000000e-01 : f32
    %457 = vector.broadcast %cst_152 : f32 to vector<8x128xf32>
    %458 = arith.mulf %457, %456 : vector<8x128xf32>
    %cst_153 = arith.constant 5.000000e-01 : f32
    %459 = vector.broadcast %cst_153 : f32 to vector<8x128xf32>
    %460 = arith.addf %458, %459 : vector<8x128xf32>
    %461 = vector.extract_strided_slice %452 {offsets = [0, 128], sizes = [8, 128], strides = [1, 1]} : vector<8x512xf32> to vector<8x128xf32>
    %cst_154 = arith.constant 5.000000e-01 : f32
    %462 = vector.broadcast %cst_154 : f32 to vector<8x128xf32>
    %463 = arith.mulf %462, %461 : vector<8x128xf32>
    %464 = math.tanh %463 : vector<8x128xf32>
    %cst_155 = arith.constant 5.000000e-01 : f32
    %465 = vector.broadcast %cst_155 : f32 to vector<8x128xf32>
    %466 = arith.mulf %465, %464 : vector<8x128xf32>
    %cst_156 = arith.constant 5.000000e-01 : f32
    %467 = vector.broadcast %cst_156 : f32 to vector<8x128xf32>
    %468 = arith.addf %466, %467 : vector<8x128xf32>
    %469 = vector.extract_strided_slice %452 {offsets = [0, 256], sizes = [8, 128], strides = [1, 1]} : vector<8x512xf32> to vector<8x128xf32>
    %470 = math.tanh %469 : vector<8x128xf32>
    %471 = vector.extract_strided_slice %452 {offsets = [0, 384], sizes = [8, 128], strides = [1, 1]} : vector<8x512xf32> to vector<8x128xf32>
    %cst_157 = arith.constant 5.000000e-01 : f32
    %472 = vector.broadcast %cst_157 : f32 to vector<8x128xf32>
    %473 = arith.mulf %472, %471 : vector<8x128xf32>
    %474 = math.tanh %473 : vector<8x128xf32>
    %cst_158 = arith.constant 5.000000e-01 : f32
    %475 = vector.broadcast %cst_158 : f32 to vector<8x128xf32>
    %476 = arith.mulf %475, %474 : vector<8x128xf32>
    %cst_159 = arith.constant 5.000000e-01 : f32
    %477 = vector.broadcast %cst_159 : f32 to vector<8x128xf32>
    %478 = arith.addf %476, %477 : vector<8x128xf32>
    %479 = arith.mulf %468, %409 : vector<8x128xf32>
    %480 = arith.mulf %460, %470 : vector<8x128xf32>
    %481 = arith.addf %479, %480 : vector<8x128xf32>
    %482 = math.tanh %481 : vector<8x128xf32>
    %483 = arith.mulf %478, %482 : vector<8x128xf32>
    %484 = tpu.concatenate %483, %448 in 1 : vector<8x128xf32>, vector<8x128xf32> -> vector<8x256xf32>
    %c0_160 = arith.constant 0 : index
    %c0_161 = arith.constant 0 : index
    %485 = vector.load %arg3[%c0_160, %c0_161] : memref<256x1024xf32, #tpu.memory_space<vmem>>, vector<256x1024xf32>
    %cst_162 = arith.constant dense<0.000000e+00> : vector<8x1024xf32>
    %486 = tpu.matmul %484, %485, %cst_162 {dimension_numbers = #tpu.dot_dimension_numbers<[1], [0], [0], [1], [0, 0, 1, 1], [], []>} : vector<8x256xf32>, vector<256x1024xf32>, vector<8x1024xf32> -> vector<8x1024xf32>
    %487 = vector.extract_strided_slice %486 {offsets = [0, 0], sizes = [8, 512], strides = [1, 1]} : vector<8x1024xf32> to vector<8x512xf32>
    %488 = arith.addf %487, %14 : vector<8x512xf32>
    %489 = vector.extract_strided_slice %486 {offsets = [0, 512], sizes = [8, 512], strides = [1, 1]} : vector<8x1024xf32> to vector<8x512xf32>
    %490 = vector.extract_strided_slice %488 {offsets = [0, 0], sizes = [8, 128], strides = [1, 1]} : vector<8x512xf32> to vector<8x128xf32>
    %cst_163 = arith.constant 5.000000e-01 : f32
    %491 = vector.broadcast %cst_163 : f32 to vector<8x128xf32>
    %492 = arith.mulf %491, %490 : vector<8x128xf32>
    %493 = math.tanh %492 : vector<8x128xf32>
    %cst_164 = arith.constant 5.000000e-01 : f32
    %494 = vector.broadcast %cst_164 : f32 to vector<8x128xf32>
    %495 = arith.mulf %494, %493 : vector<8x128xf32>
    %cst_165 = arith.constant 5.000000e-01 : f32
    %496 = vector.broadcast %cst_165 : f32 to vector<8x128xf32>
    %497 = arith.addf %495, %496 : vector<8x128xf32>
    %498 = vector.extract_strided_slice %488 {offsets = [0, 128], sizes = [8, 128], strides = [1, 1]} : vector<8x512xf32> to vector<8x128xf32>
    %cst_166 = arith.constant 5.000000e-01 : f32
    %499 = vector.broadcast %cst_166 : f32 to vector<8x128xf32>
    %500 = arith.mulf %499, %498 : vector<8x128xf32>
    %501 = math.tanh %500 : vector<8x128xf32>
    %cst_167 = arith.constant 5.000000e-01 : f32
    %502 = vector.broadcast %cst_167 : f32 to vector<8x128xf32>
    %503 = arith.mulf %502, %501 : vector<8x128xf32>
    %cst_168 = arith.constant 5.000000e-01 : f32
    %504 = vector.broadcast %cst_168 : f32 to vector<8x128xf32>
    %505 = arith.addf %503, %504 : vector<8x128xf32>
    %506 = vector.extract_strided_slice %488 {offsets = [0, 256], sizes = [8, 128], strides = [1, 1]} : vector<8x512xf32> to vector<8x128xf32>
    %507 = math.tanh %506 : vector<8x128xf32>
    %508 = vector.extract_strided_slice %488 {offsets = [0, 384], sizes = [8, 128], strides = [1, 1]} : vector<8x512xf32> to vector<8x128xf32>
    %cst_169 = arith.constant 5.000000e-01 : f32
    %509 = vector.broadcast %cst_169 : f32 to vector<8x128xf32>
    %510 = arith.mulf %509, %508 : vector<8x128xf32>
    %511 = math.tanh %510 : vector<8x128xf32>
    %cst_170 = arith.constant 5.000000e-01 : f32
    %512 = vector.broadcast %cst_170 : f32 to vector<8x128xf32>
    %513 = arith.mulf %512, %511 : vector<8x128xf32>
    %cst_171 = arith.constant 5.000000e-01 : f32
    %514 = vector.broadcast %cst_171 : f32 to vector<8x128xf32>
    %515 = arith.addf %513, %514 : vector<8x128xf32>
    %516 = arith.mulf %505, %446 : vector<8x128xf32>
    %517 = arith.mulf %497, %507 : vector<8x128xf32>
    %518 = arith.addf %516, %517 : vector<8x128xf32>
    %519 = math.tanh %518 : vector<8x128xf32>
    %520 = arith.mulf %515, %519 : vector<8x128xf32>
    %c7_i32 = arith.constant 7 : i32
    %521 = arith.index_cast %c7_i32 : i32 to index
    %c0_172 = arith.constant 0 : index
    %c0_173 = arith.constant 0 : index
    %522 = vector.load %arg8[%521, %c0_172, %c0_173] : memref<8x8x512xf32, #tpu.memory_space<vmem>>, vector<1x8x512xf32>
    %523 = vector.shape_cast %522 : vector<1x8x512xf32> to vector<8x512xf32>
    %524 = arith.addf %523, %489 : vector<8x512xf32>
    %525 = vector.extract_strided_slice %524 {offsets = [0, 0], sizes = [8, 128], strides = [1, 1]} : vector<8x512xf32> to vector<8x128xf32>
    %cst_174 = arith.constant 5.000000e-01 : f32
    %526 = vector.broadcast %cst_174 : f32 to vector<8x128xf32>
    %527 = arith.mulf %526, %525 : vector<8x128xf32>
    %528 = math.tanh %527 : vector<8x128xf32>
    %cst_175 = arith.constant 5.000000e-01 : f32
    %529 = vector.broadcast %cst_175 : f32 to vector<8x128xf32>
    %530 = arith.mulf %529, %528 : vector<8x128xf32>
    %cst_176 = arith.constant 5.000000e-01 : f32
    %531 = vector.broadcast %cst_176 : f32 to vector<8x128xf32>
    %532 = arith.addf %530, %531 : vector<8x128xf32>
    %533 = vector.extract_strided_slice %524 {offsets = [0, 128], sizes = [8, 128], strides = [1, 1]} : vector<8x512xf32> to vector<8x128xf32>
    %cst_177 = arith.constant 5.000000e-01 : f32
    %534 = vector.broadcast %cst_177 : f32 to vector<8x128xf32>
    %535 = arith.mulf %534, %533 : vector<8x128xf32>
    %536 = math.tanh %535 : vector<8x128xf32>
    %cst_178 = arith.constant 5.000000e-01 : f32
    %537 = vector.broadcast %cst_178 : f32 to vector<8x128xf32>
    %538 = arith.mulf %537, %536 : vector<8x128xf32>
    %cst_179 = arith.constant 5.000000e-01 : f32
    %539 = vector.broadcast %cst_179 : f32 to vector<8x128xf32>
    %540 = arith.addf %538, %539 : vector<8x128xf32>
    %541 = vector.extract_strided_slice %524 {offsets = [0, 256], sizes = [8, 128], strides = [1, 1]} : vector<8x512xf32> to vector<8x128xf32>
    %542 = math.tanh %541 : vector<8x128xf32>
    %543 = vector.extract_strided_slice %524 {offsets = [0, 384], sizes = [8, 128], strides = [1, 1]} : vector<8x512xf32> to vector<8x128xf32>
    %cst_180 = arith.constant 5.000000e-01 : f32
    %544 = vector.broadcast %cst_180 : f32 to vector<8x128xf32>
    %545 = arith.mulf %544, %543 : vector<8x128xf32>
    %546 = math.tanh %545 : vector<8x128xf32>
    %cst_181 = arith.constant 5.000000e-01 : f32
    %547 = vector.broadcast %cst_181 : f32 to vector<8x128xf32>
    %548 = arith.mulf %547, %546 : vector<8x128xf32>
    %cst_182 = arith.constant 5.000000e-01 : f32
    %549 = vector.broadcast %cst_182 : f32 to vector<8x128xf32>
    %550 = arith.addf %548, %549 : vector<8x128xf32>
    %551 = arith.mulf %540, %481 : vector<8x128xf32>
    %552 = arith.mulf %532, %542 : vector<8x128xf32>
    %553 = arith.addf %551, %552 : vector<8x128xf32>
    %554 = math.tanh %553 : vector<8x128xf32>
    %555 = arith.mulf %550, %554 : vector<8x128xf32>
    %556 = tpu.concatenate %555, %520 in 1 : vector<8x128xf32>, vector<8x128xf32> -> vector<8x256xf32>
    %c0_183 = arith.constant 0 : index
    %c0_184 = arith.constant 0 : index
    %557 = vector.load %arg3[%c0_183, %c0_184] : memref<256x1024xf32, #tpu.memory_space<vmem>>, vector<256x1024xf32>
    %cst_185 = arith.constant dense<0.000000e+00> : vector<8x1024xf32>
    %558 = tpu.matmul %556, %557, %cst_185 {dimension_numbers = #tpu.dot_dimension_numbers<[1], [0], [0], [1], [0, 0, 1, 1], [], []>} : vector<8x256xf32>, vector<256x1024xf32>, vector<8x1024xf32> -> vector<8x1024xf32>
    %559 = vector.extract_strided_slice %558 {offsets = [0, 0], sizes = [8, 512], strides = [1, 1]} : vector<8x1024xf32> to vector<8x512xf32>
    %560 = arith.addf %559, %14 : vector<8x512xf32>
    %561 = vector.extract_strided_slice %558 {offsets = [0, 512], sizes = [8, 512], strides = [1, 1]} : vector<8x1024xf32> to vector<8x512xf32>
    %562 = vector.extract_strided_slice %560 {offsets = [0, 0], sizes = [8, 128], strides = [1, 1]} : vector<8x512xf32> to vector<8x128xf32>
    %cst_186 = arith.constant 5.000000e-01 : f32
    %563 = vector.broadcast %cst_186 : f32 to vector<8x128xf32>
    %564 = arith.mulf %563, %562 : vector<8x128xf32>
    %565 = math.tanh %564 : vector<8x128xf32>
    %cst_187 = arith.constant 5.000000e-01 : f32
    %566 = vector.broadcast %cst_187 : f32 to vector<8x128xf32>
    %567 = arith.mulf %566, %565 : vector<8x128xf32>
    %cst_188 = arith.constant 5.000000e-01 : f32
    %568 = vector.broadcast %cst_188 : f32 to vector<8x128xf32>
    %569 = arith.addf %567, %568 : vector<8x128xf32>
    %570 = vector.extract_strided_slice %560 {offsets = [0, 128], sizes = [8, 128], strides = [1, 1]} : vector<8x512xf32> to vector<8x128xf32>
    %cst_189 = arith.constant 5.000000e-01 : f32
    %571 = vector.broadcast %cst_189 : f32 to vector<8x128xf32>
    %572 = arith.mulf %571, %570 : vector<8x128xf32>
    %573 = math.tanh %572 : vector<8x128xf32>
    %cst_190 = arith.constant 5.000000e-01 : f32
    %574 = vector.broadcast %cst_190 : f32 to vector<8x128xf32>
    %575 = arith.mulf %574, %573 : vector<8x128xf32>
    %cst_191 = arith.constant 5.000000e-01 : f32
    %576 = vector.broadcast %cst_191 : f32 to vector<8x128xf32>
    %577 = arith.addf %575, %576 : vector<8x128xf32>
    %578 = vector.extract_strided_slice %560 {offsets = [0, 256], sizes = [8, 128], strides = [1, 1]} : vector<8x512xf32> to vector<8x128xf32>
    %579 = math.tanh %578 : vector<8x128xf32>
    %580 = vector.extract_strided_slice %560 {offsets = [0, 384], sizes = [8, 128], strides = [1, 1]} : vector<8x512xf32> to vector<8x128xf32>
    %cst_192 = arith.constant 5.000000e-01 : f32
    %581 = vector.broadcast %cst_192 : f32 to vector<8x128xf32>
    %582 = arith.mulf %581, %580 : vector<8x128xf32>
    %583 = math.tanh %582 : vector<8x128xf32>
    %cst_193 = arith.constant 5.000000e-01 : f32
    %584 = vector.broadcast %cst_193 : f32 to vector<8x128xf32>
    %585 = arith.mulf %584, %583 : vector<8x128xf32>
    %cst_194 = arith.constant 5.000000e-01 : f32
    %586 = vector.broadcast %cst_194 : f32 to vector<8x128xf32>
    %587 = arith.addf %585, %586 : vector<8x128xf32>
    %588 = arith.mulf %577, %518 : vector<8x128xf32>
    %589 = arith.mulf %569, %579 : vector<8x128xf32>
    %590 = arith.addf %588, %589 : vector<8x128xf32>
    %591 = math.tanh %590 : vector<8x128xf32>
    %592 = arith.mulf %587, %591 : vector<8x128xf32>
    %c8_i32 = arith.constant 8 : i32
    %c0_195 = arith.constant 0 : index
    %c0_196 = arith.constant 0 : index
    %593 = vector.load %arg5[%c0_195, %c0_196] : memref<1x128xf32, #tpu.memory_space<vmem>>, vector<1x128xf32>
    %594 = vector.broadcast %593 : vector<1x128xf32> to vector<8x128xf32>
    %595 = arith.mulf %592, %594 : vector<8x128xf32>
    %cst_197 = arith.constant dense<0.000000e+00> : vector<8xf32>
    %596 = vector.multi_reduction <add>, %595, %cst_197 [1] : vector<8x128xf32> to vector<8xf32>
    %597 = vector.shape_cast %596 : vector<8xf32> to vector<8x1xf32>
    %c0_198 = arith.constant 0 : index
    %c0_199 = arith.constant 0 : index
    %598 = vector.load %arg6[%c0_198, %c0_199] : memref<1x1xf32, #tpu.memory_space<vmem>>, vector<1x1xf32>
    %599 = vector.broadcast %598 : vector<1x1xf32> to vector<8x1xf32>
    %600 = arith.addf %597, %599 : vector<8x1xf32>
    %c0_200 = arith.constant 0 : index
    %c0_201 = arith.constant 0 : index
    %601 = vector.load %arg7[%c0_200, %c0_201] : memref<8x1xf32, #tpu.memory_space<vmem>>, vector<8x1xf32>
    tpu.vector_store %arg7[%c0_200, %c0_201], %600 {strides = array<i32>} : memref<8x1xf32, #tpu.memory_space<vmem>>, vector<8x1xf32>,
    return
  }
}

</mosaic_0001>

<bundles_post_ra>
// kernel: tpu_custom_call.1
= control target key start
LH: loop header
LB: loop body
LE: loop exit
PB: predicated region body
PF: predicated region fallthrough
CT: control target
= control target key end

     0   :  { %s6793_s0 = inlined_call_operand.hbm [shape: f32[8,8], index: 0, kind: input, shape index: {}]   ;;  %s6794_s1 = inlined_call_operand.vmem [shape: f32[1,512], index: 1, kind: input, shape index: {}]   ;;  %s6795_s2 = inlined_call_operand.vmem [shape: f32[1,512], index: 2, kind: input, shape index: {}]   ;;  %s6796_s3 = inlined_call_operand.hbm [shape: f32[256,1024], index: 3, kind: input, shape index: {}]   ;;  %s6797_s4 = inlined_call_operand.vmem [shape: f32[1,512], index: 4, kind: input, shape index: {}]   ;;  %s6798_s5 = inlined_call_operand.vmem [shape: f32[1,128], index: 5, kind: input, shape index: {}]   ;;  %s6799_s6 = inlined_call_operand.<no memory space> [shape: f32[1,1], index: 6, kind: input, shape index: {}]   ;;  %s6800_s7 = inlined_call_operand.vmem [shape: f32[8,1], index: 7, kind: output, shape index: {}]  }
   0x1   :  { %v12_v0 = vstv %s6799_s6 }
   0x2   :  { %13 = vst [vmem:[#allocation3] sm:$0x1] %v12_v0 }
   0x3   :  { %14 = vsyncpa [#allocation5], 0 }
   0x4   :  { %15 = vsyncpa [#allocation7], 0  ;;  %s5213_s26 = smov [#allocation4]   ;;  %s5214_s28 = smov [#allocation6]  }
   0x5   :  { %s22_s27 = sshll.u32 %s5213_s26, 4  ;;  %s35_s29 = sshll.u32 %s5214_s28, 4  ;;  %s23_s27 = int_to_ptr.vmem [resolvable:$true] %s22_s27  ;;  %s5261_s29 = int_to_ptr.vmem [resolvable:$true] %s35_s29 }
   0x6   :  { %s5165_s9 = scalar_lea.hbm %s6793_s0, 128 }
   0x7   :  { %p5166_p0 = scmp.ne.s32.totalorder %s6793_s0, %s5165_s9  ;;  %p5169_p1 = scmp.lt.u32.totalorder %s5165_s9, %s6793_s0 }
   0x9   :  { %p5171_p2 = pnand %p5169_p1, %p5166_p0 }
   0xb   :  { %5174 = shalt.err (!%p5171_p2)
}
   0xc   :  { %s5175_s13 = scalar_lea.vmem %s23_s27, 128  ;;  %p5180_p4 = scmp.lt.s32.totalorder %s23_s27, %s23_s27 }
   0xd   :  { %p5176_p3 = scmp.ne.s32.totalorder %s23_s27, %s5175_s13  ;;  %p5181_p5 = scmp.lt.s32.totalorder %s5175_s13, %s5175_s13 }
   0xf   :  { %p5182_p6 = por %p5181_p5, %p5180_p4 }
  0x11   :  { %p5183_p7 = pnand %p5182_p6, %p5176_p3 }
  0x13   :  { %5186 = shalt.err (!%p5183_p7)
}
  0x14   :  { %25 = dma.hbm_to_vmem [thread:$0]  %s6793_s0, 128, %s23_s27, [#allocation5]  }
  0x15   :  { %s5187_s18 = scalar_lea.hbm %s6796_s3, 32768 }
  0x16   :  { %p5188_p8 = scmp.ne.s32.totalorder %s6796_s3, %s5187_s18  ;;  %p5191_p9 = scmp.lt.u32.totalorder %s5187_s18, %s6796_s3 }
  0x18   :  { %p5193_p10 = pnand %p5191_p9, %p5188_p8 }
  0x1a   :  { %5196 = shalt.err (!%p5193_p10)
}
  0x1b   :  { %s5197_s23 = scalar_lea.vmem %s5261_s29, 32768  ;;  %p5202_p12 = scmp.lt.s32.totalorder %s5261_s29, %s5261_s29 }
  0x1c   :  { %p5198_p11 = scmp.ne.s32.totalorder %s5261_s29, %s5197_s23  ;;  %p5203_p13 = scmp.lt.s32.totalorder %s5197_s23, %s5197_s23 }
  0x1e   :  { %p5204_p0 = por %p5203_p13, %p5202_p12 }
  0x20   :  { %p5205_p1 = pnand %p5204_p0, %p5198_p11 }
  0x22   :  { %5208 = shalt.err (!%p5205_p1)
}
  0x23   :  { %s5215_s0 = smov 1024   ;;  %s5216_s24 = smov 64  }
  0x24   :  { %41 = dma.hbm_to_vmem [thread:$0]  %s6796_s3, 32768, %s5261_s29, [#allocation7], %s5215_s0, %s5215_s0, %s5216_s24  }
  0x25   :  { %5209 = dma.done.wait [#allocation5], 128  }
  0x26   :  { %5210 = vsyncadd [#allocation5], 4294967168 }
  0x27   :  { %5211 = dma.done.wait [#allocation7], 32768  }
  0x28   :  { %5212 = vsyncadd [#allocation7], 4294934528  ;;  %v55_v1 = vlaneseq  ;;  %v5297_v4 = vld [vmem:[#allocation4] sm:$0xff]  ;;  %v300_v6 = vld [vmem:[#allocation6 + $0x8] sm:$0xff]  ;;  %vm3068_vm0 = vcmask 7168  }
  0x29   :  { %v308_v7 = vld [vmem:[#allocation6 + $0x48] sm:$0xff]  ;;  %v302_v8 = vld [vmem:[#allocation6 + $0x18] sm:$0xff]  ;;  %v299_v10 = vld [vmem:[#allocation6] sm:$0xff] }
  0x2a   :  { %v5292_v2 = vshrl.u32 %v55_v1, 7  ;;  %v310_v9 = vld [vmem:[#allocation6 + $0x58] sm:$0xff]  ;;  %v307_v11 = vld [vmem:[#allocation6 + $0x40] sm:$0xff]  ;;  %v301_v12 = vld [vmem:[#allocation6 + $0x10] sm:$0xff]  ;;  %v5301_v14 = vpack.c.bf16 %v308_v7, %v300_v6  ;;  %v6801_v7 = vmov 0.0  }
  0x2b   :  { %v309_v13 = vld [vmem:[#allocation6 + $0x50] sm:$0xff]  ;;  %v5303_v15 = vpack.c.bf16 %v310_v9, %v302_v8  ;;  %v5305_v16 = vpack.c.bf16 %v307_v11, %v299_v10  ;;  %v316_v17 = vld [vmem:[#allocation6 + $0x88] sm:$0xff]  ;;  %v318_v19 = vld [vmem:[#allocation6 + $0x98] sm:$0xff]  ;;  %619 = vmatprep.mubr.f32.mxu0 %v6801_v7  ;;  %690 = vmatprep.mubr.f32.mxu1 %v6801_v7 }
  0x2c   :  { %7111 = vst [vmem:[#allocation10_spill] sm:$0xff] %v5292_v2  ;;  %v5295_v3 = vsub.s32 0, %v5292_v2  ;;  %7113 = vst [vmem:[#allocation12_spill] sm:$0xff] %v5301_v14  ;;  %v324_v18 = vld [vmem:[#allocation6 + $0xc8] sm:$0xff]  ;;  %v5307_v20 = vpack.c.bf16 %v309_v13, %v301_v12  ;;  %v326_v22 = vld [vmem:[#allocation6 + $0xd8] sm:$0xff]  ;;  %3079 = vmatprep.subr.bf16.mxu0 %v5301_v14 }
  0x2d   :  { %7114 = vst [vmem:[#allocation13_spill] sm:$0xff] %v5303_v15  ;;  %7115 = vst [vmem:[#allocation14_spill] sm:$0xff] %v5305_v16  ;;  %v5309_v21 = vpack.c.bf16 %v324_v18, %v316_v17  ;;  %v315_v23 = vld [vmem:[#allocation6 + $0x80] sm:$0xff]  ;;  %3143 = vmatprep.subr.bf16.mxu1 %v5303_v15  ;;  %v5313_v25 = vpack.c.bf16 %v326_v22, %v318_v19  ;;  %v317_v26 = vld [vmem:[#allocation6 + $0x90] sm:$0xff]  ;;  %3081 = vmatpush1.bf16.msra.mxu0 %v5305_v16 }
  0x2e   :  { %7112 = vst [vmem:[#allocation11_spill] sm:$0xff] %v5295_v3  ;;  %v58_v5 = vrot.slane %v5297_v4, %v5295_v3  ;;  %7116 = vst [vmem:[#allocation15_spill] sm:$0xff] %v5307_v20  ;;  %v323_v24 = vld [vmem:[#allocation6 + $0xc0] sm:$0xff]  ;;  %v325_v27 = vld [vmem:[#allocation6 + $0xd0] sm:$0xff]  ;;  %3145 = vmatpush1.bf16.msra.mxu1 %v5307_v20 }
  0x2f   :  { %7117 = vst [vmem:[#allocation16_spill] sm:$0xff] %v5309_v21  ;;  %7118 = vst [vmem:[#allocation17_spill] sm:$0xff] %v5313_v25  ;;  %v332_v28 = vld [vmem:[#allocation6 + $0x108] sm:$0xff]  ;;  %v5317_v29 = vpack.c.bf16 %v323_v24, %v315_v23  ;;  %v5319_v30 = vpack.c.bf16 %v325_v27, %v317_v26  ;;  %v334_v32 = vld [vmem:[#allocation6 + $0x118] sm:$0xff]  ;;  %3083 = vmatprep.subr.bf16.mxu0 %v5309_v21  ;;  %3147 = vmatprep.subr.bf16.mxu1 %v5313_v25 }
  0x30   :  { %60 = vbcast.lane.b32.xlu0 %v58_v5, 256  ;;  %v340_v31 = vld [vmem:[#allocation6 + $0x148] sm:$0xff]  ;;  %v342_v33 = vld [vmem:[#allocation6 + $0x158] sm:$0xff]  ;;  %v331_v36 = vld [vmem:[#allocation6 + $0x100] sm:$0xff] }
  0x31   :  { %7119 = vst [vmem:[#allocation18_spill] sm:$0xff] %v5317_v29  ;;  %7120 = vst [vmem:[#allocation19_spill] sm:$0xff] %v5319_v30  ;;  %v5323_v34 = vpack.c.bf16 %v340_v31, %v332_v28  ;;  %v5325_v35 = vpack.c.bf16 %v342_v33, %v334_v32  ;;  %v339_v37 = vld [vmem:[#allocation6 + $0x140] sm:$0xff]  ;;  %v333_v38 = vld [vmem:[#allocation6 + $0x110] sm:$0xff]  ;;  %3085 = vmatpush1.bf16.msra.mxu0 %v5317_v29 }
  0x32   :  { %v341_v39 = vld [vmem:[#allocation6 + $0x150] sm:$0xff]  ;;  %v348_v40 = vld [vmem:[#allocation6 + $0x188] sm:$0xff]  ;;  %v350_v42 = vld [vmem:[#allocation6 + $0x198] sm:$0xff]  ;;  %3149 = vmatpush1.bf16.msra.mxu1 %v5319_v30  ;;  %v5329_v44 = vpack.c.bf16 %v339_v37, %v331_v36 }
  0x33   :  { %7121 = vst [vmem:[#allocation20_spill] sm:$0xff] %v5323_v34  ;;  %7122 = vst [vmem:[#allocation21_spill] sm:$0xff] %v5325_v35  ;;  %v356_v41 = vld [vmem:[#allocation6 + $0x1c8] sm:$0xff]  ;;  %v358_v43 = vld [vmem:[#allocation6 + $0x1d8] sm:$0xff]  ;;  %v5331_v45 = vpack.c.bf16 %v341_v39, %v333_v38  ;;  %3087 = vmatprep.subr.bf16.mxu0 %v5323_v34  ;;  %3151 = vmatprep.subr.bf16.mxu1 %v5325_v35 }
  0x34   :  { %7123 = vst [vmem:[#allocation22_spill] sm:$0xff] %v5329_v44  ;;  %v347_v46 = vld [vmem:[#allocation6 + $0x180] sm:$0xff]  ;;  %v5335_v48 = vpack.c.bf16 %v356_v41, %v348_v40  ;;  %v5337_v49 = vpack.c.bf16 %v358_v43, %v350_v42  ;;  %v349_v50 = vld [vmem:[#allocation6 + $0x190] sm:$0xff]  ;;  %v364_v52 = vld [vmem:[#allocation6 + $0x208] sm:$0xff] }
  0x35   :  { %7124 = vst [vmem:[#allocation23_spill] sm:$0xff] %v5331_v45  ;;  %v355_v47 = vld [vmem:[#allocation6 + $0x1c0] sm:$0xff]  ;;  %v357_v51 = vld [vmem:[#allocation6 + $0x1d0] sm:$0xff]  ;;  %v372_v53 = vld [vmem:[#allocation6 + $0x248] sm:$0xff]  ;;  %3089 = vmatpush1.bf16.msra.mxu0 %v5329_v44 }
  0x36   :  { %7125 = vst [vmem:[#allocation24_spill] sm:$0xff] %v5335_v48  ;;  %7126 = vst [vmem:[#allocation25_spill] sm:$0xff] %v5337_v49  ;;  %v366_v54 = vld [vmem:[#allocation6 + $0x218] sm:$0xff]  ;;  %3153 = vmatpush1.bf16.msra.mxu1 %v5331_v45  ;;  %v5341_v56 = vpack.c.bf16 %v355_v47, %v347_v46  ;;  %v5343_v57 = vpack.c.bf16 %v357_v51, %v349_v50  ;;  %v363_v58 = vld [vmem:[#allocation6 + $0x200] sm:$0xff]  ;;  %3091 = vmatprep.subr.bf16.mxu0 %v5335_v48 }
  0x37   :  { %v374_v55 = vld [vmem:[#allocation6 + $0x258] sm:$0xff]  ;;  %v371_v59 = vld [vmem:[#allocation6 + $0x240] sm:$0xff]  ;;  %3155 = vmatprep.subr.bf16.mxu1 %v5337_v49  ;;  %v5347_v60 = vpack.c.bf16 %v372_v53, %v364_v52  ;;  %v365_v62 = vld [vmem:[#allocation6 + $0x210] sm:$0xff] }
  0x38   :  { %7127 = vst [vmem:[#allocation26_spill] sm:$0xff] %v5341_v56  ;;  %7128 = vst [vmem:[#allocation27_spill] sm:$0xff] %v5343_v57  ;;  %v5349_v61 = vpack.c.bf16 %v374_v55, %v366_v54  ;;  %v373_v63 = vld [vmem:[#allocation6 + $0x250] sm:$0xff]  ;;  %v380_v0 = vld [vmem:[#allocation6 + $0x288] sm:$0xff]  ;;  %v5355_v8 = vpack.c.bf16 %v371_v59, %v363_v58 }
  0x39   :  { %7129 = vst [vmem:[#allocation28_spill] sm:$0xff] %v5347_v60  ;;  %v388_v1 = vld [vmem:[#allocation6 + $0x2c8] sm:$0xff]  ;;  %v382_v5 = vld [vmem:[#allocation6 + $0x298] sm:$0xff]  ;;  %3093 = vmatpush1.bf16.msra.mxu0 %v5341_v56  ;;  %v5357_v9 = vpack.c.bf16 %v373_v63, %v365_v62  ;;  %v379_v10 = vld [vmem:[#allocation6 + $0x280] sm:$0xff] }
  0x3a   :  { %7130 = vst [vmem:[#allocation29_spill] sm:$0xff] %v5349_v61  ;;  %v390_v6 = vld [vmem:[#allocation6 + $0x2d8] sm:$0xff]  ;;  %3157 = vmatpush1.bf16.msra.mxu1 %v5343_v57  ;;  %7131 = vst [vmem:[#allocation30_spill] sm:$0xff] %v5355_v8  ;;  %v387_v11 = vld [vmem:[#allocation6 + $0x2c0] sm:$0xff]  ;;  %3095 = vmatprep.subr.bf16.mxu0 %v5347_v60  ;;  %v5361_v12 = vpack.c.bf16 %v388_v1, %v380_v0 }
  0x3b   :  { %7132 = vst [vmem:[#allocation31_spill] sm:$0xff] %v5357_v9  ;;  %3159 = vmatprep.subr.bf16.mxu1 %v5349_v61  ;;  %v5363_v13 = vpack.c.bf16 %v390_v6, %v382_v5  ;;  %v381_v17 = vld [vmem:[#allocation6 + $0x290] sm:$0xff]  ;;  %v396_v19 = vld [vmem:[#allocation6 + $0x308] sm:$0xff]  ;;  %v398_v23 = vld [vmem:[#allocation6 + $0x318] sm:$0xff]  ;;  %v5367_v26 = vpack.c.bf16 %v387_v11, %v379_v10 }
  0x3c   :  { %7133 = vst [vmem:[#allocation32_spill] sm:$0xff] %v5361_v12  ;;  %v389_v18 = vld [vmem:[#allocation6 + $0x2d0] sm:$0xff]  ;;  %v404_v22 = vld [vmem:[#allocation6 + $0x348] sm:$0xff]  ;;  %v406_v24 = vld [vmem:[#allocation6 + $0x358] sm:$0xff] }
  0x3d   :  { %7134 = vst [vmem:[#allocation33_spill] sm:$0xff] %v5363_v13  ;;  %3097 = vmatpush1.bf16.msra.mxu0 %v5355_v8  ;;  %7135 = vst [vmem:[#allocation34_spill] sm:$0xff] %v5367_v26  ;;  %v5369_v27 = vpack.c.bf16 %v389_v18, %v381_v17  ;;  %v395_v28 = vld [vmem:[#allocation6 + $0x300] sm:$0xff]  ;;  %v5373_v32 = vpack.c.bf16 %v404_v22, %v396_v19  ;;  %v5375_v33 = vpack.c.bf16 %v406_v24, %v398_v23  ;;  %v397_v36 = vld [vmem:[#allocation6 + $0x310] sm:$0xff] }
  0x3e   :  { %3161 = vmatpush1.bf16.msra.mxu1 %v5357_v9  ;;  %v403_v31 = vld [vmem:[#allocation6 + $0x340] sm:$0xff]  ;;  %3099 = vmatprep.subr.bf16.mxu0 %v5361_v12  ;;  %v405_v37 = vld [vmem:[#allocation6 + $0x350] sm:$0xff]  ;;  %v412_v38 = vld [vmem:[#allocation6 + $0x388] sm:$0xff] }
  0x3f   :  { %7136 = vst [vmem:[#allocation35_spill] sm:$0xff] %v5369_v27  ;;  %3163 = vmatprep.subr.bf16.mxu1 %v5363_v13  ;;  %7137 = vst [vmem:[#allocation36_spill] sm:$0xff] %v5373_v32  ;;  %v420_v39 = vld [vmem:[#allocation6 + $0x3c8] sm:$0xff]  ;;  %v414_v40 = vld [vmem:[#allocation6 + $0x398] sm:$0xff]  ;;  %v5379_v42 = vpack.c.bf16 %v403_v31, %v395_v28  ;;  %v5381_v43 = vpack.c.bf16 %v405_v37, %v397_v36 }
  0x40   :  { %7138 = vst [vmem:[#allocation37_spill] sm:$0xff] %v5375_v33  ;;  %v422_v41 = vld [vmem:[#allocation6 + $0x3d8] sm:$0xff]  ;;  %v411_v46 = vld [vmem:[#allocation6 + $0x380] sm:$0xff]  ;;  %v5385_v50 = vpack.c.bf16 %v420_v39, %v412_v38  ;;  %v413_v52 = vld [vmem:[#allocation6 + $0x390] sm:$0xff] }
  0x41   :  { %3101 = vmatpush1.bf16.msra.mxu0 %v5367_v26  ;;  %7139 = vst [vmem:[#allocation38_spill] sm:$0xff] %v5379_v42  ;;  %7140 = vst [vmem:[#allocation39_spill] sm:$0xff] %v5381_v43  ;;  %v419_v47 = vld [vmem:[#allocation6 + $0x3c0] sm:$0xff]  ;;  %v5387_v51 = vpack.c.bf16 %v422_v41, %v414_v40  ;;  %v421_v53 = vld [vmem:[#allocation6 + $0x3d0] sm:$0xff] }
  0x42   :  { %3165 = vmatpush1.bf16.msra.mxu1 %v5369_v27  ;;  %3103 = vmatprep.subr.bf16.mxu0 %v5373_v32  ;;  %7141 = vst [vmem:[#allocation40_spill] sm:$0xff] %v5385_v50  ;;  %v428_v54 = vld [vmem:[#allocation6 + $0x408] sm:$0xff]  ;;  %v430_v58 = vld [vmem:[#allocation6 + $0x418] sm:$0xff]  ;;  %v5391_v62 = vpack.c.bf16 %v419_v47, %v411_v46  ;;  %v5393_v63 = vpack.c.bf16 %v421_v53, %v413_v52  ;;  %v427_v0 = vld [vmem:[#allocation6 + $0x400] sm:$0xff] }
  0x43   :  { %3167 = vmatprep.subr.bf16.mxu1 %v5375_v33  ;;  %7142 = vst [vmem:[#allocation41_spill] sm:$0xff] %v5387_v51  ;;  %v436_v55 = vld [vmem:[#allocation6 + $0x448] sm:$0xff]  ;;  %v438_v59 = vld [vmem:[#allocation6 + $0x458] sm:$0xff]  ;;  %v435_v1 = vld [vmem:[#allocation6 + $0x440] sm:$0xff] }
  0x44   :  { %7143 = vst [vmem:[#allocation42_spill] sm:$0xff] %v5391_v62  ;;  %7144 = vst [vmem:[#allocation43_spill] sm:$0xff] %v5393_v63  ;;  %v5397_v5 = vpack.c.bf16 %v436_v55, %v428_v54  ;;  %v5399_v6 = vpack.c.bf16 %v438_v59, %v430_v58  ;;  %v429_v10 = vld [vmem:[#allocation6 + $0x410] sm:$0xff]  ;;  %v444_v17 = vld [vmem:[#allocation6 + $0x488] sm:$0xff]  ;;  %v5403_v23 = vpack.c.bf16 %v435_v1, %v427_v0 }
  0x45   :  { %3105 = vmatpush1.bf16.msra.mxu0 %v5379_v42  ;;  %v437_v11 = vld [vmem:[#allocation6 + $0x450] sm:$0xff]  ;;  %v452_v18 = vld [vmem:[#allocation6 + $0x4c8] sm:$0xff]  ;;  %v446_v19 = vld [vmem:[#allocation6 + $0x498] sm:$0xff] }
  0x46   :  { %3169 = vmatpush1.bf16.msra.mxu1 %v5381_v43  ;;  %3107 = vmatprep.subr.bf16.mxu0 %v5385_v50  ;;  %7145 = vst [vmem:[#allocation44_spill] sm:$0xff] %v5397_v5  ;;  %7146 = vst [vmem:[#allocation45_spill] sm:$0xff] %v5399_v6  ;;  %v454_v22 = vld [vmem:[#allocation6 + $0x4d8] sm:$0xff]  ;;  %v5405_v24 = vpack.c.bf16 %v437_v11, %v429_v10  ;;  %v443_v28 = vld [vmem:[#allocation6 + $0x480] sm:$0xff]  ;;  %v5409_v36 = vpack.c.bf16 %v452_v18, %v444_v17 }
  0x47   :  { %3171 = vmatprep.subr.bf16.mxu1 %v5387_v51  ;;  %7147 = vst [vmem:[#allocation46_spill] sm:$0xff] %v5403_v23  ;;  %v451_v31 = vld [vmem:[#allocation6 + $0x4c0] sm:$0xff]  ;;  %v5411_v37 = vpack.c.bf16 %v454_v22, %v446_v19  ;;  %v445_v38 = vld [vmem:[#allocation6 + $0x490] sm:$0xff]  ;;  %v460_v40 = vld [vmem:[#allocation6 + $0x508] sm:$0xff] }
  0x48   :  { %7148 = vst [vmem:[#allocation47_spill] sm:$0xff] %v5405_v24  ;;  %7149 = vst [vmem:[#allocation48_spill] sm:$0xff] %v5409_v36  ;;  %v453_v39 = vld [vmem:[#allocation6 + $0x4d0] sm:$0xff]  ;;  %v468_v41 = vld [vmem:[#allocation6 + $0x548] sm:$0xff]  ;;  %v5415_v52 = vpack.c.bf16 %v451_v31, %v443_v28 }
  0x49   :  { %3109 = vmatpush1.bf16.msra.mxu0 %v5391_v62  ;;  %7150 = vst [vmem:[#allocation49_spill] sm:$0xff] %v5411_v37  ;;  %v462_v46 = vld [vmem:[#allocation6 + $0x518] sm:$0xff]  ;;  %v5417_v53 = vpack.c.bf16 %v453_v39, %v445_v38  ;;  %v459_v54 = vld [vmem:[#allocation6 + $0x500] sm:$0xff]  ;;  %v5421_v58 = vpack.c.bf16 %v468_v41, %v460_v40  ;;  %v461_v0 = vld [vmem:[#allocation6 + $0x510] sm:$0xff] }
  0x4a   :  { %3173 = vmatpush1.bf16.msra.mxu1 %v5393_v63  ;;  %3111 = vmatprep.subr.bf16.mxu0 %v5397_v5  ;;  %v470_v47 = vld [vmem:[#allocation6 + $0x558] sm:$0xff]  ;;  %7151 = vst [vmem:[#allocation50_spill] sm:$0xff] %v5415_v52  ;;  %v467_v55 = vld [vmem:[#allocation6 + $0x540] sm:$0xff]  ;;  %v469_v1 = vld [vmem:[#allocation6 + $0x550] sm:$0xff] }
  0x4b   :  { %3175 = vmatprep.subr.bf16.mxu1 %v5399_v6  ;;  %7152 = vst [vmem:[#allocation51_spill] sm:$0xff] %v5417_v53  ;;  %7153 = vst [vmem:[#allocation52_spill] sm:$0xff] %v5421_v58  ;;  %v5423_v59 = vpack.c.bf16 %v470_v47, %v462_v46  ;;  %v476_v10 = vld [vmem:[#allocation6 + $0x588] sm:$0xff]  ;;  %v478_v17 = vld [vmem:[#allocation6 + $0x598] sm:$0xff]  ;;  %v5427_v19 = vpack.c.bf16 %v467_v55, %v459_v54  ;;  %v5429_v22 = vpack.c.bf16 %v469_v1, %v461_v0 }
  0x4c   :  { %v484_v11 = vld [vmem:[#allocation6 + $0x5c8] sm:$0xff]  ;;  %v486_v18 = vld [vmem:[#allocation6 + $0x5d8] sm:$0xff]  ;;  %v475_v28 = vld [vmem:[#allocation6 + $0x580] sm:$0xff] }
  0x4d   :  { %3113 = vmatpush1.bf16.msra.mxu0 %v5403_v23  ;;  %7154 = vst [vmem:[#allocation53_spill] sm:$0xff] %v5423_v59  ;;  %7155 = vst [vmem:[#allocation54_spill] sm:$0xff] %v5427_v19  ;;  %v483_v31 = vld [vmem:[#allocation6 + $0x5c0] sm:$0xff]  ;;  %v5433_v38 = vpack.c.bf16 %v484_v11, %v476_v10  ;;  %v5435_v39 = vpack.c.bf16 %v486_v18, %v478_v17  ;;  %v477_v40 = vld [vmem:[#allocation6 + $0x590] sm:$0xff] }
  0x4e   :  { %3177 = vmatpush1.bf16.msra.mxu1 %v5405_v24  ;;  %3115 = vmatprep.subr.bf16.mxu0 %v5409_v36  ;;  %7156 = vst [vmem:[#allocation55_spill] sm:$0xff] %v5429_v22  ;;  %v485_v41 = vld [vmem:[#allocation6 + $0x5d0] sm:$0xff]  ;;  %v492_v46 = vld [vmem:[#allocation6 + $0x608] sm:$0xff]  ;;  %v494_v7 = vld [vmem:[#allocation6 + $0x618] sm:$0xff]  ;;  %v5439_v54 = vpack.c.bf16 %v483_v31, %v475_v28 }
  0x4f   :  { %3179 = vmatprep.subr.bf16.mxu1 %v5411_v37  ;;  %7157 = vst [vmem:[#allocation56_spill] sm:$0xff] %v5433_v38  ;;  %7158 = vst [vmem:[#allocation57_spill] sm:$0xff] %v5435_v39  ;;  %v500_v47 = vld [vmem:[#allocation6 + $0x648] sm:$0xff]  ;;  %v5441_v55 = vpack.c.bf16 %v485_v41, %v477_v40  ;;  %v491_v0 = vld [vmem:[#allocation6 + $0x600] sm:$0xff] }
  0x50   :  { %7159 = vst [vmem:[#allocation58_spill] sm:$0xff] %v5439_v54  ;;  %v499_v1 = vld [vmem:[#allocation6 + $0x640] sm:$0xff]  ;;  %v5445_v10 = vpack.c.bf16 %v500_v47, %v492_v46  ;;  %v493_v17 = vld [vmem:[#allocation6 + $0x610] sm:$0xff] }
  0x51   :  { %3117 = vmatpush1.bf16.msra.mxu0 %v5415_v52  ;;  %7160 = vst [vmem:[#allocation59_spill] sm:$0xff] %v5441_v55  ;;  %v501_v18 = vld [vmem:[#allocation6 + $0x650] sm:$0xff]  ;;  %v5451_v28 = vpack.c.bf16 %v499_v1, %v491_v0  ;;  %v507_v40 = vld [vmem:[#allocation6 + $0x680] sm:$0xff] }
  0x52   :  { %3181 = vmatpush1.bf16.msra.mxu1 %v5417_v53  ;;  %3119 = vmatprep.subr.bf16.mxu0 %v5421_v58  ;;  %v502_v53 = vld [vmem:[#allocation6 + $0x658] sm:$0xff]  ;;  %7161 = vst [vmem:[#allocation60_spill] sm:$0xff] %v5445_v10  ;;  %v5453_v31 = vpack.c.bf16 %v501_v18, %v493_v17  ;;  %v515_v41 = vld [vmem:[#allocation6 + $0x6c0] sm:$0xff]  ;;  %v509_v46 = vld [vmem:[#allocation6 + $0x690] sm:$0xff] }
  0x53   :  { %3183 = vmatprep.subr.bf16.mxu1 %v5423_v59  ;;  %v5447_v11 = vpack.c.bf16 %v502_v53, %v494_v7  ;;  %v508_v59 = vld [vmem:[#allocation6 + $0x688] sm:$0xff]  ;;  %v510_v58 = vld [vmem:[#allocation6 + $0x698] sm:$0xff]  ;;  %7163 = vst [vmem:[#allocation62_spill] sm:$0xff] %v5451_v28  ;;  %v517_v47 = vld [vmem:[#allocation6 + $0x6d0] sm:$0xff]  ;;  %v5463_v0 = vpack.c.bf16 %v515_v41, %v507_v40 }
  0x54   :  { %7164 = vst [vmem:[#allocation63_spill] sm:$0xff] %v5453_v31  ;;  %v5465_v1 = vpack.c.bf16 %v517_v47, %v509_v46  ;;  %v523_v17 = vld [vmem:[#allocation6 + $0x700] sm:$0xff] }
  0x55   :  { %3121 = vmatpush1.bf16.msra.mxu0 %v5427_v19  ;;  %7162 = vst [vmem:[#allocation61_spill] sm:$0xff] %v5447_v11  ;;  %v516_v19 = vld [vmem:[#allocation6 + $0x6c8] sm:$0xff]  ;;  %7167 = vst [vmem:[#allocation66_spill] sm:$0xff] %v5463_v0  ;;  %v531_v18 = vld [vmem:[#allocation6 + $0x740] sm:$0xff] }
  0x56   :  { %3185 = vmatpush1.bf16.msra.mxu1 %v5429_v22  ;;  %3123 = vmatprep.subr.bf16.mxu0 %v5433_v38  ;;  %v518_v22 = vld [vmem:[#allocation6 + $0x6d8] sm:$0xff]  ;;  %v5457_v7 = vpack.c.bf16 %v516_v19, %v508_v59  ;;  %7168 = vst [vmem:[#allocation67_spill] sm:$0xff] %v5465_v1  ;;  %v525_v19 = vld [vmem:[#allocation6 + $0x710] sm:$0xff]  ;;  %v5475_v40 = vpack.c.bf16 %v531_v18, %v523_v17  ;;  %v539_v46 = vld [vmem:[#allocation6 + $0x780] sm:$0xff] }
  0x57   :  { %3187 = vmatprep.subr.bf16.mxu1 %v5435_v39  ;;  %v5459_v53 = vpack.c.bf16 %v518_v22, %v510_v58  ;;  %v524_v39 = vld [vmem:[#allocation6 + $0x708] sm:$0xff]  ;;  %v526_v38 = vld [vmem:[#allocation6 + $0x718] sm:$0xff]  ;;  %v533_v22 = vld [vmem:[#allocation6 + $0x750] sm:$0xff] }
  0x58   :  { %7165 = vst [vmem:[#allocation64_spill] sm:$0xff] %v5457_v7  ;;  %7171 = vst [vmem:[#allocation70_spill] sm:$0xff] %v5475_v40  ;;  %v5477_v41 = vpack.c.bf16 %v533_v22, %v525_v19  ;;  %v547_v47 = vld [vmem:[#allocation6 + $0x7c0] sm:$0xff] }
  0x59   :  { %3125 = vmatpush1.bf16.msra.mxu0 %v5439_v54  ;;  %7166 = vst [vmem:[#allocation65_spill] sm:$0xff] %v5459_v53  ;;  %v532_v54 = vld [vmem:[#allocation6 + $0x748] sm:$0xff]  ;;  %v5487_v17 = vpack.c.bf16 %v547_v47, %v539_v46 }
  0x5a   :  { %3189 = vmatpush1.bf16.msra.mxu1 %v5441_v55  ;;  %3127 = vmatprep.subr.bf16.mxu0 %v5445_v10  ;;  %v534_v55 = vld [vmem:[#allocation6 + $0x758] sm:$0xff]  ;;  %v5469_v58 = vpack.c.bf16 %v532_v54, %v524_v39  ;;  %7172 = vst [vmem:[#allocation71_spill] sm:$0xff] %v5477_v41  ;;  %v541_v54 = vld [vmem:[#allocation6 + $0x790] sm:$0xff] }
  0x5b   :  { %3191 = vmatprep.subr.bf16.mxu1 %v5447_v11  ;;  %v5471_v59 = vpack.c.bf16 %v534_v55, %v526_v38  ;;  %v540_v11 = vld [vmem:[#allocation6 + $0x788] sm:$0xff]  ;;  %v542_v10 = vld [vmem:[#allocation6 + $0x798] sm:$0xff]  ;;  %v549_v55 = vld [vmem:[#allocation6 + $0x7d0] sm:$0xff]  ;;  %7175 = vst [vmem:[#allocation74_spill] sm:$0xff] %v5487_v17 }
  0x5c   :  { %7169 = vst [vmem:[#allocation68_spill] sm:$0xff] %v5469_v58  ;;  %v5489_v18 = vpack.c.bf16 %v549_v55, %v541_v54 }
  0x5d   :  { %3129 = vmatpush1.bf16.msra.mxu0 %v5451_v28  ;;  %7170 = vst [vmem:[#allocation69_spill] sm:$0xff] %v5471_v59  ;;  %v548_v28 = vld [vmem:[#allocation6 + $0x7c8] sm:$0xff] }
  0x5e   :  { %3193 = vmatpush1.bf16.msra.mxu1 %v5453_v31  ;;  %3131 = vmatprep.subr.bf16.mxu0 %v5457_v7  ;;  %v550_v31 = vld [vmem:[#allocation6 + $0x7d8] sm:$0xff]  ;;  %v5481_v38 = vpack.c.bf16 %v548_v28, %v540_v11  ;;  %7176 = vst [vmem:[#allocation75_spill] sm:$0xff] %v5489_v18  ;;  %v5502_v28 = vsub.s32 1, %v5292_v2 }
  0x5f   :  { %3195 = vmatprep.subr.bf16.mxu1 %v5459_v53  ;;  %v5483_v39 = vpack.c.bf16 %v550_v31, %v542_v10  ;;  %v304_v53 = vld [vmem:[#allocation6 + $0x28] sm:$0xff]  ;;  %v306_v7 = vld [vmem:[#allocation6 + $0x38] sm:$0xff] }
  0x60   :  { %7173 = vst [vmem:[#allocation72_spill] sm:$0xff] %v5481_v38  ;;  %7179 = vst [vmem:[#allocation78_spill] sm:$0xff] %v5502_v28  ;;  %v65_v31 = vrot.slane %v5297_v4, %v5502_v28  ;;  %v5522_v4 = vsub.s32 3, %v5292_v2 }
  0x61   :  { %3133 = vmatpush1.bf16.msra.mxu0 %v5463_v0  ;;  %7174 = vst [vmem:[#allocation73_spill] sm:$0xff] %v5483_v39  ;;  %v312_v0 = vld [vmem:[#allocation6 + $0x68] sm:$0xff] }
  0x62   :  { %3197 = vmatpush1.bf16.msra.mxu1 %v5465_v1  ;;  %3135 = vmatprep.subr.bf16.mxu0 %v5469_v58  ;;  %v314_v1 = vld [vmem:[#allocation6 + $0x78] sm:$0xff]  ;;  %v5493_v10 = vpack.c.bf16 %v312_v0, %v304_v53  ;;  %v5510_v53 = vsub.s32 2, %v5292_v2  ;;  %7183 = vst [vmem:[#allocation82_spill] sm:$0xff] %v5522_v4 }
  0x63   :  { %3199 = vmatprep.subr.bf16.mxu1 %v5471_v59  ;;  %v5495_v11 = vpack.c.bf16 %v314_v1, %v306_v7  ;;  %67 = vbcast.lane.b32.xlu0 %v65_v31, 256  ;;  %v111_v7 = vld [vmem:[%s6794_s1] sm:$0xf] }
  0x64   :  { %7177 = vst [vmem:[#allocation76_spill] sm:$0xff] %v5493_v10  ;;  %7180 = vst [vmem:[#allocation79_spill] sm:$0xff] %v5510_v53  ;;  %v165_v0 = vld [vmem:[%s6795_s2] sm:$0xf]  ;;  %v5516_v1 = vrot.slane %v111_v7, %v5295_v3  ;;  %v5519_v19 = vrot.slane %v111_v7, %v5502_v28  ;;  %v5525_v22 = vrot.slane %v111_v7, %v5510_v53 }
  0x65   :  { %3137 = vmatpush1.bf16.msra.mxu0 %v5475_v40  ;;  %7178 = vst [vmem:[#allocation77_spill] sm:$0xff] %v5495_v11  ;;  %v5528_v46 = vrot.slane %v165_v0, %v5295_v3  ;;  %v5531_v47 = vrot.slane %v165_v0, %v5502_v28  ;;  %v5539_v2 = vrot.slane %v165_v0, %v5510_v53  ;;  %v338_v40 = vld [vmem:[#allocation6 + $0x138] sm:$0xff] }
  0x66   :  { %3201 = vmatpush1.bf16.msra.mxu1 %v5477_v41  ;;  %3139 = vmatprep.subr.bf16.mxu0 %v5481_v38  ;;  %7181 = vst [vmem:[#allocation80_spill] sm:$0xff] %v5516_v1  ;;  %7182 = vst [vmem:[#allocation81_spill] sm:$0xff] %v5519_v19  ;;  %v344_v41 = vld [vmem:[#allocation6 + $0x168] sm:$0xff]  ;;  %v346_v59 = vld [vmem:[#allocation6 + $0x178] sm:$0xff] }
  0x67   :  { %3203 = vmatprep.subr.bf16.mxu1 %v5483_v39  ;;  %7184 = vst [vmem:[#allocation83_spill] sm:$0xff] %v5525_v22  ;;  %7185 = vst [vmem:[#allocation84_spill] sm:$0xff] %v5528_v46  ;;  %v5545_v39 = vrot.slane %v165_v0, %v5522_v4 }
  0x68   :  { %7186 = vst [vmem:[#allocation85_spill] sm:$0xff] %v5531_v47  ;;  %7188 = vst [vmem:[#allocation87_spill] sm:$0xff] %v5539_v2 }
  0x69   :  { %3141 = vmatpush1.bf16.msra.mxu0 %v5487_v17  ;;  %7189 = vst [vmem:[#allocation88_spill] sm:$0xff] %v5545_v39 }
  0x6a   :  { %3205 = vmatpush1.bf16.msra.mxu1 %v5489_v18  ;;  %3207 = vmatprep.subr.bf16.mxu0 %v5493_v10 }
  0x6b   :  { %3271 = vmatprep.subr.bf16.mxu1 %v5495_v11  ;;  %v5536_v11 = vrot.slane %v111_v7, %v5522_v4 }
  0x6d   :  { %7187 = vst [vmem:[#allocation86_spill] sm:$0xff] %v5536_v11 }
  0xa2   :  { %v61_v54 = vpop.permute.xlu0 %60 }
  0xa3   :  { %v133_v55 = vmul.f32 %v5516_v1, %v61_v54  ;;  %v134_v31 = vmul.f32 %v5519_v19, %v61_v54  ;;  %v135_v10 = vmul.f32 %v5525_v22, %v61_v54  ;;  %v136_v1 = vmul.f32 %v5536_v11, %v61_v54  ;;  %v313_v54 = vld [vmem:[#allocation6 + $0x70] sm:$0xff] }
  0xa5   :  { %v187_v18 = vadd.f32 %v5528_v46, %v133_v55  ;;  %v188_v3 = vadd.f32 %v5531_v47, %v134_v31  ;;  %v189_v19 = vadd.f32 %v5539_v2, %v135_v10  ;;  %v190_v7 = vadd.f32 %v5545_v39, %v136_v1  ;;  %v311_v1 = vld [vmem:[#allocation6 + $0x60] sm:$0xff]  ;;  %v328_v39 = vld [vmem:[#allocation6 + $0xe8] sm:$0xff] }
  0xa6   :  { %v336_v2 = vld [vmem:[#allocation6 + $0x128] sm:$0xff] }
  0xa7   :  { %v281_v17 = vmul.f32 0.5, %v187_v18  ;;  %v285_v28 = vmul.f32 0.5, %v188_v3  ;;  %v290_v53 = vmul.f32 0.5, %v190_v7  ;;  %v320_v7 = vld [vmem:[#allocation6 + $0xa8] sm:$0xff] }
  0xa9   :  { %5003 = vtanh.f32 %v281_v17 }
  0xaa   :  { %5005 = vtanh.f32 %v285_v28  ;;  %v303_v28 = vld [vmem:[#allocation6 + $0x20] sm:$0xff] }
  0xab   :  { %5007 = vtanh.f32 %v189_v19  ;;  %v305_v19 = vld [vmem:[#allocation6 + $0x30] sm:$0xff]  ;;  %v5553_v11 = vpack.c.bf16 %v311_v1, %v303_v28  ;;  %v335_v28 = vld [vmem:[#allocation6 + $0x120] sm:$0xff] }
  0xac   :  { %5009 = vtanh.f32 %v290_v53  ;;  %v343_v1 = vld [vmem:[#allocation6 + $0x160] sm:$0xff] }
  0xb3   :  { %v5004_v22 = vpop.eup %5003 }
  0xb4   :  { %v5006_v38 = vpop.eup %5005  ;;  %v283_v55 = vmul.f32 0.5, %v5004_v22  ;;  %v322_v22 = vld [vmem:[#allocation6 + $0xb8] sm:$0xff] }
  0xb5   :  { %v287_v46 = vmul.f32 0.5, %v5006_v38  ;;  %v5008_v3 = vpop.eup %5007  ;;  %v330_v38 = vld [vmem:[#allocation6 + $0xf8] sm:$0xff] }
  0xb6   :  { %v284_v18 = vadd.f32 0.5, %v283_v55  ;;  %v5010_v17 = vpop.eup %5009 }
  0xb7   :  { %v288_v31 = vadd.f32 0.5, %v287_v46  ;;  %v292_v10 = vmul.f32 0.5, %v5010_v17  ;;  %v5555_v46 = vpack.c.bf16 %v313_v54, %v305_v19  ;;  %v321_v17 = vld [vmem:[#allocation6 + $0xb0] sm:$0xff]  ;;  %v5573_v19 = vpack.c.bf16 %v344_v41, %v336_v2 }
  0xb8   :  { %v295_v0 = vmul.f32 %v5008_v3, %v284_v18  ;;  %v327_v18 = vld [vmem:[#allocation6 + $0xe0] sm:$0xff]  ;;  %v5575_v54 = vpack.c.bf16 %v346_v59, %v338_v40 }
  0xb9   :  { %v294_v47 = vmul.f32 0.0, %v288_v31  ;;  %v293_v53 = vadd.f32 0.5, %v292_v10  ;;  %7191 = vst [vmem:[#allocation90_spill] sm:$0xff] %v5555_v46  ;;  %v5559_v31 = vpack.c.bf16 %v328_v39, %v320_v7  ;;  %7196 = vst [vmem:[#allocation95_spill] sm:$0xff] %v5573_v19  ;;  %v337_v7 = vld [vmem:[#allocation6 + $0x130] sm:$0xff]  ;;  %v351_v59 = vld [vmem:[#allocation6 + $0x1a0] sm:$0xff] }
  0xba   :  { %7197 = vst [vmem:[#allocation96_spill] sm:$0xff] %v5575_v54  ;;  %v359_v40 = vld [vmem:[#allocation6 + $0x1e0] sm:$0xff] }
  0xbb   :  { %v5550_v4 = vadd.f32 %v295_v0, %v294_v47  ;;  %v319_v47 = vld [vmem:[#allocation6 + $0xa0] sm:$0xff]  ;;  %7192 = vst [vmem:[#allocation91_spill] sm:$0xff] %v5559_v31  ;;  %v5561_v0 = vpack.c.bf16 %v330_v38, %v322_v22  ;;  %v345_v22 = vld [vmem:[#allocation6 + $0x170] sm:$0xff]  ;;  %v352_v38 = vld [vmem:[#allocation6 + $0x1a8] sm:$0xff] }
  0xbc   :  { %v5567_v10 = vpack.c.bf16 %v327_v18, %v319_v47  ;;  %v7198_v47 = vmov 0.0   ;;  %v5583_v2 = vpack.c.bf16 %v345_v22, %v337_v7  ;;  %v367_v7 = vld [vmem:[#allocation6 + $0x220] sm:$0xff] }
  0xbd   :  { %7190 = vst [vmem:[#allocation89_spill] sm:$0xff] %v5550_v4  ;;  %5011 = vtanh.f32 %v5550_v4  ;;  %7193 = vst [vmem:[#allocation92_spill] sm:$0xff] %v5561_v0  ;;  %v329_v4 = vld [vmem:[#allocation6 + $0xf0] sm:$0xff]  ;;  %v375_v22 = vld [vmem:[#allocation6 + $0x260] sm:$0xff] }
  0xbe   :  { %7194 = vst [vmem:[#allocation93_spill] sm:$0xff] %v5567_v10  ;;  %v5569_v39 = vpack.c.bf16 %v329_v4, %v321_v17  ;;  %v5581_v4 = vpack.c.bf16 %v343_v1, %v335_v28  ;;  %7200 = vst [vmem:[#allocation98_spill] sm:$0xff] %v5583_v2  ;;  %v353_v17 = vld [vmem:[#allocation6 + $0x1b0] sm:$0xff]  ;;  %v5593_v28 = vpack.c.bf16 %v359_v40, %v351_v59 }
  0xbf   :  { %v5605_v59 = vpack.c.bf16 %v375_v22, %v367_v7 }
  0xc0   :  { %7195 = vst [vmem:[#allocation94_spill] sm:$0xff] %v5569_v39  ;;  %7199 = vst [vmem:[#allocation97_spill] sm:$0xff] %v5581_v4 }
  0xc1   :  { %7203 = vst [vmem:[#allocation101_spill] sm:$0xff] %v5593_v28  ;;  %7207 = vst [vmem:[#allocation105_spill] sm:$0xff] %v5605_v59 }
  0xc7   :  { %v5012_v55 = vpop.eup %5011 }
  0xc8   :  { %v5557_v3 = vmul.f32 %v5012_v55, %v293_v53  ;;  %v360_v53 = vld [vmem:[#allocation6 + $0x1e8] sm:$0xff]  ;;  %v354_v55 = vld [vmem:[#allocation6 + $0x1b8] sm:$0xff] }
  0xc9   :  { %v5587_v41 = vpack.c.bf16 %v360_v53, %v352_v38  ;;  %v369_v53 = vld [vmem:[#allocation6 + $0x230] sm:$0xff] }
  0xca   :  { %620 = vmatmul.mubr.f32.vlgmr.msra.gmra.mrb[0].mxu0 %v5557_v3  ;;  %691 = vmatmul.mubr.f32.vlgmr.msra.gmra.mrb[0].mxu1 %v5557_v3 }
  0xcb   :  { %3209 = vmatpush1.bf16.msra.mxu0 %v5553_v11  ;;  %3273 = vmatpush1.bf16.msra.mxu1 %v5555_v46  ;;  %v362_v46 = vld [vmem:[#allocation6 + $0x1f8] sm:$0xff]  ;;  %7201 = vst [vmem:[#allocation99_spill] sm:$0xff] %v5587_v41 }
  0xcc   :  { %3211 = vmatprep.subr.bf16.mxu0 %v5559_v31  ;;  %3275 = vmatprep.subr.bf16.mxu1 %v5561_v0  ;;  %v5589_v18 = vpack.c.bf16 %v362_v46, %v354_v55  ;;  %v368_v0 = vld [vmem:[#allocation6 + $0x228] sm:$0xff]  ;;  %v370_v31 = vld [vmem:[#allocation6 + $0x238] sm:$0xff]  ;;  %v377_v55 = vld [vmem:[#allocation6 + $0x270] sm:$0xff] }
  0xcd   :  { %761 = vmatprep.mubr.f32.mxu0 %v7198_v47  ;;  %832 = vmatprep.mubr.f32.mxu1 %v7198_v47  ;;  %v361_v47 = vld [vmem:[#allocation6 + $0x1f0] sm:$0xff]  ;;  %v5607_v40 = vpack.c.bf16 %v377_v55, %v369_v53  ;;  %v399_v53 = vld [vmem:[#allocation6 + $0x320] sm:$0xff] }
  0xce   :  { %7202 = vst [vmem:[#allocation100_spill] sm:$0xff] %v5589_v18  ;;  %v5595_v1 = vpack.c.bf16 %v361_v47, %v353_v17  ;;  %v383_v17 = vld [vmem:[#allocation6 + $0x2a0] sm:$0xff] }
  0xcf   :  { %3213 = vmatpush1.bf16.msra.mxu0 %v5567_v10  ;;  %3277 = vmatpush1.bf16.msra.mxu1 %v5569_v39  ;;  %v376_v10 = vld [vmem:[#allocation6 + $0x268] sm:$0xff]  ;;  %v378_v39 = vld [vmem:[#allocation6 + $0x278] sm:$0xff]  ;;  %7208 = vst [vmem:[#allocation106_spill] sm:$0xff] %v5607_v40  ;;  %v391_v47 = vld [vmem:[#allocation6 + $0x2e0] sm:$0xff] }
  0xd0   :  { %3215 = vmatprep.subr.bf16.mxu0 %v5573_v19  ;;  %3279 = vmatprep.subr.bf16.mxu1 %v5575_v54  ;;  %7204 = vst [vmem:[#allocation102_spill] sm:$0xff] %v5595_v1  ;;  %v5599_v46 = vpack.c.bf16 %v376_v10, %v368_v0  ;;  %v5601_v38 = vpack.c.bf16 %v378_v39, %v370_v31  ;;  %v384_v54 = vld [vmem:[#allocation6 + $0x2a8] sm:$0xff]  ;;  %v386_v19 = vld [vmem:[#allocation6 + $0x2b8] sm:$0xff]  ;;  %v385_v10 = vld [vmem:[#allocation6 + $0x2b0] sm:$0xff] }
  0xd1   :  { %v393_v39 = vld [vmem:[#allocation6 + $0x2f0] sm:$0xff]  ;;  %v5617_v7 = vpack.c.bf16 %v391_v47, %v383_v17  ;;  %v407_v55 = vld [vmem:[#allocation6 + $0x360] sm:$0xff] }
  0xd2   :  { %7205 = vst [vmem:[#allocation103_spill] sm:$0xff] %v5599_v46  ;;  %7206 = vst [vmem:[#allocation104_spill] sm:$0xff] %v5601_v38  ;;  %v5619_v22 = vpack.c.bf16 %v393_v39, %v385_v10  ;;  %v5629_v17 = vpack.c.bf16 %v407_v55, %v399_v53  ;;  %v415_v10 = vld [vmem:[#allocation6 + $0x3a0] sm:$0xff] }
  0xd3   :  { %3217 = vmatpush1.bf16.msra.mxu0 %v5581_v4  ;;  %3281 = vmatpush1.bf16.msra.mxu1 %v5583_v2  ;;  %v392_v4 = vld [vmem:[#allocation6 + $0x2e8] sm:$0xff]  ;;  %v394_v2 = vld [vmem:[#allocation6 + $0x2f8] sm:$0xff]  ;;  %7211 = vst [vmem:[#allocation109_spill] sm:$0xff] %v5617_v7  ;;  %v423_v39 = vld [vmem:[#allocation6 + $0x3e0] sm:$0xff] }
  0xd4   :  { %3219 = vmatprep.subr.bf16.mxu0 %v5587_v41  ;;  %3283 = vmatprep.subr.bf16.mxu1 %v5589_v18  ;;  %v5611_v31 = vpack.c.bf16 %v392_v4, %v384_v54  ;;  %v5613_v0 = vpack.c.bf16 %v394_v2, %v386_v19  ;;  %v400_v18 = vld [vmem:[#allocation6 + $0x328] sm:$0xff]  ;;  %v402_v41 = vld [vmem:[#allocation6 + $0x338] sm:$0xff]  ;;  %7212 = vst [vmem:[#allocation110_spill] sm:$0xff] %v5619_v22  ;;  %v401_v4 = vld [vmem:[#allocation6 + $0x330] sm:$0xff] }
  0xd5   :  { %v409_v2 = vld [vmem:[#allocation6 + $0x370] sm:$0xff]  ;;  %7215 = vst [vmem:[#allocation113_spill] sm:$0xff] %v5629_v17  ;;  %v5641_v53 = vpack.c.bf16 %v423_v39, %v415_v10 }
  0xd6   :  { %7209 = vst [vmem:[#allocation107_spill] sm:$0xff] %v5611_v31  ;;  %7210 = vst [vmem:[#allocation108_spill] sm:$0xff] %v5613_v0  ;;  %v5631_v47 = vpack.c.bf16 %v409_v2, %v401_v4  ;;  %v431_v4 = vld [vmem:[#allocation6 + $0x420] sm:$0xff] }
  0xd7   :  { %3221 = vmatpush1.bf16.msra.mxu0 %v5593_v28  ;;  %3285 = vmatpush1.bf16.msra.mxu1 %v5595_v1  ;;  %v408_v28 = vld [vmem:[#allocation6 + $0x368] sm:$0xff]  ;;  %v410_v1 = vld [vmem:[#allocation6 + $0x378] sm:$0xff]  ;;  %7219 = vst [vmem:[#allocation117_spill] sm:$0xff] %v5641_v53  ;;  %v439_v2 = vld [vmem:[#allocation6 + $0x460] sm:$0xff] }
  0xd8   :  { %3223 = vmatprep.subr.bf16.mxu0 %v5599_v46  ;;  %3287 = vmatprep.subr.bf16.mxu1 %v5601_v38  ;;  %v5623_v19 = vpack.c.bf16 %v408_v28, %v400_v18  ;;  %v5625_v54 = vpack.c.bf16 %v410_v1, %v402_v41  ;;  %v416_v38 = vld [vmem:[#allocation6 + $0x3a8] sm:$0xff]  ;;  %v418_v46 = vld [vmem:[#allocation6 + $0x3b8] sm:$0xff]  ;;  %7216 = vst [vmem:[#allocation114_spill] sm:$0xff] %v5631_v47  ;;  %v417_v28 = vld [vmem:[#allocation6 + $0x3b0] sm:$0xff] }
  0xd9   :  { %v425_v1 = vld [vmem:[#allocation6 + $0x3f0] sm:$0xff]  ;;  %v5653_v10 = vpack.c.bf16 %v439_v2, %v431_v4 }
  0xda   :  { %7213 = vst [vmem:[#allocation111_spill] sm:$0xff] %v5623_v19  ;;  %7214 = vst [vmem:[#allocation112_spill] sm:$0xff] %v5625_v54  ;;  %v5643_v55 = vpack.c.bf16 %v425_v1, %v417_v28  ;;  %v447_v28 = vld [vmem:[#allocation6 + $0x4a0] sm:$0xff] }
  0xdb   :  { %3225 = vmatpush1.bf16.msra.mxu0 %v5605_v59  ;;  %3289 = vmatpush1.bf16.msra.mxu1 %v5607_v40  ;;  %v424_v59 = vld [vmem:[#allocation6 + $0x3e8] sm:$0xff]  ;;  %v426_v40 = vld [vmem:[#allocation6 + $0x3f8] sm:$0xff]  ;;  %7223 = vst [vmem:[#allocation121_spill] sm:$0xff] %v5653_v10  ;;  %v455_v1 = vld [vmem:[#allocation6 + $0x4e0] sm:$0xff] }
  0xdc   :  { %3227 = vmatprep.subr.bf16.mxu0 %v5611_v31  ;;  %3291 = vmatprep.subr.bf16.mxu1 %v5613_v0  ;;  %v5635_v41 = vpack.c.bf16 %v424_v59, %v416_v38  ;;  %v5637_v18 = vpack.c.bf16 %v426_v40, %v418_v46  ;;  %v432_v0 = vld [vmem:[#allocation6 + $0x428] sm:$0xff]  ;;  %v434_v31 = vld [vmem:[#allocation6 + $0x438] sm:$0xff]  ;;  %7220 = vst [vmem:[#allocation118_spill] sm:$0xff] %v5643_v55  ;;  %v433_v59 = vld [vmem:[#allocation6 + $0x430] sm:$0xff] }
  0xdd   :  { %v441_v40 = vld [vmem:[#allocation6 + $0x470] sm:$0xff]  ;;  %v5665_v4 = vpack.c.bf16 %v455_v1, %v447_v28 }
  0xde   :  { %7217 = vst [vmem:[#allocation115_spill] sm:$0xff] %v5635_v41  ;;  %7218 = vst [vmem:[#allocation116_spill] sm:$0xff] %v5637_v18  ;;  %v5655_v39 = vpack.c.bf16 %v441_v40, %v433_v59  ;;  %v463_v59 = vld [vmem:[#allocation6 + $0x520] sm:$0xff] }
  0xdf   :  { %3229 = vmatpush1.bf16.msra.mxu0 %v5617_v7  ;;  %3293 = vmatpush1.bf16.msra.mxu1 %v5619_v22  ;;  %v440_v7 = vld [vmem:[#allocation6 + $0x468] sm:$0xff]  ;;  %v442_v22 = vld [vmem:[#allocation6 + $0x478] sm:$0xff]  ;;  %7227 = vst [vmem:[#allocation125_spill] sm:$0xff] %v5665_v4  ;;  %v471_v40 = vld [vmem:[#allocation6 + $0x560] sm:$0xff] }
  0xe0   :  { %3231 = vmatprep.subr.bf16.mxu0 %v5623_v19  ;;  %3295 = vmatprep.subr.bf16.mxu1 %v5625_v54  ;;  %v5647_v46 = vpack.c.bf16 %v440_v7, %v432_v0  ;;  %v5649_v38 = vpack.c.bf16 %v442_v22, %v434_v31  ;;  %v448_v54 = vld [vmem:[#allocation6 + $0x4a8] sm:$0xff]  ;;  %v450_v19 = vld [vmem:[#allocation6 + $0x4b8] sm:$0xff]  ;;  %7224 = vst [vmem:[#allocation122_spill] sm:$0xff] %v5655_v39  ;;  %v449_v7 = vld [vmem:[#allocation6 + $0x4b0] sm:$0xff] }
  0xe1   :  { %v457_v22 = vld [vmem:[#allocation6 + $0x4f0] sm:$0xff]  ;;  %v5677_v28 = vpack.c.bf16 %v471_v40, %v463_v59 }
  0xe2   :  { %7221 = vst [vmem:[#allocation119_spill] sm:$0xff] %v5647_v46  ;;  %7222 = vst [vmem:[#allocation120_spill] sm:$0xff] %v5649_v38  ;;  %v5667_v2 = vpack.c.bf16 %v457_v22, %v449_v7  ;;  %v479_v7 = vld [vmem:[#allocation6 + $0x5a0] sm:$0xff] }
  0xe3   :  { %3233 = vmatpush1.bf16.msra.mxu0 %v5629_v17  ;;  %3297 = vmatpush1.bf16.msra.mxu1 %v5631_v47  ;;  %v456_v17 = vld [vmem:[#allocation6 + $0x4e8] sm:$0xff]  ;;  %v458_v47 = vld [vmem:[#allocation6 + $0x4f8] sm:$0xff]  ;;  %7231 = vst [vmem:[#allocation129_spill] sm:$0xff] %v5677_v28  ;;  %v487_v22 = vld [vmem:[#allocation6 + $0x5e0] sm:$0xff] }
  0xe4   :  { %3235 = vmatprep.subr.bf16.mxu0 %v5635_v41  ;;  %3299 = vmatprep.subr.bf16.mxu1 %v5637_v18  ;;  %v5659_v31 = vpack.c.bf16 %v456_v17, %v448_v54  ;;  %v5661_v0 = vpack.c.bf16 %v458_v47, %v450_v19  ;;  %v464_v18 = vld [vmem:[#allocation6 + $0x528] sm:$0xff]  ;;  %v466_v41 = vld [vmem:[#allocation6 + $0x538] sm:$0xff]  ;;  %7228 = vst [vmem:[#allocation126_spill] sm:$0xff] %v5667_v2  ;;  %v465_v17 = vld [vmem:[#allocation6 + $0x530] sm:$0xff] }
  0xe5   :  { %v473_v47 = vld [vmem:[#allocation6 + $0x570] sm:$0xff]  ;;  %v5689_v59 = vpack.c.bf16 %v487_v22, %v479_v7 }
  0xe6   :  { %7225 = vst [vmem:[#allocation123_spill] sm:$0xff] %v5659_v31  ;;  %7226 = vst [vmem:[#allocation124_spill] sm:$0xff] %v5661_v0  ;;  %v5679_v1 = vpack.c.bf16 %v473_v47, %v465_v17  ;;  %v495_v17 = vld [vmem:[#allocation6 + $0x620] sm:$0xff] }
  0xe7   :  { %3237 = vmatpush1.bf16.msra.mxu0 %v5641_v53  ;;  %3301 = vmatpush1.bf16.msra.mxu1 %v5643_v55  ;;  %v472_v53 = vld [vmem:[#allocation6 + $0x568] sm:$0xff]  ;;  %v474_v55 = vld [vmem:[#allocation6 + $0x578] sm:$0xff]  ;;  %7235 = vst [vmem:[#allocation133_spill] sm:$0xff] %v5689_v59  ;;  %v503_v47 = vld [vmem:[#allocation6 + $0x660] sm:$0xff] }
  0xe8   :  { %3239 = vmatprep.subr.bf16.mxu0 %v5647_v46  ;;  %3303 = vmatprep.subr.bf16.mxu1 %v5649_v38  ;;  %v5671_v19 = vpack.c.bf16 %v472_v53, %v464_v18  ;;  %v5673_v54 = vpack.c.bf16 %v474_v55, %v466_v41  ;;  %v480_v38 = vld [vmem:[#allocation6 + $0x5a8] sm:$0xff]  ;;  %v482_v46 = vld [vmem:[#allocation6 + $0x5b8] sm:$0xff]  ;;  %7232 = vst [vmem:[#allocation130_spill] sm:$0xff] %v5679_v1  ;;  %v481_v53 = vld [vmem:[#allocation6 + $0x5b0] sm:$0xff] }
  0xe9   :  { %v489_v55 = vld [vmem:[#allocation6 + $0x5f0] sm:$0xff]  ;;  %v5701_v7 = vpack.c.bf16 %v503_v47, %v495_v17 }
  0xea   :  { %7229 = vst [vmem:[#allocation127_spill] sm:$0xff] %v5671_v19  ;;  %7230 = vst [vmem:[#allocation128_spill] sm:$0xff] %v5673_v54  ;;  %v5691_v40 = vpack.c.bf16 %v489_v55, %v481_v53  ;;  %v511_v53 = vld [vmem:[#allocation6 + $0x6a0] sm:$0xff] }
  0xeb   :  { %3241 = vmatpush1.bf16.msra.mxu0 %v5653_v10  ;;  %3305 = vmatpush1.bf16.msra.mxu1 %v5655_v39  ;;  %v488_v10 = vld [vmem:[#allocation6 + $0x5e8] sm:$0xff]  ;;  %v490_v39 = vld [vmem:[#allocation6 + $0x5f8] sm:$0xff]  ;;  %7239 = vst [vmem:[#allocation137_spill] sm:$0xff] %v5701_v7  ;;  %v519_v55 = vld [vmem:[#allocation6 + $0x6e0] sm:$0xff] }
  0xec   :  { %3243 = vmatprep.subr.bf16.mxu0 %v5659_v31  ;;  %3307 = vmatprep.subr.bf16.mxu1 %v5661_v0  ;;  %v5683_v41 = vpack.c.bf16 %v488_v10, %v480_v38  ;;  %v5685_v18 = vpack.c.bf16 %v490_v39, %v482_v46  ;;  %v496_v0 = vld [vmem:[#allocation6 + $0x628] sm:$0xff]  ;;  %v498_v31 = vld [vmem:[#allocation6 + $0x638] sm:$0xff]  ;;  %7236 = vst [vmem:[#allocation134_spill] sm:$0xff] %v5691_v40  ;;  %v497_v10 = vld [vmem:[#allocation6 + $0x630] sm:$0xff] }
  0xed   :  { %v505_v39 = vld [vmem:[#allocation6 + $0x670] sm:$0xff]  ;;  %v5713_v17 = vpack.c.bf16 %v519_v55, %v511_v53 }
  0xee   :  { %7233 = vst [vmem:[#allocation131_spill] sm:$0xff] %v5683_v41  ;;  %7234 = vst [vmem:[#allocation132_spill] sm:$0xff] %v5685_v18  ;;  %v5703_v22 = vpack.c.bf16 %v505_v39, %v497_v10  ;;  %v527_v10 = vld [vmem:[#allocation6 + $0x720] sm:$0xff] }
  0xef   :  { %3245 = vmatpush1.bf16.msra.mxu0 %v5665_v4  ;;  %3309 = vmatpush1.bf16.msra.mxu1 %v5667_v2  ;;  %v504_v4 = vld [vmem:[#allocation6 + $0x668] sm:$0xff]  ;;  %v506_v2 = vld [vmem:[#allocation6 + $0x678] sm:$0xff]  ;;  %7243 = vst [vmem:[#allocation141_spill] sm:$0xff] %v5713_v17  ;;  %v535_v39 = vld [vmem:[#allocation6 + $0x760] sm:$0xff] }
  0xf0   :  { %3247 = vmatprep.subr.bf16.mxu0 %v5671_v19  ;;  %3311 = vmatprep.subr.bf16.mxu1 %v5673_v54  ;;  %v5695_v46 = vpack.c.bf16 %v504_v4, %v496_v0  ;;  %v5697_v38 = vpack.c.bf16 %v506_v2, %v498_v31  ;;  %v512_v54 = vld [vmem:[#allocation6 + $0x6a8] sm:$0xff]  ;;  %v514_v19 = vld [vmem:[#allocation6 + $0x6b8] sm:$0xff]  ;;  %7240 = vst [vmem:[#allocation138_spill] sm:$0xff] %v5703_v22  ;;  %v513_v4 = vld [vmem:[#allocation6 + $0x6b0] sm:$0xff] }
  0xf1   :  { %v521_v2 = vld [vmem:[#allocation6 + $0x6f0] sm:$0xff]  ;;  %v5725_v53 = vpack.c.bf16 %v535_v39, %v527_v10 }
  0xf2   :  { %7237 = vst [vmem:[#allocation135_spill] sm:$0xff] %v5695_v46  ;;  %7238 = vst [vmem:[#allocation136_spill] sm:$0xff] %v5697_v38  ;;  %v5715_v47 = vpack.c.bf16 %v521_v2, %v513_v4  ;;  %v543_v4 = vld [vmem:[#allocation6 + $0x7a0] sm:$0xff]  ;;  %v553_v2 = vld [vmem:[#allocation6 + $0x7f0] sm:$0xff] }
  0xf3   :  { %3249 = vmatpush1.bf16.msra.mxu0 %v5677_v28  ;;  %3313 = vmatpush1.bf16.msra.mxu1 %v5679_v1  ;;  %v520_v28 = vld [vmem:[#allocation6 + $0x6e8] sm:$0xff]  ;;  %v522_v1 = vld [vmem:[#allocation6 + $0x6f8] sm:$0xff]  ;;  %7247 = vst [vmem:[#allocation145_spill] sm:$0xff] %v5725_v53 }
  0xf4   :  { %3251 = vmatprep.subr.bf16.mxu0 %v5683_v41  ;;  %3315 = vmatprep.subr.bf16.mxu1 %v5685_v18  ;;  %v5707_v31 = vpack.c.bf16 %v520_v28, %v512_v54  ;;  %v5709_v0 = vpack.c.bf16 %v522_v1, %v514_v19  ;;  %v528_v18 = vld [vmem:[#allocation6 + $0x728] sm:$0xff]  ;;  %v530_v41 = vld [vmem:[#allocation6 + $0x738] sm:$0xff]  ;;  %7244 = vst [vmem:[#allocation142_spill] sm:$0xff] %v5715_v47  ;;  %v529_v28 = vld [vmem:[#allocation6 + $0x730] sm:$0xff] }
  0xf5   :  { %v537_v1 = vld [vmem:[#allocation6 + $0x770] sm:$0xff] }
  0xf6   :  { %7241 = vst [vmem:[#allocation139_spill] sm:$0xff] %v5707_v31  ;;  %7242 = vst [vmem:[#allocation140_spill] sm:$0xff] %v5709_v0  ;;  %v5727_v55 = vpack.c.bf16 %v537_v1, %v529_v28  ;;  %v7258_v28 = vld [vmem:[#allocation56_spill] sm:$0xff]  ;;  %v7259_v1 = vld [vmem:[#allocation57_spill] sm:$0xff] }
  0xf7   :  { %3253 = vmatpush1.bf16.msra.mxu0 %v5689_v59  ;;  %3317 = vmatpush1.bf16.msra.mxu1 %v5691_v40  ;;  %v536_v59 = vld [vmem:[#allocation6 + $0x768] sm:$0xff]  ;;  %v538_v40 = vld [vmem:[#allocation6 + $0x778] sm:$0xff] }
  0xf8   :  { %3255 = vmatprep.subr.bf16.mxu0 %v5695_v46  ;;  %3319 = vmatprep.subr.bf16.mxu1 %v5697_v38  ;;  %v5719_v19 = vpack.c.bf16 %v536_v59, %v528_v18  ;;  %v5721_v54 = vpack.c.bf16 %v538_v40, %v530_v41  ;;  %v544_v38 = vld [vmem:[#allocation6 + $0x7a8] sm:$0xff]  ;;  %v546_v46 = vld [vmem:[#allocation6 + $0x7b8] sm:$0xff]  ;;  %7248 = vst [vmem:[#allocation146_spill] sm:$0xff] %v5727_v55  ;;  %v551_v59 = vld [vmem:[#allocation6 + $0x7e0] sm:$0xff] }
  0xf9   :  { %v545_v40 = vld [vmem:[#allocation6 + $0x7b0] sm:$0xff]  ;;  %v5737_v10 = vpack.c.bf16 %v551_v59, %v543_v4  ;;  %v7260_v4 = vld [vmem:[#allocation58_spill] sm:$0xff]  ;;  %v7261_v59 = vld [vmem:[#allocation59_spill] sm:$0xff] }
  0xfa   :  { %7245 = vst [vmem:[#allocation143_spill] sm:$0xff] %v5719_v19  ;;  %7246 = vst [vmem:[#allocation144_spill] sm:$0xff] %v5721_v54  ;;  %v5739_v39 = vpack.c.bf16 %v553_v2, %v545_v40  ;;  %v7262_v40 = vld [vmem:[#allocation60_spill] sm:$0xff]  ;;  %v7263_v2 = vld [vmem:[#allocation61_spill] sm:$0xff] }
  0xfb   :  { %3257 = vmatpush1.bf16.msra.mxu0 %v5701_v7  ;;  %3321 = vmatpush1.bf16.msra.mxu1 %v5703_v22  ;;  %v552_v7 = vld [vmem:[#allocation6 + $0x7e8] sm:$0xff]  ;;  %v554_v22 = vld [vmem:[#allocation6 + $0x7f8] sm:$0xff]  ;;  %7251 = vst [vmem:[#allocation149_spill] sm:$0xff] %v5737_v10 }
  0xfc   :  { %3259 = vmatprep.subr.bf16.mxu0 %v5707_v31  ;;  %3323 = vmatprep.subr.bf16.mxu1 %v5709_v0  ;;  %v5731_v41 = vpack.c.bf16 %v552_v7, %v544_v38  ;;  %v5733_v18 = vpack.c.bf16 %v554_v22, %v546_v46  ;;  %7252 = vst [vmem:[#allocation150_spill] sm:$0xff] %v5739_v39  ;;  %v7254_v46 = vld [vmem:[#allocation52_spill] sm:$0xff]  ;;  %v7255_v38 = vld [vmem:[#allocation53_spill] sm:$0xff]  ;;  %v7256_v7 = vld [vmem:[#allocation54_spill] sm:$0xff] }
  0xfd   :  { %v7257_v22 = vld [vmem:[#allocation55_spill] sm:$0xff] }
  0xfe   :  { %7249 = vst [vmem:[#allocation147_spill] sm:$0xff] %v5731_v41  ;;  %7250 = vst [vmem:[#allocation148_spill] sm:$0xff] %v5733_v18 }
  0xff   :  { %3261 = vmatpush1.bf16.msra.mxu0 %v5713_v17  ;;  %3325 = vmatpush1.bf16.msra.mxu1 %v5715_v47 }
 0x100   :  { %3263 = vmatprep.subr.bf16.mxu0 %v5719_v19  ;;  %3327 = vmatprep.subr.bf16.mxu1 %v5721_v54 }
 0x103   :  { %3265 = vmatpush1.bf16.msra.mxu0 %v5725_v53  ;;  %3329 = vmatpush1.bf16.msra.mxu1 %v5727_v55 }
 0x104   :  { %3267 = vmatprep.subr.bf16.mxu0 %v5731_v41  ;;  %3331 = vmatprep.subr.bf16.mxu1 %v5733_v18 }
 0x107   :  { %3269 = vmatpush1.bf16.msra.mxu0 %v5737_v10  ;;  %3333 = vmatpush1.bf16.msra.mxu1 %v5739_v39 }
 0x108   :  { %3335 = vmatprep.subr.bf16.mxu0 %v5301_v14  ;;  %3399 = vmatprep.subr.bf16.mxu1 %v5303_v15 }
 0x10a   :  { %762 = vmatmul.mubr.f32.vlgmr.msra.gmra.mrb[2].mxu0 %v5557_v3  ;;  %833 = vmatmul.mubr.f32.vlgmr.msra.gmra.mrb[2].mxu1 %v5557_v3  ;;  %v7253_v3 = vld [vmem:[#allocation51_spill] sm:$0xff] }
 0x10b   :  { %3337 = vmatpush1.bf16.msra.mxu0 %v5305_v16  ;;  %3401 = vmatpush1.bf16.msra.mxu1 %v5307_v20 }
 0x10c   :  { %3339 = vmatprep.subr.bf16.mxu0 %v5309_v21  ;;  %3403 = vmatprep.subr.bf16.mxu1 %v5313_v25 }
 0x10f   :  { %3341 = vmatpush1.bf16.msra.mxu0 %v5317_v29  ;;  %3405 = vmatpush1.bf16.msra.mxu1 %v5319_v30 }
 0x110   :  { %3343 = vmatprep.subr.bf16.mxu0 %v5323_v34  ;;  %3407 = vmatprep.subr.bf16.mxu1 %v5325_v35 }
 0x113   :  { %3345 = vmatpush1.bf16.msra.mxu0 %v5329_v44  ;;  %3409 = vmatpush1.bf16.msra.mxu1 %v5331_v45 }
 0x114   :  { %3347 = vmatprep.subr.bf16.mxu0 %v5335_v48  ;;  %3411 = vmatprep.subr.bf16.mxu1 %v5337_v49 }
 0x117   :  { %3349 = vmatpush1.bf16.msra.mxu0 %v5341_v56  ;;  %3413 = vmatpush1.bf16.msra.mxu1 %v5343_v57 }
 0x118   :  { %3351 = vmatprep.subr.bf16.mxu0 %v5347_v60  ;;  %3415 = vmatprep.subr.bf16.mxu1 %v5349_v61 }
 0x11b   :  { %3353 = vmatpush1.bf16.msra.mxu0 %v5355_v8  ;;  %3417 = vmatpush1.bf16.msra.mxu1 %v5357_v9 }
 0x11c   :  { %3355 = vmatprep.subr.bf16.mxu0 %v5361_v12  ;;  %3419 = vmatprep.subr.bf16.mxu1 %v5363_v13 }
 0x11f   :  { %3357 = vmatpush1.bf16.msra.mxu0 %v5367_v26  ;;  %3421 = vmatpush1.bf16.msra.mxu1 %v5369_v27 }
 0x120   :  { %3359 = vmatprep.subr.bf16.mxu0 %v5373_v32  ;;  %3423 = vmatprep.subr.bf16.mxu1 %v5375_v33 }
 0x123   :  { %3361 = vmatpush1.bf16.msra.mxu0 %v5379_v42  ;;  %3425 = vmatpush1.bf16.msra.mxu1 %v5381_v43  ;;  %v7296_v43 = vld [vmem:[#allocation88_spill] sm:$0xff] }
 0x124   :  { %3363 = vmatprep.subr.bf16.mxu0 %v5385_v50  ;;  %3427 = vmatprep.subr.bf16.mxu1 %v5387_v51  ;;  %v7295_v51 = vld [vmem:[#allocation86_spill] sm:$0xff] }
 0x127   :  { %3365 = vmatpush1.bf16.msra.mxu0 %v5391_v62  ;;  %3429 = vmatpush1.bf16.msra.mxu1 %v5393_v63 }
 0x128   :  { %3367 = vmatprep.subr.bf16.mxu0 %v5397_v5  ;;  %3431 = vmatprep.subr.bf16.mxu1 %v5399_v6 }
 0x12b   :  { %3369 = vmatpush1.bf16.msra.mxu0 %v5403_v23  ;;  %3433 = vmatpush1.bf16.msra.mxu1 %v5405_v24  ;;  %v7285_v24 = vld [vmem:[#allocation82_spill] sm:$0xff] }
 0x12c   :  { %3371 = vmatprep.subr.bf16.mxu0 %v5409_v36  ;;  %3435 = vmatprep.subr.bf16.mxu1 %v5411_v37 }
 0x12f   :  { %3373 = vmatpush1.bf16.msra.mxu0 %v5415_v52  ;;  %3437 = vmatpush1.bf16.msra.mxu1 %v7253_v3  ;;  %v7264_v3 = vld [vmem:[#allocation62_spill] sm:$0xff] }
 0x130   :  { %3375 = vmatprep.subr.bf16.mxu0 %v7254_v46  ;;  %3439 = vmatprep.subr.bf16.mxu1 %v7255_v38  ;;  %v7265_v46 = vld [vmem:[#allocation63_spill] sm:$0xff]  ;;  %v7266_v38 = vld [vmem:[#allocation64_spill] sm:$0xff] }
 0x133   :  { %3377 = vmatpush1.bf16.msra.mxu0 %v7256_v7  ;;  %3441 = vmatpush1.bf16.msra.mxu1 %v7257_v22  ;;  %v7267_v7 = vld [vmem:[#allocation65_spill] sm:$0xff]  ;;  %v7268_v22 = vld [vmem:[#allocation66_spill] sm:$0xff] }
 0x134   :  { %3379 = vmatprep.subr.bf16.mxu0 %v7258_v28  ;;  %3443 = vmatprep.subr.bf16.mxu1 %v7259_v1  ;;  %v7269_v28 = vld [vmem:[#allocation67_spill] sm:$0xff] }
 0x135   :  { %v7283_v1 = vld [vmem:[#allocation79_spill] sm:$0xff] }
 0x137   :  { %3381 = vmatpush1.bf16.msra.mxu0 %v7260_v4  ;;  %3445 = vmatpush1.bf16.msra.mxu1 %v7261_v59  ;;  %v7270_v4 = vld [vmem:[#allocation69_spill] sm:$0xff]  ;;  %v7271_v59 = vld [vmem:[#allocation70_spill] sm:$0xff] }
 0x138   :  { %3383 = vmatprep.subr.bf16.mxu0 %v7262_v40  ;;  %3447 = vmatprep.subr.bf16.mxu1 %v7263_v2  ;;  %v7272_v40 = vld [vmem:[#allocation71_spill] sm:$0xff]  ;;  %v7273_v2 = vld [vmem:[#allocation72_spill] sm:$0xff] }
 0x13b   :  { %3385 = vmatpush1.bf16.msra.mxu0 %v7264_v3  ;;  %3449 = vmatpush1.bf16.msra.mxu1 %v7265_v46  ;;  %v7274_v3 = vld [vmem:[#allocation73_spill] sm:$0xff]  ;;  %v7275_v46 = vld [vmem:[#allocation74_spill] sm:$0xff] }
 0x13c   :  { %3387 = vmatprep.subr.bf16.mxu0 %v7266_v38  ;;  %3451 = vmatprep.subr.bf16.mxu1 %v7267_v7  ;;  %v7276_v38 = vld [vmem:[#allocation75_spill] sm:$0xff]  ;;  %v7277_v7 = vld [vmem:[#allocation76_spill] sm:$0xff] }
 0x13f   :  { %3389 = vmatpush1.bf16.msra.mxu0 %v7268_v22  ;;  %3453 = vmatpush1.bf16.msra.mxu1 %v7269_v28  ;;  %v7278_v22 = vld [vmem:[#allocation77_spill] sm:$0xff] }
 0x140   :  { %3391 = vmatprep.subr.bf16.mxu0 %v5469_v58  ;;  %3455 = vmatprep.subr.bf16.mxu1 %v7270_v4  ;;  %v251_v4 = vld [vmem:[%s6797_s4] sm:$0xf]  ;;  %v7279_v58 = vld [vmem:[#allocation11_spill] sm:$0xff] }
 0x141   :  { %v5828_v23 = vrot.slane %v251_v4, %v7285_v24 }
 0x143   :  { %3393 = vmatpush1.bf16.msra.mxu0 %v7271_v59  ;;  %3457 = vmatpush1.bf16.msra.mxu1 %v7272_v40  ;;  %v5817_v59 = vrot.slane %v251_v4, %v7279_v58  ;;  %v7281_v40 = vld [vmem:[#allocation78_spill] sm:$0xff]  ;;  %7286 = vst [vmem:[#allocation151_spill] sm:$0xff] %v5828_v23 }
 0x144   :  { %3395 = vmatprep.subr.bf16.mxu0 %v7273_v2  ;;  %3459 = vmatprep.subr.bf16.mxu1 %v7274_v3  ;;  %v5820_v28 = vrot.slane %v251_v4, %v7281_v40 }
 0x145   :  { %7280 = vst [vmem:[#allocation11_spill] sm:$0xff] %v5817_v59 }
 0x146   :  { %7282 = vst [vmem:[#allocation78_spill] sm:$0xff] %v5820_v28 }
 0x147   :  { %3397 = vmatpush1.bf16.msra.mxu0 %v7275_v46  ;;  %3461 = vmatpush1.bf16.msra.mxu1 %v7276_v38  ;;  %v5823_v46 = vrot.slane %v251_v4, %v7283_v1 }
 0x148   :  { %3463 = vmatprep.subr.bf16.mxu0 %v7277_v7  ;;  %3527 = vmatprep.subr.bf16.mxu1 %v7278_v22 }
 0x149   :  { %7284 = vst [vmem:[#allocation79_spill] sm:$0xff] %v5823_v46 }
 0x19d   :  { %v621_v2 = vpop.f32.mrb[0].mxu0  ;;  %v692_v3 = vpop.f32.mrb[0].mxu1 }
 0x19e   :  { %v839_v38 = vadd.f32 %v621_v2, %v5817_v59  ;;  %v623_v7 = vpop.f32.mrb[1].mxu0  ;;  %v694_v52 = vpop.f32.mrb[1].mxu1  ;;  %v841_v58 = vadd.f32 %v692_v3, %v5823_v46 }
 0x19f   :  { %v840_v22 = vadd.f32 %v623_v7, %v5820_v28  ;;  %v842_v40 = vadd.f32 %v694_v52, %v5828_v23 }
 0x1a0   :  { %v843_v37 = vmul.f32 0.5, %v839_v38 }
 0x1a1   :  { %v847_v36 = vmul.f32 0.5, %v840_v22  ;;  %v852_v6 = vmul.f32 0.5, %v842_v40  ;;  %v5835_v40 = vld [vmem:[#allocation4] sm:$0xff] }
 0x1a2   :  { %5013 = vtanh.f32 %v843_v37  ;;  %7288 = vst [vmem:[#allocation153_spill] sm:$0xff] %v5835_v40 }
 0x1a3   :  { %5015 = vtanh.f32 %v847_v36 }
 0x1a4   :  { %5017 = vtanh.f32 %v841_v58 }
 0x1a5   :  { %5019 = vtanh.f32 %v852_v6 }
 0x1ac   :  { %v5014_v5 = vpop.eup %5013 }
 0x1ad   :  { %v5016_v63 = vpop.eup %5015  ;;  %v845_v2 = vmul.f32 0.5, %v5014_v5  ;;  %v68_v5 = vpop.permute.xlu0 %67 }
 0x1ae   :  { %v849_v59 = vmul.f32 0.5, %v5016_v63  ;;  %v5018_v7 = vpop.eup %5017  ;;  %v72_v63 = vrot.slane %v5835_v40, %v7283_v1  ;;  %v140_v1 = vmul.f32 %v7295_v51, %v68_v5 }
 0x1af   :  { %v846_v62 = vadd.f32 0.5, %v845_v2  ;;  %v5020_v37 = vpop.eup %5019  ;;  %v7291_v2 = vld [vmem:[#allocation84_spill] sm:$0xff] }
 0x1b0   :  { %v850_v38 = vadd.f32 0.5, %v849_v59  ;;  %v854_v36 = vmul.f32 0.5, %v5020_v37  ;;  %74 = vbcast.lane.b32.xlu1 %v72_v63, 256  ;;  %v7293_v37 = vld [vmem:[#allocation85_spill] sm:$0xff] }
 0x1b1   :  { %v857_v22 = vmul.f32 %v5018_v7, %v846_v62  ;;  %v7289_v62 = vld [vmem:[#allocation80_spill] sm:$0xff] }
 0x1b2   :  { %v856_v28 = vmul.f32 0.0, %v850_v38  ;;  %v855_v3 = vadd.f32 0.5, %v854_v36  ;;  %v137_v6 = vmul.f32 %v7289_v62, %v68_v5  ;;  %v7292_v38 = vld [vmem:[#allocation83_spill] sm:$0xff] }
 0x1b4   :  { %v5832_v4 = vadd.f32 %v857_v22, %v856_v28  ;;  %v7290_v28 = vld [vmem:[#allocation81_spill] sm:$0xff]  ;;  %v191_v7 = vadd.f32 %v7291_v2, %v137_v6  ;;  %v139_v22 = vmul.f32 %v7292_v38, %v68_v5  ;;  %v194_v6 = vadd.f32 %v7296_v43, %v140_v1  ;;  %v7304_v1 = vld [vmem:[#allocation96_spill] sm:$0xff] }
 0x1b5   :  { %v138_v59 = vmul.f32 %v7290_v28, %v68_v5 }
 0x1b6   :  { %7287 = vst [vmem:[#allocation152_spill] sm:$0xff] %v5832_v4  ;;  %5021 = vtanh.f32 %v5832_v4  ;;  %v7294_v4 = vld [vmem:[#allocation87_spill] sm:$0xff] }
 0x1b7   :  { %v192_v36 = vadd.f32 %v7293_v37, %v138_v59  ;;  %v193_v23 = vadd.f32 %v7294_v4, %v139_v22 }
 0x1c0   :  { %v5022_v58 = vpop.eup %5021 }
 0x1c1   :  { %v860_v52 = vmul.f32 %v5022_v58, %v855_v3 }
 0x1c3   :  { %952 = vmatprep.mubr.f32.mxu0 %v860_v52  ;;  %1023 = vmatprep.mubr.f32.mxu1 %v860_v52 }
 0x1dd   :  { %v763_v3 = vpop.f32.mrb[2].mxu0  ;;  %v834_v58 = vpop.f32.mrb[2].mxu1 }
 0x1de   :  { %v866_v24 = vadd.f32 %v763_v3, %v191_v7  ;;  %v765_v46 = vpop.f32.mrb[3].mxu0  ;;  %v836_v63 = vpop.f32.mrb[3].mxu1  ;;  %v868_v28 = vadd.f32 %v834_v58, %v193_v23  ;;  %v7303_v58 = vld [vmem:[#allocation95_spill] sm:$0xff] }
 0x1df   :  { %v867_v40 = vadd.f32 %v765_v46, %v192_v36  ;;  %v869_v38 = vadd.f32 %v836_v63, %v194_v6  ;;  %v7297_v46 = vld [vmem:[#allocation89_spill] sm:$0xff]  ;;  %v7302_v36 = vld [vmem:[#allocation94_spill] sm:$0xff] }
 0x1e0   :  { %v870_v50 = vmul.f32 0.5, %v866_v24  ;;  %v7305_v63 = vld [vmem:[#allocation97_spill] sm:$0xff]  ;;  %v7306_v6 = vld [vmem:[#allocation98_spill] sm:$0xff] }
 0x1e1   :  { %v874_v62 = vmul.f32 0.5, %v867_v40  ;;  %v879_v59 = vmul.f32 0.5, %v869_v38 }
 0x1e2   :  { %5023 = vtanh.f32 %v870_v50 }
 0x1e3   :  { %5025 = vtanh.f32 %v874_v62 }
 0x1e4   :  { %5027 = vtanh.f32 %v868_v28 }
 0x1e5   :  { %5029 = vtanh.f32 %v879_v59  ;;  %v7307_v59 = vld [vmem:[#allocation99_spill] sm:$0xff] }
 0x1ec   :  { %v5024_v37 = vpop.eup %5023 }
 0x1ed   :  { %v5026_v2 = vpop.eup %5025  ;;  %v872_v7 = vmul.f32 0.5, %v5024_v37  ;;  %v7301_v37 = vld [vmem:[#allocation93_spill] sm:$0xff] }
 0x1ee   :  { %v876_v3 = vmul.f32 0.5, %v5026_v2  ;;  %v5028_v4 = vpop.eup %5027  ;;  %v7298_v2 = vld [vmem:[#allocation90_spill] sm:$0xff] }
 0x1ef   :  { %v873_v22 = vadd.f32 0.5, %v872_v7  ;;  %v5030_v50 = vpop.eup %5029  ;;  %v7308_v7 = vld [vmem:[#allocation100_spill] sm:$0xff] }
 0x1f0   :  { %v877_v5 = vadd.f32 0.5, %v876_v3  ;;  %v881_v23 = vmul.f32 0.5, %v5030_v50  ;;  %v7310_v3 = vld [vmem:[#allocation102_spill] sm:$0xff]  ;;  %v7315_v50 = vld [vmem:[#allocation107_spill] sm:$0xff] }
 0x1f1   :  { %v884_v51 = vmul.f32 %v5028_v4, %v873_v22  ;;  %v7300_v4 = vld [vmem:[#allocation92_spill] sm:$0xff]  ;;  %v7311_v22 = vld [vmem:[#allocation103_spill] sm:$0xff] }
 0x1f2   :  { %v883_v24 = vmul.f32 %v877_v5, %v7297_v46  ;;  %v882_v62 = vadd.f32 0.5, %v881_v23  ;;  %v7312_v5 = vld [vmem:[#allocation104_spill] sm:$0xff]  ;;  %v7313_v46 = vld [vmem:[#allocation105_spill] sm:$0xff] }
 0x1f3   :  { %v7316_v23 = vld [vmem:[#allocation108_spill] sm:$0xff] }
 0x1f4   :  { %v5848_v40 = vadd.f32 %v884_v51, %v883_v24  ;;  %v7299_v51 = vld [vmem:[#allocation91_spill] sm:$0xff]  ;;  %v7314_v24 = vld [vmem:[#allocation106_spill] sm:$0xff] }
 0x1f6   :  { %5031 = vtanh.f32 %v5848_v40 }
 0x200   :  { %v5032_v28 = vpop.eup %5031 }
 0x201   :  { %v5851_v38 = vmul.f32 %v5032_v28, %v882_v62  ;;  %v7317_v62 = vld [vmem:[#allocation109_spill] sm:$0xff]  ;;  %v7318_v28 = vld [vmem:[#allocation110_spill] sm:$0xff] }
 0x203   :  { %953 = vmatmul.mubr.f32.vlgmr.msra.gmra.mrb[4].mxu0 %v5851_v38  ;;  %1024 = vmatmul.mubr.f32.vlgmr.msra.gmra.mrb[4].mxu1 %v5851_v38 }
 0x204   :  { %3465 = vmatpush1.bf16.msra.mxu0 %v5553_v11  ;;  %3529 = vmatpush1.bf16.msra.mxu1 %v7298_v2 }
 0x205   :  { %1094 = vmatprep.mubr.f32.mxu0 %v860_v52  ;;  %1165 = vmatprep.mubr.f32.mxu1 %v860_v52  ;;  %v7309_v52 = vld [vmem:[#allocation101_spill] sm:$0xff] }
 0x206   :  { %3467 = vmatprep.subr.bf16.mxu0 %v7299_v51  ;;  %3531 = vmatprep.subr.bf16.mxu1 %v7300_v4 }
 0x208   :  { %3469 = vmatpush1.bf16.msra.mxu0 %v7301_v37  ;;  %3533 = vmatpush1.bf16.msra.mxu1 %v7302_v36 }
 0x209   :  { %3471 = vmatprep.subr.bf16.mxu0 %v7303_v58  ;;  %3535 = vmatprep.subr.bf16.mxu1 %v7304_v1 }
 0x20c   :  { %3473 = vmatpush1.bf16.msra.mxu0 %v7305_v63  ;;  %3537 = vmatpush1.bf16.msra.mxu1 %v7306_v6 }
 0x20d   :  { %3475 = vmatprep.subr.bf16.mxu0 %v7307_v59  ;;  %3539 = vmatprep.subr.bf16.mxu1 %v7308_v7  ;;  %v7319_v7 = vld [vmem:[#allocation111_spill] sm:$0xff] }
 0x210   :  { %3477 = vmatpush1.bf16.msra.mxu0 %v7309_v52  ;;  %3541 = vmatpush1.bf16.msra.mxu1 %v7310_v3  ;;  %v7320_v52 = vld [vmem:[#allocation112_spill] sm:$0xff]  ;;  %v7321_v3 = vld [vmem:[#allocation113_spill] sm:$0xff] }
 0x211   :  { %3479 = vmatprep.subr.bf16.mxu0 %v7311_v22  ;;  %3543 = vmatprep.subr.bf16.mxu1 %v7312_v5  ;;  %v7322_v22 = vld [vmem:[#allocation114_spill] sm:$0xff]  ;;  %v7323_v5 = vld [vmem:[#allocation115_spill] sm:$0xff] }
 0x214   :  { %3481 = vmatpush1.bf16.msra.mxu0 %v7313_v46  ;;  %3545 = vmatpush1.bf16.msra.mxu1 %v7314_v24  ;;  %v7324_v46 = vld [vmem:[#allocation116_spill] sm:$0xff]  ;;  %v7325_v24 = vld [vmem:[#allocation117_spill] sm:$0xff] }
 0x215   :  { %3483 = vmatprep.subr.bf16.mxu0 %v7315_v50  ;;  %3547 = vmatprep.subr.bf16.mxu1 %v7316_v23  ;;  %v7326_v50 = vld [vmem:[#allocation118_spill] sm:$0xff]  ;;  %v7327_v23 = vld [vmem:[#allocation119_spill] sm:$0xff] }
 0x218   :  { %3485 = vmatpush1.bf16.msra.mxu0 %v7317_v62  ;;  %3549 = vmatpush1.bf16.msra.mxu1 %v7318_v28  ;;  %v7328_v62 = vld [vmem:[#allocation120_spill] sm:$0xff]  ;;  %v7329_v28 = vld [vmem:[#allocation121_spill] sm:$0xff] }
 0x219   :  { %3487 = vmatprep.subr.bf16.mxu0 %v7319_v7  ;;  %3551 = vmatprep.subr.bf16.mxu1 %v7320_v52  ;;  %v7330_v7 = vld [vmem:[#allocation122_spill] sm:$0xff]  ;;  %v7331_v52 = vld [vmem:[#allocation123_spill] sm:$0xff] }
 0x21c   :  { %3489 = vmatpush1.bf16.msra.mxu0 %v7321_v3  ;;  %3553 = vmatpush1.bf16.msra.mxu1 %v7322_v22  ;;  %v7332_v3 = vld [vmem:[#allocation124_spill] sm:$0xff]  ;;  %v7333_v22 = vld [vmem:[#allocation125_spill] sm:$0xff] }
 0x21d   :  { %3491 = vmatprep.subr.bf16.mxu0 %v7323_v5  ;;  %3555 = vmatprep.subr.bf16.mxu1 %v7324_v46  ;;  %v7334_v5 = vld [vmem:[#allocation126_spill] sm:$0xff]  ;;  %v7335_v46 = vld [vmem:[#allocation127_spill] sm:$0xff] }
 0x220   :  { %3493 = vmatpush1.bf16.msra.mxu0 %v7325_v24  ;;  %3557 = vmatpush1.bf16.msra.mxu1 %v7326_v50  ;;  %v7336_v24 = vld [vmem:[#allocation128_spill] sm:$0xff]  ;;  %v7337_v50 = vld [vmem:[#allocation129_spill] sm:$0xff] }
 0x221   :  { %3495 = vmatprep.subr.bf16.mxu0 %v7327_v23  ;;  %3559 = vmatprep.subr.bf16.mxu1 %v7328_v62  ;;  %v7338_v23 = vld [vmem:[#allocation130_spill] sm:$0xff]  ;;  %v7339_v62 = vld [vmem:[#allocation131_spill] sm:$0xff] }
 0x224   :  { %3497 = vmatpush1.bf16.msra.mxu0 %v7329_v28  ;;  %3561 = vmatpush1.bf16.msra.mxu1 %v7330_v7  ;;  %v7340_v28 = vld [vmem:[#allocation132_spill] sm:$0xff]  ;;  %v7341_v7 = vld [vmem:[#allocation133_spill] sm:$0xff] }
 0x225   :  { %3499 = vmatprep.subr.bf16.mxu0 %v7331_v52  ;;  %3563 = vmatprep.subr.bf16.mxu1 %v7332_v3  ;;  %v7342_v52 = vld [vmem:[#allocation134_spill] sm:$0xff]  ;;  %v7343_v3 = vld [vmem:[#allocation135_spill] sm:$0xff] }
 0x228   :  { %3501 = vmatpush1.bf16.msra.mxu0 %v7333_v22  ;;  %3565 = vmatpush1.bf16.msra.mxu1 %v7334_v5  ;;  %v7344_v22 = vld [vmem:[#allocation136_spill] sm:$0xff]  ;;  %v7345_v5 = vld [vmem:[#allocation137_spill] sm:$0xff] }
 0x229   :  { %3503 = vmatprep.subr.bf16.mxu0 %v7335_v46  ;;  %3567 = vmatprep.subr.bf16.mxu1 %v7336_v24  ;;  %v7346_v46 = vld [vmem:[#allocation138_spill] sm:$0xff] }
 0x22c   :  { %3505 = vmatpush1.bf16.msra.mxu0 %v7337_v50  ;;  %3569 = vmatpush1.bf16.msra.mxu1 %v7338_v23 }
 0x22d   :  { %3507 = vmatprep.subr.bf16.mxu0 %v7339_v62  ;;  %3571 = vmatprep.subr.bf16.mxu1 %v7340_v28 }
 0x230   :  { %3509 = vmatpush1.bf16.msra.mxu0 %v7341_v7  ;;  %3573 = vmatpush1.bf16.msra.mxu1 %v7342_v52 }
 0x231   :  { %3511 = vmatprep.subr.bf16.mxu0 %v7343_v3  ;;  %3575 = vmatprep.subr.bf16.mxu1 %v7344_v22 }
 0x234   :  { %3513 = vmatpush1.bf16.msra.mxu0 %v7345_v5  ;;  %3577 = vmatpush1.bf16.msra.mxu1 %v7346_v46 }
 0x235   :  { %3515 = vmatprep.subr.bf16.mxu0 %v5707_v31  ;;  %3579 = vmatprep.subr.bf16.mxu1 %v5709_v0 }
 0x238   :  { %3517 = vmatpush1.bf16.msra.mxu0 %v5713_v17  ;;  %3581 = vmatpush1.bf16.msra.mxu1 %v5715_v47 }
 0x239   :  { %3519 = vmatprep.subr.bf16.mxu0 %v5719_v19  ;;  %3583 = vmatprep.subr.bf16.mxu1 %v5721_v54 }
 0x23c   :  { %3521 = vmatpush1.bf16.msra.mxu0 %v5725_v53  ;;  %3585 = vmatpush1.bf16.msra.mxu1 %v5727_v55 }
 0x23d   :  { %3523 = vmatprep.subr.bf16.mxu0 %v5731_v41  ;;  %3587 = vmatprep.subr.bf16.mxu1 %v5733_v18 }
 0x240   :  { %3525 = vmatpush1.bf16.msra.mxu0 %v5737_v10  ;;  %3589 = vmatpush1.bf16.msra.mxu1 %v5739_v39 }
 0x241   :  { %3591 = vmatprep.subr.bf16.mxu0 %v5301_v14  ;;  %3655 = vmatprep.subr.bf16.mxu1 %v5303_v15 }
 0x243   :  { %1095 = vmatmul.mubr.f32.vlgmr.msra.gmra.mrb[6].mxu0 %v5851_v38  ;;  %1166 = vmatmul.mubr.f32.vlgmr.msra.gmra.mrb[6].mxu1 %v5851_v38  ;;  %v7347_v38 = vld [vmem:[#allocation39_spill] sm:$0xff] }
 0x244   :  { %3593 = vmatpush1.bf16.msra.mxu0 %v5305_v16  ;;  %3657 = vmatpush1.bf16.msra.mxu1 %v5307_v20 }
 0x245   :  { %3595 = vmatprep.subr.bf16.mxu0 %v5309_v21  ;;  %3659 = vmatprep.subr.bf16.mxu1 %v5313_v25 }
 0x248   :  { %3597 = vmatpush1.bf16.msra.mxu0 %v5317_v29  ;;  %3661 = vmatpush1.bf16.msra.mxu1 %v5319_v30  ;;  %v7400_v29 = vld [vmem:[#allocation86_spill] sm:$0xff] }
 0x249   :  { %3599 = vmatprep.subr.bf16.mxu0 %v5323_v34  ;;  %3663 = vmatprep.subr.bf16.mxu1 %v5325_v35 }
 0x24c   :  { %3601 = vmatpush1.bf16.msra.mxu0 %v5329_v44  ;;  %3665 = vmatpush1.bf16.msra.mxu1 %v5331_v45 }
 0x24d   :  { %3603 = vmatprep.subr.bf16.mxu0 %v5335_v48  ;;  %3667 = vmatprep.subr.bf16.mxu1 %v5337_v49 }
 0x250   :  { %3605 = vmatpush1.bf16.msra.mxu0 %v5341_v56  ;;  %3669 = vmatpush1.bf16.msra.mxu1 %v5343_v57  ;;  %v7387_v56 = vld [vmem:[#allocation78_spill] sm:$0xff] }
 0x251   :  { %3607 = vmatprep.subr.bf16.mxu0 %v5347_v60  ;;  %3671 = vmatprep.subr.bf16.mxu1 %v5349_v61  ;;  %v7348_v61 = vld [vmem:[#allocation40_spill] sm:$0xff]  ;;  %v7386_v60 = vld [vmem:[#allocation11_spill] sm:$0xff] }
 0x254   :  { %3609 = vmatpush1.bf16.msra.mxu0 %v5355_v8  ;;  %3673 = vmatpush1.bf16.msra.mxu1 %v5357_v9  ;;  %v7349_v8 = vld [vmem:[#allocation41_spill] sm:$0xff]  ;;  %v7350_v9 = vld [vmem:[#allocation42_spill] sm:$0xff] }
 0x255   :  { %3611 = vmatprep.subr.bf16.mxu0 %v5361_v12  ;;  %3675 = vmatprep.subr.bf16.mxu1 %v5363_v13  ;;  %v7351_v12 = vld [vmem:[#allocation43_spill] sm:$0xff]  ;;  %v7352_v13 = vld [vmem:[#allocation44_spill] sm:$0xff] }
 0x258   :  { %3613 = vmatpush1.bf16.msra.mxu0 %v5367_v26  ;;  %3677 = vmatpush1.bf16.msra.mxu1 %v5369_v27  ;;  %v7353_v26 = vld [vmem:[#allocation45_spill] sm:$0xff]  ;;  %v7354_v27 = vld [vmem:[#allocation46_spill] sm:$0xff] }
 0x259   :  { %3615 = vmatprep.subr.bf16.mxu0 %v5373_v32  ;;  %3679 = vmatprep.subr.bf16.mxu1 %v5375_v33  ;;  %v7355_v32 = vld [vmem:[#allocation47_spill] sm:$0xff]  ;;  %v7356_v33 = vld [vmem:[#allocation48_spill] sm:$0xff] }
 0x25c   :  { %3617 = vmatpush1.bf16.msra.mxu0 %v5379_v42  ;;  %3681 = vmatpush1.bf16.msra.mxu1 %v7347_v38  ;;  %v7357_v42 = vld [vmem:[#allocation49_spill] sm:$0xff]  ;;  %v7358_v38 = vld [vmem:[#allocation50_spill] sm:$0xff] }
 0x25d   :  { %3619 = vmatprep.subr.bf16.mxu0 %v7348_v61  ;;  %3683 = vmatprep.subr.bf16.mxu1 %v7349_v8  ;;  %v7359_v61 = vld [vmem:[#allocation51_spill] sm:$0xff]  ;;  %v7360_v8 = vld [vmem:[#allocation52_spill] sm:$0xff] }
 0x260   :  { %3621 = vmatpush1.bf16.msra.mxu0 %v7350_v9  ;;  %3685 = vmatpush1.bf16.msra.mxu1 %v7351_v12  ;;  %v7361_v9 = vld [vmem:[#allocation53_spill] sm:$0xff]  ;;  %v7362_v12 = vld [vmem:[#allocation54_spill] sm:$0xff] }
 0x261   :  { %3623 = vmatprep.subr.bf16.mxu0 %v7352_v13  ;;  %3687 = vmatprep.subr.bf16.mxu1 %v7353_v26  ;;  %v7363_v13 = vld [vmem:[#allocation55_spill] sm:$0xff]  ;;  %v7364_v26 = vld [vmem:[#allocation56_spill] sm:$0xff] }
 0x264   :  { %3625 = vmatpush1.bf16.msra.mxu0 %v7354_v27  ;;  %3689 = vmatpush1.bf16.msra.mxu1 %v7355_v32  ;;  %v7365_v27 = vld [vmem:[#allocation57_spill] sm:$0xff]  ;;  %v7366_v32 = vld [vmem:[#allocation58_spill] sm:$0xff] }
 0x265   :  { %3627 = vmatprep.subr.bf16.mxu0 %v7356_v33  ;;  %3691 = vmatprep.subr.bf16.mxu1 %v7357_v42  ;;  %v7367_v33 = vld [vmem:[#allocation59_spill] sm:$0xff]  ;;  %v7368_v42 = vld [vmem:[#allocation60_spill] sm:$0xff] }
 0x268   :  { %3629 = vmatpush1.bf16.msra.mxu0 %v7358_v38  ;;  %3693 = vmatpush1.bf16.msra.mxu1 %v7359_v61  ;;  %v7369_v38 = vld [vmem:[#allocation61_spill] sm:$0xff]  ;;  %v7370_v61 = vld [vmem:[#allocation62_spill] sm:$0xff] }
 0x269   :  { %3631 = vmatprep.subr.bf16.mxu0 %v7360_v8  ;;  %3695 = vmatprep.subr.bf16.mxu1 %v7361_v9  ;;  %v7371_v8 = vld [vmem:[#allocation63_spill] sm:$0xff]  ;;  %v7372_v9 = vld [vmem:[#allocation64_spill] sm:$0xff] }
 0x26c   :  { %3633 = vmatpush1.bf16.msra.mxu0 %v7362_v12  ;;  %3697 = vmatpush1.bf16.msra.mxu1 %v7363_v13  ;;  %v7373_v12 = vld [vmem:[#allocation65_spill] sm:$0xff]  ;;  %v7374_v13 = vld [vmem:[#allocation66_spill] sm:$0xff] }
 0x26d   :  { %3635 = vmatprep.subr.bf16.mxu0 %v7364_v26  ;;  %3699 = vmatprep.subr.bf16.mxu1 %v7365_v27  ;;  %v7375_v26 = vld [vmem:[#allocation67_spill] sm:$0xff]  ;;  %v7376_v27 = vld [vmem:[#allocation68_spill] sm:$0xff] }
 0x270   :  { %3637 = vmatpush1.bf16.msra.mxu0 %v7366_v32  ;;  %3701 = vmatpush1.bf16.msra.mxu1 %v7367_v33  ;;  %v7377_v32 = vld [vmem:[#allocation69_spill] sm:$0xff]  ;;  %v7378_v33 = vld [vmem:[#allocation70_spill] sm:$0xff] }
 0x271   :  { %3639 = vmatprep.subr.bf16.mxu0 %v7368_v42  ;;  %3703 = vmatprep.subr.bf16.mxu1 %v7369_v38  ;;  %v7379_v42 = vld [vmem:[#allocation71_spill] sm:$0xff]  ;;  %v7380_v38 = vld [vmem:[#allocation72_spill] sm:$0xff] }
 0x274   :  { %3641 = vmatpush1.bf16.msra.mxu0 %v7370_v61  ;;  %3705 = vmatpush1.bf16.msra.mxu1 %v7371_v8  ;;  %v7381_v61 = vld [vmem:[#allocation73_spill] sm:$0xff]  ;;  %v7382_v8 = vld [vmem:[#allocation74_spill] sm:$0xff] }
 0x275   :  { %3643 = vmatprep.subr.bf16.mxu0 %v7372_v9  ;;  %3707 = vmatprep.subr.bf16.mxu1 %v7373_v12  ;;  %v7383_v9 = vld [vmem:[#allocation75_spill] sm:$0xff]  ;;  %v7384_v12 = vld [vmem:[#allocation76_spill] sm:$0xff] }
 0x278   :  { %3645 = vmatpush1.bf16.msra.mxu0 %v7374_v13  ;;  %3709 = vmatpush1.bf16.msra.mxu1 %v7375_v26  ;;  %v7385_v13 = vld [vmem:[#allocation77_spill] sm:$0xff] }
 0x279   :  { %3647 = vmatprep.subr.bf16.mxu0 %v7376_v27  ;;  %3711 = vmatprep.subr.bf16.mxu1 %v7377_v32 }
 0x27c   :  { %3649 = vmatpush1.bf16.msra.mxu0 %v7378_v33  ;;  %3713 = vmatpush1.bf16.msra.mxu1 %v7379_v42 }
 0x27d   :  { %3651 = vmatprep.subr.bf16.mxu0 %v7380_v38  ;;  %3715 = vmatprep.subr.bf16.mxu1 %v7381_v61  ;;  %v7388_v61 = vld [vmem:[#allocation79_spill] sm:$0xff] }
 0x280   :  { %3653 = vmatpush1.bf16.msra.mxu0 %v7382_v8  ;;  %3717 = vmatpush1.bf16.msra.mxu1 %v7383_v9  ;;  %v7389_v9 = vld [vmem:[#allocation151_spill] sm:$0xff] }
 0x281   :  { %3719 = vmatprep.subr.bf16.mxu0 %v7384_v12  ;;  %3783 = vmatprep.subr.bf16.mxu1 %v7385_v13 }
 0x2d6   :  { %v954_v26 = vpop.f32.mrb[4].mxu0  ;;  %v1025_v27 = vpop.f32.mrb[4].mxu1 }
 0x2d7   :  { %v1172_v32 = vadd.f32 %v954_v26, %v7386_v60  ;;  %v956_v57 = vpop.f32.mrb[5].mxu0  ;;  %v1027_v33 = vpop.f32.mrb[5].mxu1  ;;  %v1174_v48 = vadd.f32 %v1025_v27, %v7388_v61 }
 0x2d8   :  { %v1173_v42 = vadd.f32 %v956_v57, %v7387_v56  ;;  %v1175_v8 = vadd.f32 %v1027_v33, %v7389_v9  ;;  %v7390_v57 = vld [vmem:[#allocation152_spill] sm:$0xff] }
 0x2d9   :  { %v1176_v49 = vmul.f32 0.5, %v1172_v32 }
 0x2da   :  { %v1180_v38 = vmul.f32 0.5, %v1173_v42  ;;  %v1185_v12 = vmul.f32 0.5, %v1175_v8 }
 0x2db   :  { %5033 = vtanh.f32 %v1176_v49 }
 0x2dc   :  { %5035 = vtanh.f32 %v1180_v38  ;;  %v7395_v38 = vld [vmem:[#allocation81_spill] sm:$0xff] }
 0x2dd   :  { %5037 = vtanh.f32 %v1174_v48 }
 0x2de   :  { %5039 = vtanh.f32 %v1185_v12 }
 0x2e5   :  { %v5034_v45 = vpop.eup %5033 }
 0x2e6   :  { %v5036_v13 = vpop.eup %5035  ;;  %v1178_v44 = vmul.f32 0.5, %v5034_v45  ;;  %v7392_v45 = vld [vmem:[#allocation82_spill] sm:$0xff] }
 0x2e7   :  { %v1182_v35 = vmul.f32 0.5, %v5036_v13  ;;  %v5038_v60 = vpop.eup %5037  ;;  %v7393_v13 = vld [vmem:[#allocation153_spill] sm:$0xff] }
 0x2e8   :  { %v1179_v26 = vadd.f32 0.5, %v1178_v44  ;;  %v5040_v49 = vpop.eup %5039  ;;  %v79_v12 = vrot.slane %v7393_v13, %v7392_v45  ;;  %v75_v44 = vpop.permute.xlu1 %74 }
 0x2e9   :  { %v1183_v34 = vadd.f32 0.5, %v1182_v35  ;;  %v1187_v48 = vmul.f32 0.5, %v5040_v49  ;;  %v7394_v35 = vld [vmem:[#allocation80_spill] sm:$0xff]  ;;  %v144_v45 = vmul.f32 %v7400_v29, %v75_v44 }
 0x2ea   :  { %v1190_v30 = vmul.f32 %v5038_v60, %v1179_v26  ;;  %81 = vbcast.lane.b32.xlu1 %v79_v12, 256  ;;  %v141_v60 = vmul.f32 %v7394_v35, %v75_v44 }
 0x2eb   :  { %v1189_v32 = vmul.f32 %v1183_v34, %v7390_v57  ;;  %v1188_v27 = vadd.f32 0.5, %v1187_v48  ;;  %v142_v34 = vmul.f32 %v7395_v38, %v75_v44  ;;  %v7397_v57 = vld [vmem:[#allocation83_spill] sm:$0xff] }
 0x2ed   :  { %v5990_v42 = vadd.f32 %v1190_v30, %v1189_v32  ;;  %v7396_v30 = vld [vmem:[#allocation84_spill] sm:$0xff]  ;;  %v143_v32 = vmul.f32 %v7397_v57, %v75_v44 }
 0x2ee   :  { %v195_v26 = vadd.f32 %v7396_v30, %v141_v60  ;;  %v198_v60 = vadd.f32 %v7296_v43, %v144_v45  ;;  %v7410_v45 = vld [vmem:[#allocation109_spill] sm:$0xff] }
 0x2ef   :  { %7391 = vst [vmem:[#allocation88_spill] sm:$0xff] %v5990_v42  ;;  %5041 = vtanh.f32 %v5990_v42  ;;  %v7398_v42 = vld [vmem:[#allocation85_spill] sm:$0xff] }
 0x2f0   :  { %v196_v49 = vadd.f32 %v7398_v42, %v142_v34 }
 0x2f9   :  { %v5042_v33 = vpop.eup %5041 }
 0x2fa   :  { %v1193_v8 = vmul.f32 %v5042_v33, %v1188_v27  ;;  %v7399_v33 = vld [vmem:[#allocation87_spill] sm:$0xff] }
 0x2fb   :  { %v197_v61 = vadd.f32 %v7399_v33, %v143_v32 }
 0x2fc   :  { %1285 = vmatprep.mubr.f32.mxu0 %v1193_v8  ;;  %1356 = vmatprep.mubr.f32.mxu1 %v1193_v8 }
 0x316   :  { %v1096_v48 = vpop.f32.mrb[6].mxu0  ;;  %v1167_v9 = vpop.f32.mrb[6].mxu1 }
 0x317   :  { %v1199_v27 = vadd.f32 %v1096_v48, %v195_v26  ;;  %v1098_v56 = vpop.f32.mrb[7].mxu0  ;;  %v1169_v12 = vpop.f32.mrb[7].mxu1  ;;  %v1201_v38 = vadd.f32 %v1167_v9, %v197_v61 }
 0x318   :  { %v1200_v13 = vadd.f32 %v1098_v56, %v196_v49  ;;  %v1202_v57 = vadd.f32 %v1169_v12, %v198_v60  ;;  %v7407_v49 = vld [vmem:[#allocation106_spill] sm:$0xff]  ;;  %v7412_v60 = vld [vmem:[#allocation111_spill] sm:$0xff] }
 0x319   :  { %v1203_v25 = vmul.f32 0.5, %v1199_v27  ;;  %v7408_v27 = vld [vmem:[#allocation107_spill] sm:$0xff]  ;;  %v7411_v12 = vld [vmem:[#allocation110_spill] sm:$0xff] }
 0x31a   :  { %v1207_v35 = vmul.f32 0.5, %v1200_v13  ;;  %v1212_v34 = vmul.f32 0.5, %v1202_v57  ;;  %v7406_v57 = vld [vmem:[#allocation105_spill] sm:$0xff] }
 0x31b   :  { %5043 = vtanh.f32 %v1203_v25 }
 0x31c   :  { %5045 = vtanh.f32 %v1207_v35 }
 0x31d   :  { %5047 = vtanh.f32 %v1201_v38 }
 0x31e   :  { %5049 = vtanh.f32 %v1212_v34  ;;  %v7413_v34 = vld [vmem:[#allocation112_spill] sm:$0xff] }
 0x325   :  { %v5044_v42 = vpop.eup %5043 }
 0x326   :  { %v5046_v30 = vpop.eup %5045  ;;  %v1205_v26 = vmul.f32 0.5, %v5044_v42  ;;  %v7403_v42 = vld [vmem:[#allocation102_spill] sm:$0xff] }
 0x327   :  { %v1209_v48 = vmul.f32 0.5, %v5046_v30  ;;  %v5048_v33 = vpop.eup %5047  ;;  %v7405_v30 = vld [vmem:[#allocation104_spill] sm:$0xff] }
 0x328   :  { %v1206_v32 = vadd.f32 0.5, %v1205_v26  ;;  %v5050_v25 = vpop.eup %5049  ;;  %v7414_v26 = vld [vmem:[#allocation113_spill] sm:$0xff] }
 0x329   :  { %v1210_v44 = vadd.f32 0.5, %v1209_v48  ;;  %v1214_v61 = vmul.f32 0.5, %v5050_v25  ;;  %v7415_v48 = vld [vmem:[#allocation114_spill] sm:$0xff] }
 0x32a   :  { %v1217_v29 = vmul.f32 %v5048_v33, %v1206_v32  ;;  %v7409_v33 = vld [vmem:[#allocation108_spill] sm:$0xff]  ;;  %v7416_v32 = vld [vmem:[#allocation115_spill] sm:$0xff]  ;;  %v7419_v25 = vld [vmem:[#allocation118_spill] sm:$0xff] }
 0x32b   :  { %v1216_v56 = vmul.f32 %v1210_v44, %v5848_v40  ;;  %v1215_v9 = vadd.f32 0.5, %v1214_v61  ;;  %v7402_v40 = vld [vmem:[#allocation101_spill] sm:$0xff]  ;;  %v7417_v44 = vld [vmem:[#allocation116_spill] sm:$0xff]  ;;  %v7420_v61 = vld [vmem:[#allocation119_spill] sm:$0xff] }
 0x32d   :  { %v6004_v13 = vadd.f32 %v1217_v29, %v1216_v56  ;;  %v7401_v29 = vld [vmem:[#allocation100_spill] sm:$0xff]  ;;  %v7418_v56 = vld [vmem:[#allocation117_spill] sm:$0xff] }
 0x32f   :  { %5051 = vtanh.f32 %v6004_v13 }
 0x339   :  { %v5052_v35 = vpop.eup %5051 }
 0x33a   :  { %v6007_v38 = vmul.f32 %v5052_v35, %v1215_v9  ;;  %v7421_v9 = vld [vmem:[#allocation120_spill] sm:$0xff]  ;;  %v7422_v35 = vld [vmem:[#allocation121_spill] sm:$0xff] }
 0x33c   :  { %1286 = vmatmul.mubr.f32.vlgmr.msra.gmra.mrb[8].mxu0 %v6007_v38  ;;  %1357 = vmatmul.mubr.f32.vlgmr.msra.gmra.mrb[8].mxu1 %v6007_v38 }
 0x33d   :  { %3721 = vmatpush1.bf16.msra.mxu0 %v5553_v11  ;;  %3785 = vmatpush1.bf16.msra.mxu1 %v7298_v2 }
 0x33e   :  { %1427 = vmatprep.mubr.f32.mxu0 %v1193_v8  ;;  %1498 = vmatprep.mubr.f32.mxu1 %v1193_v8  ;;  %v7404_v8 = vld [vmem:[#allocation103_spill] sm:$0xff] }
 0x33f   :  { %3723 = vmatprep.subr.bf16.mxu0 %v7299_v51  ;;  %3787 = vmatprep.subr.bf16.mxu1 %v7300_v4 }
 0x341   :  { %3725 = vmatpush1.bf16.msra.mxu0 %v7301_v37  ;;  %3789 = vmatpush1.bf16.msra.mxu1 %v7302_v36 }
 0x342   :  { %3727 = vmatprep.subr.bf16.mxu0 %v7303_v58  ;;  %3791 = vmatprep.subr.bf16.mxu1 %v7304_v1 }
 0x345   :  { %3729 = vmatpush1.bf16.msra.mxu0 %v7305_v63  ;;  %3793 = vmatpush1.bf16.msra.mxu1 %v7306_v6 }
 0x346   :  { %3731 = vmatprep.subr.bf16.mxu0 %v7307_v59  ;;  %3795 = vmatprep.subr.bf16.mxu1 %v7401_v29 }
 0x349   :  { %3733 = vmatpush1.bf16.msra.mxu0 %v7402_v40  ;;  %3797 = vmatpush1.bf16.msra.mxu1 %v7403_v42 }
 0x34a   :  { %3735 = vmatprep.subr.bf16.mxu0 %v7404_v8  ;;  %3799 = vmatprep.subr.bf16.mxu1 %v7405_v30 }
 0x34d   :  { %3737 = vmatpush1.bf16.msra.mxu0 %v7406_v57  ;;  %3801 = vmatpush1.bf16.msra.mxu1 %v7407_v49 }
 0x34e   :  { %3739 = vmatprep.subr.bf16.mxu0 %v7408_v27  ;;  %3803 = vmatprep.subr.bf16.mxu1 %v7409_v33 }
 0x351   :  { %3741 = vmatpush1.bf16.msra.mxu0 %v7410_v45  ;;  %3805 = vmatpush1.bf16.msra.mxu1 %v7411_v12 }
 0x352   :  { %3743 = vmatprep.subr.bf16.mxu0 %v7412_v60  ;;  %3807 = vmatprep.subr.bf16.mxu1 %v7413_v34  ;;  %v7423_v60 = vld [vmem:[#allocation122_spill] sm:$0xff]  ;;  %v7424_v34 = vld [vmem:[#allocation123_spill] sm:$0xff] }
 0x355   :  { %3745 = vmatpush1.bf16.msra.mxu0 %v7414_v26  ;;  %3809 = vmatpush1.bf16.msra.mxu1 %v7415_v48  ;;  %v7425_v26 = vld [vmem:[#allocation124_spill] sm:$0xff]  ;;  %v7426_v48 = vld [vmem:[#allocation125_spill] sm:$0xff] }
 0x356   :  { %3747 = vmatprep.subr.bf16.mxu0 %v7416_v32  ;;  %3811 = vmatprep.subr.bf16.mxu1 %v7417_v44  ;;  %v7427_v32 = vld [vmem:[#allocation126_spill] sm:$0xff]  ;;  %v7428_v44 = vld [vmem:[#allocation127_spill] sm:$0xff] }
 0x359   :  { %3749 = vmatpush1.bf16.msra.mxu0 %v7418_v56  ;;  %3813 = vmatpush1.bf16.msra.mxu1 %v7419_v25 }
 0x35a   :  { %3751 = vmatprep.subr.bf16.mxu0 %v7420_v61  ;;  %3815 = vmatprep.subr.bf16.mxu1 %v7421_v9 }
 0x35d   :  { %3753 = vmatpush1.bf16.msra.mxu0 %v7422_v35  ;;  %3817 = vmatpush1.bf16.msra.mxu1 %v7423_v60 }
 0x35e   :  { %3755 = vmatprep.subr.bf16.mxu0 %v7424_v34  ;;  %3819 = vmatprep.subr.bf16.mxu1 %v7425_v26 }
 0x361   :  { %3757 = vmatpush1.bf16.msra.mxu0 %v7426_v48  ;;  %3821 = vmatpush1.bf16.msra.mxu1 %v7427_v32 }
 0x362   :  { %3759 = vmatprep.subr.bf16.mxu0 %v7428_v44  ;;  %3823 = vmatprep.subr.bf16.mxu1 %v7336_v24 }
 0x365   :  { %3761 = vmatpush1.bf16.msra.mxu0 %v7337_v50  ;;  %3825 = vmatpush1.bf16.msra.mxu1 %v7338_v23 }
 0x366   :  { %3763 = vmatprep.subr.bf16.mxu0 %v7339_v62  ;;  %3827 = vmatprep.subr.bf16.mxu1 %v7340_v28 }
 0x369   :  { %3765 = vmatpush1.bf16.msra.mxu0 %v7341_v7  ;;  %3829 = vmatpush1.bf16.msra.mxu1 %v7342_v52 }
 0x36a   :  { %3767 = vmatprep.subr.bf16.mxu0 %v7343_v3  ;;  %3831 = vmatprep.subr.bf16.mxu1 %v7344_v22  ;;  %v7504_v3 = vld [vmem:[#allocation86_spill] sm:$0xff] }
 0x36d   :  { %3769 = vmatpush1.bf16.msra.mxu0 %v7345_v5  ;;  %3833 = vmatpush1.bf16.msra.mxu1 %v7346_v46 }
 0x36e   :  { %3771 = vmatprep.subr.bf16.mxu0 %v5707_v31  ;;  %3835 = vmatprep.subr.bf16.mxu1 %v5709_v0 }
 0x371   :  { %3773 = vmatpush1.bf16.msra.mxu0 %v5713_v17  ;;  %3837 = vmatpush1.bf16.msra.mxu1 %v5715_v47 }
 0x372   :  { %3775 = vmatprep.subr.bf16.mxu0 %v5719_v19  ;;  %3839 = vmatprep.subr.bf16.mxu1 %v5721_v54  ;;  %v7491_v19 = vld [vmem:[#allocation78_spill] sm:$0xff] }
 0x375   :  { %3777 = vmatpush1.bf16.msra.mxu0 %v5725_v53  ;;  %3841 = vmatpush1.bf16.msra.mxu1 %v5727_v55  ;;  %v7435_v55 = vld [vmem:[#allocation23_spill] sm:$0xff] }
 0x376   :  { %3779 = vmatprep.subr.bf16.mxu0 %v5731_v41  ;;  %3843 = vmatprep.subr.bf16.mxu1 %v5733_v18  ;;  %v7429_v41 = vld [vmem:[#allocation17_spill] sm:$0xff]  ;;  %v7430_v18 = vld [vmem:[#allocation18_spill] sm:$0xff]  ;;  %v7490_v53 = vld [vmem:[#allocation11_spill] sm:$0xff] }
 0x379   :  { %3781 = vmatpush1.bf16.msra.mxu0 %v5737_v10  ;;  %3845 = vmatpush1.bf16.msra.mxu1 %v5739_v39  ;;  %v7431_v10 = vld [vmem:[#allocation19_spill] sm:$0xff]  ;;  %v7432_v39 = vld [vmem:[#allocation20_spill] sm:$0xff] }
 0x37a   :  { %3847 = vmatprep.subr.bf16.mxu0 %v5301_v14  ;;  %3911 = vmatprep.subr.bf16.mxu1 %v5303_v15  ;;  %v7433_v14 = vld [vmem:[#allocation21_spill] sm:$0xff]  ;;  %v7434_v15 = vld [vmem:[#allocation22_spill] sm:$0xff] }
 0x37c   :  { %1428 = vmatmul.mubr.f32.vlgmr.msra.gmra.mrb[10].mxu0 %v6007_v38  ;;  %1499 = vmatmul.mubr.f32.vlgmr.msra.gmra.mrb[10].mxu1 %v6007_v38  ;;  %v7436_v38 = vld [vmem:[#allocation24_spill] sm:$0xff] }
 0x37d   :  { %3849 = vmatpush1.bf16.msra.mxu0 %v5305_v16  ;;  %3913 = vmatpush1.bf16.msra.mxu1 %v5307_v20  ;;  %v7437_v16 = vld [vmem:[#allocation25_spill] sm:$0xff]  ;;  %v7438_v20 = vld [vmem:[#allocation26_spill] sm:$0xff] }
 0x37e   :  { %3851 = vmatprep.subr.bf16.mxu0 %v5309_v21  ;;  %3915 = vmatprep.subr.bf16.mxu1 %v7429_v41  ;;  %v7439_v21 = vld [vmem:[#allocation27_spill] sm:$0xff]  ;;  %v7440_v41 = vld [vmem:[#allocation28_spill] sm:$0xff] }
 0x381   :  { %3853 = vmatpush1.bf16.msra.mxu0 %v7430_v18  ;;  %3917 = vmatpush1.bf16.msra.mxu1 %v7431_v10  ;;  %v7441_v18 = vld [vmem:[#allocation29_spill] sm:$0xff]  ;;  %v7442_v10 = vld [vmem:[#allocation30_spill] sm:$0xff] }
 0x382   :  { %3855 = vmatprep.subr.bf16.mxu0 %v7432_v39  ;;  %3919 = vmatprep.subr.bf16.mxu1 %v7433_v14  ;;  %v7443_v39 = vld [vmem:[#allocation31_spill] sm:$0xff]  ;;  %v7444_v14 = vld [vmem:[#allocation32_spill] sm:$0xff] }
 0x385   :  { %3857 = vmatpush1.bf16.msra.mxu0 %v7434_v15  ;;  %3921 = vmatpush1.bf16.msra.mxu1 %v7435_v55  ;;  %v7445_v15 = vld [vmem:[#allocation33_spill] sm:$0xff]  ;;  %v7446_v55 = vld [vmem:[#allocation34_spill] sm:$0xff] }
 0x386   :  { %3859 = vmatprep.subr.bf16.mxu0 %v7436_v38  ;;  %3923 = vmatprep.subr.bf16.mxu1 %v7437_v16  ;;  %v7447_v38 = vld [vmem:[#allocation35_spill] sm:$0xff]  ;;  %v7448_v16 = vld [vmem:[#allocation36_spill] sm:$0xff] }
 0x389   :  { %3861 = vmatpush1.bf16.msra.mxu0 %v7438_v20  ;;  %3925 = vmatpush1.bf16.msra.mxu1 %v7439_v21  ;;  %v7449_v20 = vld [vmem:[#allocation37_spill] sm:$0xff]  ;;  %v7450_v21 = vld [vmem:[#allocation38_spill] sm:$0xff] }
 0x38a   :  { %3863 = vmatprep.subr.bf16.mxu0 %v7440_v41  ;;  %3927 = vmatprep.subr.bf16.mxu1 %v7441_v18  ;;  %v7451_v41 = vld [vmem:[#allocation39_spill] sm:$0xff]  ;;  %v7452_v18 = vld [vmem:[#allocation40_spill] sm:$0xff] }
 0x38d   :  { %3865 = vmatpush1.bf16.msra.mxu0 %v7442_v10  ;;  %3929 = vmatpush1.bf16.msra.mxu1 %v7443_v39  ;;  %v7453_v10 = vld [vmem:[#allocation41_spill] sm:$0xff]  ;;  %v7454_v39 = vld [vmem:[#allocation42_spill] sm:$0xff] }
 0x38e   :  { %3867 = vmatprep.subr.bf16.mxu0 %v7444_v14  ;;  %3931 = vmatprep.subr.bf16.mxu1 %v7445_v15  ;;  %v7455_v14 = vld [vmem:[#allocation43_spill] sm:$0xff]  ;;  %v7456_v15 = vld [vmem:[#allocation44_spill] sm:$0xff] }
 0x391   :  { %3869 = vmatpush1.bf16.msra.mxu0 %v7446_v55  ;;  %3933 = vmatpush1.bf16.msra.mxu1 %v7447_v38  ;;  %v7457_v55 = vld [vmem:[#allocation45_spill] sm:$0xff]  ;;  %v7458_v38 = vld [vmem:[#allocation46_spill] sm:$0xff] }
 0x392   :  { %3871 = vmatprep.subr.bf16.mxu0 %v7448_v16  ;;  %3935 = vmatprep.subr.bf16.mxu1 %v7449_v20  ;;  %v7459_v16 = vld [vmem:[#allocation47_spill] sm:$0xff]  ;;  %v7460_v20 = vld [vmem:[#allocation48_spill] sm:$0xff] }
 0x395   :  { %3873 = vmatpush1.bf16.msra.mxu0 %v7450_v21  ;;  %3937 = vmatpush1.bf16.msra.mxu1 %v7451_v41  ;;  %v7461_v21 = vld [vmem:[#allocation49_spill] sm:$0xff]  ;;  %v7462_v41 = vld [vmem:[#allocation50_spill] sm:$0xff] }
 0x396   :  { %3875 = vmatprep.subr.bf16.mxu0 %v7452_v18  ;;  %3939 = vmatprep.subr.bf16.mxu1 %v7453_v10  ;;  %v7463_v18 = vld [vmem:[#allocation51_spill] sm:$0xff]  ;;  %v7464_v10 = vld [vmem:[#allocation52_spill] sm:$0xff] }
 0x399   :  { %3877 = vmatpush1.bf16.msra.mxu0 %v7454_v39  ;;  %3941 = vmatpush1.bf16.msra.mxu1 %v7455_v14  ;;  %v7465_v39 = vld [vmem:[#allocation53_spill] sm:$0xff]  ;;  %v7466_v14 = vld [vmem:[#allocation54_spill] sm:$0xff] }
 0x39a   :  { %3879 = vmatprep.subr.bf16.mxu0 %v7456_v15  ;;  %3943 = vmatprep.subr.bf16.mxu1 %v7457_v55  ;;  %v7467_v15 = vld [vmem:[#allocation55_spill] sm:$0xff]  ;;  %v7468_v55 = vld [vmem:[#allocation56_spill] sm:$0xff] }
 0x39d   :  { %3881 = vmatpush1.bf16.msra.mxu0 %v7458_v38  ;;  %3945 = vmatpush1.bf16.msra.mxu1 %v7459_v16  ;;  %v7469_v38 = vld [vmem:[#allocation57_spill] sm:$0xff]  ;;  %v7470_v16 = vld [vmem:[#allocation58_spill] sm:$0xff] }
 0x39e   :  { %3883 = vmatprep.subr.bf16.mxu0 %v7460_v20  ;;  %3947 = vmatprep.subr.bf16.mxu1 %v7461_v21  ;;  %v7471_v20 = vld [vmem:[#allocation59_spill] sm:$0xff]  ;;  %v7472_v21 = vld [vmem:[#allocation60_spill] sm:$0xff] }
 0x3a1   :  { %3885 = vmatpush1.bf16.msra.mxu0 %v7462_v41  ;;  %3949 = vmatpush1.bf16.msra.mxu1 %v7463_v18  ;;  %v7473_v41 = vld [vmem:[#allocation61_spill] sm:$0xff]  ;;  %v7474_v18 = vld [vmem:[#allocation62_spill] sm:$0xff] }
 0x3a2   :  { %3887 = vmatprep.subr.bf16.mxu0 %v7464_v10  ;;  %3951 = vmatprep.subr.bf16.mxu1 %v7465_v39  ;;  %v7475_v10 = vld [vmem:[#allocation63_spill] sm:$0xff]  ;;  %v7476_v39 = vld [vmem:[#allocation64_spill] sm:$0xff] }
 0x3a5   :  { %3889 = vmatpush1.bf16.msra.mxu0 %v7466_v14  ;;  %3953 = vmatpush1.bf16.msra.mxu1 %v7467_v15  ;;  %v7477_v14 = vld [vmem:[#allocation65_spill] sm:$0xff]  ;;  %v7478_v15 = vld [vmem:[#allocation66_spill] sm:$0xff] }
 0x3a6   :  { %3891 = vmatprep.subr.bf16.mxu0 %v7468_v55  ;;  %3955 = vmatprep.subr.bf16.mxu1 %v7469_v38  ;;  %v7479_v55 = vld [vmem:[#allocation67_spill] sm:$0xff]  ;;  %v7480_v38 = vld [vmem:[#allocation68_spill] sm:$0xff] }
 0x3a9   :  { %3893 = vmatpush1.bf16.msra.mxu0 %v7470_v16  ;;  %3957 = vmatpush1.bf16.msra.mxu1 %v7471_v20  ;;  %v7481_v16 = vld [vmem:[#allocation69_spill] sm:$0xff]  ;;  %v7482_v20 = vld [vmem:[#allocation70_spill] sm:$0xff] }
 0x3aa   :  { %3895 = vmatprep.subr.bf16.mxu0 %v7472_v21  ;;  %3959 = vmatprep.subr.bf16.mxu1 %v7473_v41  ;;  %v7483_v21 = vld [vmem:[#allocation71_spill] sm:$0xff]  ;;  %v7484_v41 = vld [vmem:[#allocation72_spill] sm:$0xff] }
 0x3ad   :  { %3897 = vmatpush1.bf16.msra.mxu0 %v7474_v18  ;;  %3961 = vmatpush1.bf16.msra.mxu1 %v7475_v10  ;;  %v7485_v18 = vld [vmem:[#allocation73_spill] sm:$0xff]  ;;  %v7486_v10 = vld [vmem:[#allocation74_spill] sm:$0xff] }
 0x3ae   :  { %3899 = vmatprep.subr.bf16.mxu0 %v7476_v39  ;;  %3963 = vmatprep.subr.bf16.mxu1 %v7477_v14  ;;  %v7487_v39 = vld [vmem:[#allocation75_spill] sm:$0xff]  ;;  %v7488_v14 = vld [vmem:[#allocation76_spill] sm:$0xff] }
 0x3b1   :  { %3901 = vmatpush1.bf16.msra.mxu0 %v7478_v15  ;;  %3965 = vmatpush1.bf16.msra.mxu1 %v7479_v55  ;;  %v7489_v15 = vld [vmem:[#allocation77_spill] sm:$0xff] }
 0x3b2   :  { %3903 = vmatprep.subr.bf16.mxu0 %v7480_v38  ;;  %3967 = vmatprep.subr.bf16.mxu1 %v7481_v16 }
 0x3b5   :  { %3905 = vmatpush1.bf16.msra.mxu0 %v7482_v20  ;;  %3969 = vmatpush1.bf16.msra.mxu1 %v7483_v21 }
 0x3b6   :  { %3907 = vmatprep.subr.bf16.mxu0 %v7484_v41  ;;  %3971 = vmatprep.subr.bf16.mxu1 %v7485_v18  ;;  %v7492_v18 = vld [vmem:[#allocation79_spill] sm:$0xff] }
 0x3b9   :  { %3909 = vmatpush1.bf16.msra.mxu0 %v7486_v10  ;;  %3973 = vmatpush1.bf16.msra.mxu1 %v7487_v39  ;;  %v7493_v39 = vld [vmem:[#allocation151_spill] sm:$0xff] }
 0x3ba   :  { %3975 = vmatprep.subr.bf16.mxu0 %v7488_v14  ;;  %4039 = vmatprep.subr.bf16.mxu1 %v7489_v15 }
 0x40f   :  { %v1287_v55 = vpop.f32.mrb[8].mxu0  ;;  %v1358_v38 = vpop.f32.mrb[8].mxu1 }
 0x410   :  { %v1505_v16 = vadd.f32 %v1287_v55, %v7490_v53  ;;  %v1289_v54 = vpop.f32.mrb[9].mxu0  ;;  %v1360_v20 = vpop.f32.mrb[9].mxu1  ;;  %v1507_v17 = vadd.f32 %v1358_v38, %v7492_v18  ;;  %v7503_v18 = vld [vmem:[#allocation87_spill] sm:$0xff] }
 0x411   :  { %v1506_v21 = vadd.f32 %v1289_v54, %v7491_v19  ;;  %v1508_v10 = vadd.f32 %v1360_v20, %v7493_v39  ;;  %v7494_v54 = vld [vmem:[#allocation88_spill] sm:$0xff] }
 0x412   :  { %v1509_v47 = vmul.f32 0.5, %v1505_v16 }
 0x413   :  { %v1513_v41 = vmul.f32 0.5, %v1506_v21  ;;  %v1518_v14 = vmul.f32 0.5, %v1508_v10 }
 0x414   :  { %5053 = vtanh.f32 %v1509_v47 }
 0x415   :  { %5055 = vtanh.f32 %v1513_v41 }
 0x416   :  { %5057 = vtanh.f32 %v1507_v17 }
 0x417   :  { %5059 = vtanh.f32 %v1518_v14  ;;  %v7497_v14 = vld [vmem:[#allocation153_spill] sm:$0xff] }
 0x41e   :  { %v5054_v0 = vpop.eup %5053 }
 0x41f   :  { %v5056_v15 = vpop.eup %5055  ;;  %v1511_v31 = vmul.f32 0.5, %v5054_v0  ;;  %v7496_v0 = vld [vmem:[#allocation10_spill] sm:$0xff] }
 0x420   :  { %v1515_v46 = vmul.f32 0.5, %v5056_v15  ;;  %v5058_v53 = vpop.eup %5057  ;;  %v85_v15 = vsub.s32 4, %v7496_v0 }
 0x421   :  { %v1512_v55 = vadd.f32 0.5, %v1511_v31  ;;  %v5060_v47 = vpop.eup %5059 }
 0x422   :  { %v1516_v5 = vadd.f32 0.5, %v1515_v46  ;;  %v1520_v17 = vmul.f32 0.5, %v5060_v47  ;;  %v86_v31 = vrot.slane %v7497_v14, %v85_v15  ;;  %v82_v46 = vpop.permute.xlu1 %81  ;;  %v7502_v47 = vld [vmem:[#allocation85_spill] sm:$0xff] }
 0x423   :  { %v1523_v22 = vmul.f32 %v5058_v53, %v1512_v55  ;;  %v7498_v53 = vld [vmem:[#allocation80_spill] sm:$0xff]  ;;  %v148_v15 = vmul.f32 %v7504_v3, %v82_v46 }
 0x424   :  { %v1522_v16 = vmul.f32 %v1516_v5, %v7494_v54  ;;  %v1521_v41 = vadd.f32 0.5, %v1520_v17  ;;  %88 = vbcast.lane.b32.xlu0 %v86_v31, 256  ;;  %v145_v38 = vmul.f32 %v7498_v53, %v82_v46  ;;  %v7499_v5 = vld [vmem:[#allocation81_spill] sm:$0xff]  ;;  %v7500_v55 = vld [vmem:[#allocation84_spill] sm:$0xff] }
 0x426   :  { %v6146_v21 = vadd.f32 %v1523_v22, %v1522_v16  ;;  %v146_v22 = vmul.f32 %v7499_v5, %v82_v46  ;;  %v199_v54 = vadd.f32 %v7500_v55, %v145_v38  ;;  %v7501_v16 = vld [vmem:[#allocation83_spill] sm:$0xff]  ;;  %v202_v38 = vadd.f32 %v7296_v43, %v148_v15  ;;  %v7513_v15 = vld [vmem:[#allocation136_spill] sm:$0xff] }
 0x428   :  { %7495 = vst [vmem:[#allocation89_spill] sm:$0xff] %v6146_v21  ;;  %5061 = vtanh.f32 %v6146_v21  ;;  %v147_v21 = vmul.f32 %v7501_v16, %v82_v46  ;;  %v200_v17 = vadd.f32 %v7502_v47, %v146_v22 }
 0x42a   :  { %v201_v19 = vadd.f32 %v7503_v18, %v147_v21 }
 0x432   :  { %v5062_v20 = vpop.eup %5061 }
 0x433   :  { %v1526_v10 = vmul.f32 %v5062_v20, %v1521_v41 }
 0x435   :  { %1618 = vmatprep.mubr.f32.mxu0 %v1526_v10  ;;  %1689 = vmatprep.mubr.f32.mxu1 %v1526_v10 }
 0x44f   :  { %v1429_v39 = vpop.f32.mrb[10].mxu0  ;;  %v1500_v41 = vpop.f32.mrb[10].mxu1 }
 0x450   :  { %v1532_v20 = vadd.f32 %v1429_v39, %v199_v54  ;;  %v1431_v0 = vpop.f32.mrb[11].mxu0  ;;  %v1502_v14 = vpop.f32.mrb[11].mxu1  ;;  %v1534_v5 = vadd.f32 %v1500_v41, %v201_v19  ;;  %v7511_v41 = vld [vmem:[#allocation134_spill] sm:$0xff] }
 0x451   :  { %v1533_v31 = vadd.f32 %v1431_v0, %v200_v17  ;;  %v1535_v16 = vadd.f32 %v1502_v14, %v202_v38  ;;  %v7514_v14 = vld [vmem:[#allocation137_spill] sm:$0xff]  ;;  %v7516_v38 = vld [vmem:[#allocation139_spill] sm:$0xff] }
 0x452   :  { %v1536_v52 = vmul.f32 0.5, %v1532_v20  ;;  %v7512_v20 = vld [vmem:[#allocation135_spill] sm:$0xff] }
 0x453   :  { %v1540_v53 = vmul.f32 0.5, %v1533_v31  ;;  %v1545_v22 = vmul.f32 0.5, %v1535_v16  ;;  %v7515_v31 = vld [vmem:[#allocation138_spill] sm:$0xff] }
 0x454   :  { %5063 = vtanh.f32 %v1536_v52 }
 0x455   :  { %5065 = vtanh.f32 %v1540_v53 }
 0x456   :  { %5067 = vtanh.f32 %v1534_v5 }
 0x457   :  { %5069 = vtanh.f32 %v1545_v22  ;;  %v7517_v22 = vld [vmem:[#allocation140_spill] sm:$0xff] }
 0x45e   :  { %v5064_v47 = vpop.eup %5063 }
 0x45f   :  { %v5066_v55 = vpop.eup %5065  ;;  %v1538_v39 = vmul.f32 0.5, %v5064_v47  ;;  %v7510_v47 = vld [vmem:[#allocation116_spill] sm:$0xff] }
 0x460   :  { %v1542_v54 = vmul.f32 0.5, %v5066_v55  ;;  %v5068_v18 = vpop.eup %5067  ;;  %v7509_v55 = vld [vmem:[#allocation115_spill] sm:$0xff] }
 0x461   :  { %v1539_v21 = vadd.f32 0.5, %v1538_v39  ;;  %v5070_v19 = vpop.eup %5069  ;;  %v7518_v39 = vld [vmem:[#allocation141_spill] sm:$0xff] }
 0x462   :  { %v1543_v46 = vadd.f32 0.5, %v1542_v54  ;;  %v1547_v52 = vmul.f32 0.5, %v5070_v19  ;;  %v7519_v54 = vld [vmem:[#allocation142_spill] sm:$0xff] }
 0x463   :  { %v1550_v3 = vmul.f32 %v5068_v18, %v1539_v21  ;;  %v7505_v18 = vld [vmem:[#allocation111_spill] sm:$0xff]  ;;  %v7523_v19 = vld [vmem:[#allocation146_spill] sm:$0xff] }
 0x464   :  { %v1549_v0 = vmul.f32 %v1543_v46, %v6004_v13  ;;  %v1548_v53 = vadd.f32 0.5, %v1547_v52  ;;  %v7507_v13 = vld [vmem:[#allocation113_spill] sm:$0xff]  ;;  %v7520_v21 = vld [vmem:[#allocation143_spill] sm:$0xff]  ;;  %v7521_v46 = vld [vmem:[#allocation144_spill] sm:$0xff] }
 0x465   :  { %v7524_v52 = vld [vmem:[#allocation147_spill] sm:$0xff] }
 0x466   :  { %v6160_v17 = vadd.f32 %v1550_v3, %v1549_v0  ;;  %v7506_v3 = vld [vmem:[#allocation112_spill] sm:$0xff]  ;;  %v7522_v0 = vld [vmem:[#allocation145_spill] sm:$0xff] }
 0x468   :  { %5071 = vtanh.f32 %v6160_v17 }
 0x472   :  { %v5072_v5 = vpop.eup %5071 }
 0x473   :  { %v6163_v16 = vmul.f32 %v5072_v5, %v1548_v53  ;;  %v7525_v53 = vld [vmem:[#allocation148_spill] sm:$0xff]  ;;  %v7526_v5 = vld [vmem:[#allocation149_spill] sm:$0xff] }
 0x475   :  { %1619 = vmatmul.mubr.f32.vlgmr.msra.gmra.mrb[12].mxu0 %v6163_v16  ;;  %1690 = vmatmul.mubr.f32.vlgmr.msra.gmra.mrb[12].mxu1 %v6163_v16 }
 0x476   :  { %3977 = vmatpush1.bf16.msra.mxu0 %v5553_v11  ;;  %4041 = vmatpush1.bf16.msra.mxu1 %v7298_v2 }
 0x477   :  { %1760 = vmatprep.mubr.f32.mxu0 %v1526_v10  ;;  %1831 = vmatprep.mubr.f32.mxu1 %v1526_v10  ;;  %v7508_v10 = vld [vmem:[#allocation114_spill] sm:$0xff] }
 0x478   :  { %3979 = vmatprep.subr.bf16.mxu0 %v7299_v51  ;;  %4043 = vmatprep.subr.bf16.mxu1 %v7300_v4 }
 0x47a   :  { %3981 = vmatpush1.bf16.msra.mxu0 %v7301_v37  ;;  %4045 = vmatpush1.bf16.msra.mxu1 %v7302_v36 }
 0x47b   :  { %3983 = vmatprep.subr.bf16.mxu0 %v7303_v58  ;;  %4047 = vmatprep.subr.bf16.mxu1 %v7304_v1 }
 0x47e   :  { %3985 = vmatpush1.bf16.msra.mxu0 %v7305_v63  ;;  %4049 = vmatpush1.bf16.msra.mxu1 %v7306_v6 }
 0x47f   :  { %3987 = vmatprep.subr.bf16.mxu0 %v7307_v59  ;;  %4051 = vmatprep.subr.bf16.mxu1 %v7401_v29 }
 0x482   :  { %3989 = vmatpush1.bf16.msra.mxu0 %v7402_v40  ;;  %4053 = vmatpush1.bf16.msra.mxu1 %v7403_v42 }
 0x483   :  { %3991 = vmatprep.subr.bf16.mxu0 %v7404_v8  ;;  %4055 = vmatprep.subr.bf16.mxu1 %v7405_v30 }
 0x486   :  { %3993 = vmatpush1.bf16.msra.mxu0 %v7406_v57  ;;  %4057 = vmatpush1.bf16.msra.mxu1 %v7407_v49 }
 0x487   :  { %3995 = vmatprep.subr.bf16.mxu0 %v7408_v27  ;;  %4059 = vmatprep.subr.bf16.mxu1 %v7409_v33 }
 0x48a   :  { %3997 = vmatpush1.bf16.msra.mxu0 %v7410_v45  ;;  %4061 = vmatpush1.bf16.msra.mxu1 %v7411_v12 }
 0x48b   :  { %3999 = vmatprep.subr.bf16.mxu0 %v7505_v18  ;;  %4063 = vmatprep.subr.bf16.mxu1 %v7506_v3 }
 0x48e   :  { %4001 = vmatpush1.bf16.msra.mxu0 %v7507_v13  ;;  %4065 = vmatpush1.bf16.msra.mxu1 %v7508_v10 }
 0x48f   :  { %4003 = vmatprep.subr.bf16.mxu0 %v7509_v55  ;;  %4067 = vmatprep.subr.bf16.mxu1 %v7510_v47 }
 0x492   :  { %4005 = vmatpush1.bf16.msra.mxu0 %v7418_v56  ;;  %4069 = vmatpush1.bf16.msra.mxu1 %v7419_v25 }
 0x493   :  { %4007 = vmatprep.subr.bf16.mxu0 %v7420_v61  ;;  %4071 = vmatprep.subr.bf16.mxu1 %v7421_v9 }
 0x496   :  { %4009 = vmatpush1.bf16.msra.mxu0 %v7422_v35  ;;  %4073 = vmatpush1.bf16.msra.mxu1 %v7423_v60 }
 0x497   :  { %4011 = vmatprep.subr.bf16.mxu0 %v7424_v34  ;;  %4075 = vmatprep.subr.bf16.mxu1 %v7425_v26 }
 0x49a   :  { %4013 = vmatpush1.bf16.msra.mxu0 %v7426_v48  ;;  %4077 = vmatpush1.bf16.msra.mxu1 %v7427_v32 }
 0x49b   :  { %4015 = vmatprep.subr.bf16.mxu0 %v7428_v44  ;;  %4079 = vmatprep.subr.bf16.mxu1 %v7336_v24 }
 0x49e   :  { %4017 = vmatpush1.bf16.msra.mxu0 %v7337_v50  ;;  %4081 = vmatpush1.bf16.msra.mxu1 %v7338_v23  ;;  %v7608_v50 = vld [vmem:[#allocation86_spill] sm:$0xff] }
 0x49f   :  { %4019 = vmatprep.subr.bf16.mxu0 %v7339_v62  ;;  %4083 = vmatprep.subr.bf16.mxu1 %v7340_v28 }
 0x4a2   :  { %4021 = vmatpush1.bf16.msra.mxu0 %v7341_v7  ;;  %4085 = vmatpush1.bf16.msra.mxu1 %v7511_v41 }
 0x4a3   :  { %4023 = vmatprep.subr.bf16.mxu0 %v7512_v20  ;;  %4087 = vmatprep.subr.bf16.mxu1 %v7513_v15 }
 0x4a6   :  { %4025 = vmatpush1.bf16.msra.mxu0 %v7514_v14  ;;  %4089 = vmatpush1.bf16.msra.mxu1 %v7515_v31  ;;  %v7595_v14 = vld [vmem:[#allocation78_spill] sm:$0xff] }
 0x4a7   :  { %4027 = vmatprep.subr.bf16.mxu0 %v7516_v38  ;;  %4091 = vmatprep.subr.bf16.mxu1 %v7517_v22  ;;  %v7527_v38 = vld [vmem:[#allocation150_spill] sm:$0xff]  ;;  %v7528_v22 = vld [vmem:[#allocation12_spill] sm:$0xff] }
 0x4aa   :  { %4029 = vmatpush1.bf16.msra.mxu0 %v7518_v39  ;;  %4093 = vmatpush1.bf16.msra.mxu1 %v7519_v54  ;;  %v7529_v39 = vld [vmem:[#allocation13_spill] sm:$0xff]  ;;  %v7594_v54 = vld [vmem:[#allocation11_spill] sm:$0xff] }
 0x4ab   :  { %4031 = vmatprep.subr.bf16.mxu0 %v7520_v21  ;;  %4095 = vmatprep.subr.bf16.mxu1 %v7521_v46  ;;  %v7530_v46 = vld [vmem:[#allocation14_spill] sm:$0xff]  ;;  %v7539_v21 = vld [vmem:[#allocation23_spill] sm:$0xff] }
 0x4ae   :  { %4033 = vmatpush1.bf16.msra.mxu0 %v7522_v0  ;;  %4097 = vmatpush1.bf16.msra.mxu1 %v7523_v19  ;;  %v7531_v0 = vld [vmem:[#allocation15_spill] sm:$0xff]  ;;  %v7532_v19 = vld [vmem:[#allocation16_spill] sm:$0xff] }
 0x4af   :  { %4035 = vmatprep.subr.bf16.mxu0 %v7524_v52  ;;  %4099 = vmatprep.subr.bf16.mxu1 %v7525_v53  ;;  %v7533_v52 = vld [vmem:[#allocation17_spill] sm:$0xff]  ;;  %v7534_v53 = vld [vmem:[#allocation18_spill] sm:$0xff] }
 0x4b2   :  { %4037 = vmatpush1.bf16.msra.mxu0 %v7526_v5  ;;  %4101 = vmatpush1.bf16.msra.mxu1 %v7527_v38  ;;  %v7535_v5 = vld [vmem:[#allocation19_spill] sm:$0xff]  ;;  %v7536_v38 = vld [vmem:[#allocation20_spill] sm:$0xff] }
 0x4b3   :  { %4103 = vmatprep.subr.bf16.mxu0 %v7528_v22  ;;  %4167 = vmatprep.subr.bf16.mxu1 %v7529_v39  ;;  %v7537_v22 = vld [vmem:[#allocation21_spill] sm:$0xff]  ;;  %v7538_v39 = vld [vmem:[#allocation22_spill] sm:$0xff] }
 0x4b5   :  { %1761 = vmatmul.mubr.f32.vlgmr.msra.gmra.mrb[14].mxu0 %v6163_v16  ;;  %1832 = vmatmul.mubr.f32.vlgmr.msra.gmra.mrb[14].mxu1 %v6163_v16  ;;  %v7540_v16 = vld [vmem:[#allocation24_spill] sm:$0xff] }
 0x4b6   :  { %4105 = vmatpush1.bf16.msra.mxu0 %v7530_v46  ;;  %4169 = vmatpush1.bf16.msra.mxu1 %v7531_v0  ;;  %v7541_v46 = vld [vmem:[#allocation25_spill] sm:$0xff]  ;;  %v7542_v0 = vld [vmem:[#allocation26_spill] sm:$0xff] }
 0x4b7   :  { %4107 = vmatprep.subr.bf16.mxu0 %v7532_v19  ;;  %4171 = vmatprep.subr.bf16.mxu1 %v7533_v52  ;;  %v7543_v19 = vld [vmem:[#allocation27_spill] sm:$0xff]  ;;  %v7544_v52 = vld [vmem:[#allocation28_spill] sm:$0xff] }
 0x4ba   :  { %4109 = vmatpush1.bf16.msra.mxu0 %v7534_v53  ;;  %4173 = vmatpush1.bf16.msra.mxu1 %v7535_v5  ;;  %v7545_v53 = vld [vmem:[#allocation29_spill] sm:$0xff]  ;;  %v7546_v5 = vld [vmem:[#allocation30_spill] sm:$0xff] }
 0x4bb   :  { %4111 = vmatprep.subr.bf16.mxu0 %v7536_v38  ;;  %4175 = vmatprep.subr.bf16.mxu1 %v7537_v22  ;;  %v7547_v38 = vld [vmem:[#allocation31_spill] sm:$0xff]  ;;  %v7548_v22 = vld [vmem:[#allocation32_spill] sm:$0xff] }
 0x4be   :  { %4113 = vmatpush1.bf16.msra.mxu0 %v7538_v39  ;;  %4177 = vmatpush1.bf16.msra.mxu1 %v7539_v21  ;;  %v7549_v39 = vld [vmem:[#allocation33_spill] sm:$0xff]  ;;  %v7550_v21 = vld [vmem:[#allocation34_spill] sm:$0xff] }
 0x4bf   :  { %4115 = vmatprep.subr.bf16.mxu0 %v7540_v16  ;;  %4179 = vmatprep.subr.bf16.mxu1 %v7541_v46  ;;  %v7551_v16 = vld [vmem:[#allocation35_spill] sm:$0xff]  ;;  %v7552_v46 = vld [vmem:[#allocation36_spill] sm:$0xff] }
 0x4c2   :  { %4117 = vmatpush1.bf16.msra.mxu0 %v7542_v0  ;;  %4181 = vmatpush1.bf16.msra.mxu1 %v7543_v19  ;;  %v7553_v0 = vld [vmem:[#allocation37_spill] sm:$0xff]  ;;  %v7554_v19 = vld [vmem:[#allocation38_spill] sm:$0xff] }
 0x4c3   :  { %4119 = vmatprep.subr.bf16.mxu0 %v7544_v52  ;;  %4183 = vmatprep.subr.bf16.mxu1 %v7545_v53  ;;  %v7555_v52 = vld [vmem:[#allocation39_spill] sm:$0xff]  ;;  %v7556_v53 = vld [vmem:[#allocation40_spill] sm:$0xff] }
 0x4c6   :  { %4121 = vmatpush1.bf16.msra.mxu0 %v7546_v5  ;;  %4185 = vmatpush1.bf16.msra.mxu1 %v7547_v38  ;;  %v7557_v5 = vld [vmem:[#allocation41_spill] sm:$0xff]  ;;  %v7558_v38 = vld [vmem:[#allocation42_spill] sm:$0xff] }
 0x4c7   :  { %4123 = vmatprep.subr.bf16.mxu0 %v7548_v22  ;;  %4187 = vmatprep.subr.bf16.mxu1 %v7549_v39  ;;  %v7559_v22 = vld [vmem:[#allocation43_spill] sm:$0xff]  ;;  %v7560_v39 = vld [vmem:[#allocation44_spill] sm:$0xff] }
 0x4ca   :  { %4125 = vmatpush1.bf16.msra.mxu0 %v7550_v21  ;;  %4189 = vmatpush1.bf16.msra.mxu1 %v7551_v16  ;;  %v7561_v21 = vld [vmem:[#allocation45_spill] sm:$0xff]  ;;  %v7562_v16 = vld [vmem:[#allocation46_spill] sm:$0xff] }
 0x4cb   :  { %4127 = vmatprep.subr.bf16.mxu0 %v7552_v46  ;;  %4191 = vmatprep.subr.bf16.mxu1 %v7553_v0  ;;  %v7563_v46 = vld [vmem:[#allocation47_spill] sm:$0xff]  ;;  %v7564_v0 = vld [vmem:[#allocation48_spill] sm:$0xff] }
 0x4ce   :  { %4129 = vmatpush1.bf16.msra.mxu0 %v7554_v19  ;;  %4193 = vmatpush1.bf16.msra.mxu1 %v7555_v52  ;;  %v7565_v19 = vld [vmem:[#allocation49_spill] sm:$0xff]  ;;  %v7566_v52 = vld [vmem:[#allocation50_spill] sm:$0xff] }
 0x4cf   :  { %4131 = vmatprep.subr.bf16.mxu0 %v7556_v53  ;;  %4195 = vmatprep.subr.bf16.mxu1 %v7557_v5  ;;  %v7567_v53 = vld [vmem:[#allocation51_spill] sm:$0xff]  ;;  %v7568_v5 = vld [vmem:[#allocation52_spill] sm:$0xff] }
 0x4d2   :  { %4133 = vmatpush1.bf16.msra.mxu0 %v7558_v38  ;;  %4197 = vmatpush1.bf16.msra.mxu1 %v7559_v22  ;;  %v7569_v38 = vld [vmem:[#allocation53_spill] sm:$0xff]  ;;  %v7570_v22 = vld [vmem:[#allocation54_spill] sm:$0xff] }
 0x4d3   :  { %4135 = vmatprep.subr.bf16.mxu0 %v7560_v39  ;;  %4199 = vmatprep.subr.bf16.mxu1 %v7561_v21  ;;  %v7571_v39 = vld [vmem:[#allocation55_spill] sm:$0xff]  ;;  %v7572_v21 = vld [vmem:[#allocation56_spill] sm:$0xff] }
 0x4d6   :  { %4137 = vmatpush1.bf16.msra.mxu0 %v7562_v16  ;;  %4201 = vmatpush1.bf16.msra.mxu1 %v7563_v46  ;;  %v7573_v16 = vld [vmem:[#allocation57_spill] sm:$0xff]  ;;  %v7574_v46 = vld [vmem:[#allocation58_spill] sm:$0xff] }
 0x4d7   :  { %4139 = vmatprep.subr.bf16.mxu0 %v7564_v0  ;;  %4203 = vmatprep.subr.bf16.mxu1 %v7565_v19  ;;  %v7575_v0 = vld [vmem:[#allocation59_spill] sm:$0xff]  ;;  %v7576_v19 = vld [vmem:[#allocation60_spill] sm:$0xff] }
 0x4da   :  { %4141 = vmatpush1.bf16.msra.mxu0 %v7566_v52  ;;  %4205 = vmatpush1.bf16.msra.mxu1 %v7567_v53  ;;  %v7577_v52 = vld [vmem:[#allocation61_spill] sm:$0xff]  ;;  %v7578_v53 = vld [vmem:[#allocation62_spill] sm:$0xff] }
 0x4db   :  { %4143 = vmatprep.subr.bf16.mxu0 %v7568_v5  ;;  %4207 = vmatprep.subr.bf16.mxu1 %v7569_v38  ;;  %v7579_v5 = vld [vmem:[#allocation63_spill] sm:$0xff]  ;;  %v7580_v38 = vld [vmem:[#allocation64_spill] sm:$0xff] }
 0x4de   :  { %4145 = vmatpush1.bf16.msra.mxu0 %v7570_v22  ;;  %4209 = vmatpush1.bf16.msra.mxu1 %v7571_v39  ;;  %v7581_v22 = vld [vmem:[#allocation65_spill] sm:$0xff]  ;;  %v7582_v39 = vld [vmem:[#allocation66_spill] sm:$0xff] }
 0x4df   :  { %4147 = vmatprep.subr.bf16.mxu0 %v7572_v21  ;;  %4211 = vmatprep.subr.bf16.mxu1 %v7573_v16  ;;  %v7583_v21 = vld [vmem:[#allocation67_spill] sm:$0xff]  ;;  %v7584_v16 = vld [vmem:[#allocation68_spill] sm:$0xff] }
 0x4e2   :  { %4149 = vmatpush1.bf16.msra.mxu0 %v7574_v46  ;;  %4213 = vmatpush1.bf16.msra.mxu1 %v7575_v0  ;;  %v7585_v46 = vld [vmem:[#allocation69_spill] sm:$0xff]  ;;  %v7586_v0 = vld [vmem:[#allocation70_spill] sm:$0xff] }
 0x4e3   :  { %4151 = vmatprep.subr.bf16.mxu0 %v7576_v19  ;;  %4215 = vmatprep.subr.bf16.mxu1 %v7577_v52  ;;  %v7587_v19 = vld [vmem:[#allocation71_spill] sm:$0xff]  ;;  %v7588_v52 = vld [vmem:[#allocation72_spill] sm:$0xff] }
 0x4e6   :  { %4153 = vmatpush1.bf16.msra.mxu0 %v7578_v53  ;;  %4217 = vmatpush1.bf16.msra.mxu1 %v7579_v5  ;;  %v7589_v53 = vld [vmem:[#allocation73_spill] sm:$0xff]  ;;  %v7590_v5 = vld [vmem:[#allocation74_spill] sm:$0xff] }
 0x4e7   :  { %4155 = vmatprep.subr.bf16.mxu0 %v7580_v38  ;;  %4219 = vmatprep.subr.bf16.mxu1 %v7581_v22  ;;  %v7591_v38 = vld [vmem:[#allocation75_spill] sm:$0xff]  ;;  %v7592_v22 = vld [vmem:[#allocation76_spill] sm:$0xff] }
 0x4ea   :  { %4157 = vmatpush1.bf16.msra.mxu0 %v7582_v39  ;;  %4221 = vmatpush1.bf16.msra.mxu1 %v7583_v21  ;;  %v7593_v39 = vld [vmem:[#allocation77_spill] sm:$0xff] }
 0x4eb   :  { %4159 = vmatprep.subr.bf16.mxu0 %v7584_v16  ;;  %4223 = vmatprep.subr.bf16.mxu1 %v7585_v46 }
 0x4ee   :  { %4161 = vmatpush1.bf16.msra.mxu0 %v7586_v0  ;;  %4225 = vmatpush1.bf16.msra.mxu1 %v7587_v19 }
 0x4ef   :  { %4163 = vmatprep.subr.bf16.mxu0 %v7588_v52  ;;  %4227 = vmatprep.subr.bf16.mxu1 %v7589_v53  ;;  %v7596_v53 = vld [vmem:[#allocation79_spill] sm:$0xff] }
 0x4f2   :  { %4165 = vmatpush1.bf16.msra.mxu0 %v7590_v5  ;;  %4229 = vmatpush1.bf16.msra.mxu1 %v7591_v38  ;;  %v7597_v38 = vld [vmem:[#allocation151_spill] sm:$0xff] }
 0x4f3   :  { %4231 = vmatprep.subr.bf16.mxu0 %v7592_v22  ;;  %4295 = vmatprep.subr.bf16.mxu1 %v7593_v39 }
 0x548   :  { %v1620_v21 = vpop.f32.mrb[12].mxu0  ;;  %v1691_v16 = vpop.f32.mrb[12].mxu1 }
 0x549   :  { %v1838_v46 = vadd.f32 %v1620_v21, %v7594_v54  ;;  %v1622_v31 = vpop.f32.mrb[13].mxu0  ;;  %v1693_v0 = vpop.f32.mrb[13].mxu1  ;;  %v1840_v20 = vadd.f32 %v1691_v16, %v7596_v53 }
 0x54a   :  { %v1839_v19 = vadd.f32 %v1622_v31, %v7595_v14  ;;  %v1841_v5 = vadd.f32 %v1693_v0, %v7597_v38  ;;  %v7598_v31 = vld [vmem:[#allocation89_spill] sm:$0xff] }
 0x54b   :  { %v1842_v15 = vmul.f32 0.5, %v1838_v46 }
 0x54c   :  { %v1846_v52 = vmul.f32 0.5, %v1839_v19  ;;  %v1851_v22 = vmul.f32 0.5, %v1841_v5 }
 0x54d   :  { %5073 = vtanh.f32 %v1842_v15 }
 0x54e   :  { %5075 = vtanh.f32 %v1846_v52 }
 0x54f   :  { %5077 = vtanh.f32 %v1840_v20 }
 0x550   :  { %5079 = vtanh.f32 %v1851_v22  ;;  %v6306_v22 = vld [vmem:[#allocation4] sm:$0xff] }
 0x551   :  { %7601 = vst [vmem:[#allocation91_spill] sm:$0xff] %v6306_v22 }
 0x557   :  { %v5074_v41 = vpop.eup %5073 }
 0x558   :  { %v5076_v39 = vpop.eup %5075  ;;  %v1844_v7 = vmul.f32 0.5, %v5074_v41  ;;  %v7600_v41 = vld [vmem:[#allocation10_spill] sm:$0xff] }
 0x559   :  { %v1848_v28 = vmul.f32 0.5, %v5076_v39  ;;  %v5078_v54 = vpop.eup %5077  ;;  %v92_v39 = vsub.s32 5, %v7600_v41  ;;  %v7607_v41 = vld [vmem:[#allocation87_spill] sm:$0xff] }
 0x55a   :  { %v1845_v21 = vadd.f32 0.5, %v1844_v7  ;;  %v5080_v15 = vpop.eup %5079 }
 0x55b   :  { %v1849_v62 = vadd.f32 0.5, %v1848_v28  ;;  %v1853_v20 = vmul.f32 0.5, %v5080_v15  ;;  %v93_v7 = vrot.slane %v6306_v22, %v92_v39  ;;  %v89_v28 = vpop.permute.xlu0 %88 }
 0x55c   :  { %v1856_v23 = vmul.f32 %v5078_v54, %v1845_v21  ;;  %v7603_v54 = vld [vmem:[#allocation81_spill] sm:$0xff]  ;;  %v7604_v21 = vld [vmem:[#allocation84_spill] sm:$0xff]  ;;  %v152_v39 = vmul.f32 %v7608_v50, %v89_v28 }
 0x55d   :  { %v1855_v46 = vmul.f32 %v1849_v62, %v7598_v31  ;;  %v1854_v52 = vadd.f32 0.5, %v1853_v20  ;;  %95 = vbcast.lane.b32.xlu1 %v93_v7, 256  ;;  %v7602_v62 = vld [vmem:[#allocation80_spill] sm:$0xff]  ;;  %v150_v16 = vmul.f32 %v7603_v54, %v89_v28  ;;  %v7606_v20 = vld [vmem:[#allocation85_spill] sm:$0xff] }
 0x55f   :  { %v6302_v19 = vadd.f32 %v1856_v23, %v1855_v46  ;;  %v149_v23 = vmul.f32 %v7602_v62, %v89_v28  ;;  %v7605_v46 = vld [vmem:[#allocation83_spill] sm:$0xff] }
 0x560   :  { %v151_v15 = vmul.f32 %v7605_v46, %v89_v28 }
 0x561   :  { %7599 = vst [vmem:[#allocation90_spill] sm:$0xff] %v6302_v19  ;;  %5081 = vtanh.f32 %v6302_v19  ;;  %v203_v31 = vadd.f32 %v7604_v21, %v149_v23  ;;  %v206_v23 = vadd.f32 %v7296_v43, %v152_v39  ;;  %v7618_v39 = vld [vmem:[#allocation137_spill] sm:$0xff] }
 0x562   :  { %v205_v53 = vadd.f32 %v7607_v41, %v151_v15 }
 0x56b   :  { %v5082_v0 = vpop.eup %5081 }
 0x56c   :  { %v1859_v5 = vmul.f32 %v5082_v0, %v1854_v52  ;;  %v204_v52 = vadd.f32 %v7606_v20, %v150_v16 }
 0x56e   :  { %1951 = vmatprep.mubr.f32.mxu0 %v1859_v5  ;;  %2022 = vmatprep.mubr.f32.mxu1 %v1859_v5 }
 0x588   :  { %v1762_v0 = vpop.f32.mrb[14].mxu0  ;;  %v1833_v19 = vpop.f32.mrb[14].mxu1 }
 0x589   :  { %v1865_v38 = vadd.f32 %v1762_v0, %v203_v31  ;;  %v1764_v14 = vpop.f32.mrb[15].mxu0  ;;  %v1835_v7 = vpop.f32.mrb[15].mxu1  ;;  %v1867_v54 = vadd.f32 %v1833_v19, %v205_v53 }
 0x58a   :  { %v1866_v22 = vadd.f32 %v1764_v14, %v204_v52  ;;  %v1868_v46 = vadd.f32 %v1835_v7, %v206_v23  ;;  %v7617_v52 = vld [vmem:[#allocation136_spill] sm:$0xff]  ;;  %v7619_v7 = vld [vmem:[#allocation138_spill] sm:$0xff]  ;;  %v7620_v23 = vld [vmem:[#allocation139_spill] sm:$0xff] }
 0x58b   :  { %v1869_v24 = vmul.f32 0.5, %v1865_v38 }
 0x58c   :  { %v1873_v62 = vmul.f32 0.5, %v1866_v22  ;;  %v1878_v16 = vmul.f32 0.5, %v1868_v46  ;;  %v7615_v46 = vld [vmem:[#allocation134_spill] sm:$0xff] }
 0x58d   :  { %5083 = vtanh.f32 %v1869_v24 }
 0x58e   :  { %5085 = vtanh.f32 %v1873_v62 }
 0x58f   :  { %5087 = vtanh.f32 %v1867_v54  ;;  %v7613_v54 = vld [vmem:[#allocation132_spill] sm:$0xff] }
 0x590   :  { %5089 = vtanh.f32 %v1878_v16  ;;  %v7621_v16 = vld [vmem:[#allocation140_spill] sm:$0xff] }
 0x597   :  { %v5084_v20 = vpop.eup %5083 }
 0x598   :  { %v5086_v21 = vpop.eup %5085  ;;  %v1871_v31 = vmul.f32 0.5, %v5084_v20  ;;  %v7616_v20 = vld [vmem:[#allocation135_spill] sm:$0xff] }
 0x599   :  { %v1875_v0 = vmul.f32 0.5, %v5086_v21  ;;  %v5088_v41 = vpop.eup %5087  ;;  %v7614_v21 = vld [vmem:[#allocation133_spill] sm:$0xff] }
 0x59a   :  { %v1872_v15 = vadd.f32 0.5, %v1871_v31  ;;  %v5090_v24 = vpop.eup %5089  ;;  %v7622_v31 = vld [vmem:[#allocation141_spill] sm:$0xff] }
 0x59b   :  { %v1876_v28 = vadd.f32 0.5, %v1875_v0  ;;  %v1880_v53 = vmul.f32 0.5, %v5090_v24  ;;  %v7623_v0 = vld [vmem:[#allocation142_spill] sm:$0xff] }
 0x59c   :  { %v1883_v50 = vmul.f32 %v5088_v41, %v1872_v15  ;;  %v7612_v41 = vld [vmem:[#allocation131_spill] sm:$0xff]  ;;  %v7627_v24 = vld [vmem:[#allocation146_spill] sm:$0xff] }
 0x59d   :  { %v1882_v14 = vmul.f32 %v1876_v28, %v6160_v17  ;;  %v1881_v19 = vadd.f32 0.5, %v1880_v53  ;;  %v7610_v17 = vld [vmem:[#allocation129_spill] sm:$0xff]  ;;  %v7624_v15 = vld [vmem:[#allocation143_spill] sm:$0xff]  ;;  %v7625_v28 = vld [vmem:[#allocation144_spill] sm:$0xff] }
 0x59e   :  { %v7628_v53 = vld [vmem:[#allocation147_spill] sm:$0xff] }
 0x59f   :  { %v6318_v38 = vadd.f32 %v1883_v50, %v1882_v14  ;;  %v7609_v50 = vld [vmem:[#allocation128_spill] sm:$0xff]  ;;  %v7626_v14 = vld [vmem:[#allocation145_spill] sm:$0xff] }
 0x5a1   :  { %5091 = vtanh.f32 %v6318_v38 }
 0x5ab   :  { %v5092_v22 = vpop.eup %5091 }
 0x5ac   :  { %v6321_v62 = vmul.f32 %v5092_v22, %v1881_v19  ;;  %v7629_v19 = vld [vmem:[#allocation148_spill] sm:$0xff]  ;;  %v7630_v22 = vld [vmem:[#allocation149_spill] sm:$0xff] }
 0x5ae   :  { %1952 = vmatmul.mubr.f32.vlgmr.msra.gmra.mrb[16].mxu0 %v6321_v62  ;;  %2023 = vmatmul.mubr.f32.vlgmr.msra.gmra.mrb[16].mxu1 %v6321_v62 }
 0x5af   :  { %4233 = vmatpush1.bf16.msra.mxu0 %v5553_v11  ;;  %4297 = vmatpush1.bf16.msra.mxu1 %v7298_v2 }
 0x5b0   :  { %2093 = vmatprep.mubr.f32.mxu0 %v1859_v5  ;;  %2164 = vmatprep.mubr.f32.mxu1 %v1859_v5  ;;  %v7611_v5 = vld [vmem:[#allocation130_spill] sm:$0xff] }
 0x5b1   :  { %4235 = vmatprep.subr.bf16.mxu0 %v7299_v51  ;;  %4299 = vmatprep.subr.bf16.mxu1 %v7300_v4 }
 0x5b3   :  { %4237 = vmatpush1.bf16.msra.mxu0 %v7301_v37  ;;  %4301 = vmatpush1.bf16.msra.mxu1 %v7302_v36 }
 0x5b4   :  { %4239 = vmatprep.subr.bf16.mxu0 %v7303_v58  ;;  %4303 = vmatprep.subr.bf16.mxu1 %v7304_v1 }
 0x5b7   :  { %4241 = vmatpush1.bf16.msra.mxu0 %v7305_v63  ;;  %4305 = vmatpush1.bf16.msra.mxu1 %v7306_v6 }
 0x5b8   :  { %4243 = vmatprep.subr.bf16.mxu0 %v7307_v59  ;;  %4307 = vmatprep.subr.bf16.mxu1 %v7401_v29 }
 0x5bb   :  { %4245 = vmatpush1.bf16.msra.mxu0 %v7402_v40  ;;  %4309 = vmatpush1.bf16.msra.mxu1 %v7403_v42 }
 0x5bc   :  { %4247 = vmatprep.subr.bf16.mxu0 %v7404_v8  ;;  %4311 = vmatprep.subr.bf16.mxu1 %v7405_v30 }
 0x5bf   :  { %4249 = vmatpush1.bf16.msra.mxu0 %v7406_v57  ;;  %4313 = vmatpush1.bf16.msra.mxu1 %v7407_v49 }
 0x5c0   :  { %4251 = vmatprep.subr.bf16.mxu0 %v7408_v27  ;;  %4315 = vmatprep.subr.bf16.mxu1 %v7409_v33 }
 0x5c3   :  { %4253 = vmatpush1.bf16.msra.mxu0 %v7410_v45  ;;  %4317 = vmatpush1.bf16.msra.mxu1 %v7411_v12 }
 0x5c4   :  { %4255 = vmatprep.subr.bf16.mxu0 %v7505_v18  ;;  %4319 = vmatprep.subr.bf16.mxu1 %v7506_v3 }
 0x5c7   :  { %4257 = vmatpush1.bf16.msra.mxu0 %v7507_v13  ;;  %4321 = vmatpush1.bf16.msra.mxu1 %v7508_v10 }
 0x5c8   :  { %4259 = vmatprep.subr.bf16.mxu0 %v7509_v55  ;;  %4323 = vmatprep.subr.bf16.mxu1 %v7510_v47 }
 0x5cb   :  { %4261 = vmatpush1.bf16.msra.mxu0 %v7418_v56  ;;  %4325 = vmatpush1.bf16.msra.mxu1 %v7419_v25 }
 0x5cc   :  { %4263 = vmatprep.subr.bf16.mxu0 %v7420_v61  ;;  %4327 = vmatprep.subr.bf16.mxu1 %v7421_v9 }
 0x5cf   :  { %4265 = vmatpush1.bf16.msra.mxu0 %v7422_v35  ;;  %4329 = vmatpush1.bf16.msra.mxu1 %v7423_v60 }
 0x5d0   :  { %4267 = vmatprep.subr.bf16.mxu0 %v7424_v34  ;;  %4331 = vmatprep.subr.bf16.mxu1 %v7425_v26 }
 0x5d3   :  { %4269 = vmatpush1.bf16.msra.mxu0 %v7426_v48  ;;  %4333 = vmatpush1.bf16.msra.mxu1 %v7427_v32 }
 0x5d4   :  { %4271 = vmatprep.subr.bf16.mxu0 %v7428_v44  ;;  %4335 = vmatprep.subr.bf16.mxu1 %v7609_v50 }
 0x5d7   :  { %4273 = vmatpush1.bf16.msra.mxu0 %v7610_v17  ;;  %4337 = vmatpush1.bf16.msra.mxu1 %v7611_v5  ;;  %v7712_v17 = vld [vmem:[#allocation86_spill] sm:$0xff] }
 0x5d8   :  { %4275 = vmatprep.subr.bf16.mxu0 %v7612_v41  ;;  %4339 = vmatprep.subr.bf16.mxu1 %v7613_v54 }
 0x5db   :  { %4277 = vmatpush1.bf16.msra.mxu0 %v7614_v21  ;;  %4341 = vmatpush1.bf16.msra.mxu1 %v7615_v46 }
 0x5dc   :  { %4279 = vmatprep.subr.bf16.mxu0 %v7616_v20  ;;  %4343 = vmatprep.subr.bf16.mxu1 %v7617_v52 }
 0x5df   :  { %4281 = vmatpush1.bf16.msra.mxu0 %v7618_v39  ;;  %4345 = vmatpush1.bf16.msra.mxu1 %v7619_v7  ;;  %v7699_v39 = vld [vmem:[#allocation78_spill] sm:$0xff] }
 0x5e0   :  { %4283 = vmatprep.subr.bf16.mxu0 %v7620_v23  ;;  %4347 = vmatprep.subr.bf16.mxu1 %v7621_v16  ;;  %v7631_v23 = vld [vmem:[#allocation150_spill] sm:$0xff]  ;;  %v7632_v16 = vld [vmem:[#allocation12_spill] sm:$0xff] }
 0x5e3   :  { %4285 = vmatpush1.bf16.msra.mxu0 %v7622_v31  ;;  %4349 = vmatpush1.bf16.msra.mxu1 %v7623_v0  ;;  %v7633_v31 = vld [vmem:[#allocation13_spill] sm:$0xff]  ;;  %v7698_v0 = vld [vmem:[#allocation11_spill] sm:$0xff] }
 0x5e4   :  { %4287 = vmatprep.subr.bf16.mxu0 %v7624_v15  ;;  %4351 = vmatprep.subr.bf16.mxu1 %v7625_v28  ;;  %v7634_v28 = vld [vmem:[#allocation14_spill] sm:$0xff]  ;;  %v7643_v15 = vld [vmem:[#allocation23_spill] sm:$0xff] }
 0x5e7   :  { %4289 = vmatpush1.bf16.msra.mxu0 %v7626_v14  ;;  %4353 = vmatpush1.bf16.msra.mxu1 %v7627_v24  ;;  %v7635_v14 = vld [vmem:[#allocation15_spill] sm:$0xff]  ;;  %v7636_v24 = vld [vmem:[#allocation16_spill] sm:$0xff] }
 0x5e8   :  { %4291 = vmatprep.subr.bf16.mxu0 %v7628_v53  ;;  %4355 = vmatprep.subr.bf16.mxu1 %v7629_v19  ;;  %v7637_v53 = vld [vmem:[#allocation17_spill] sm:$0xff]  ;;  %v7638_v19 = vld [vmem:[#allocation18_spill] sm:$0xff] }
 0x5eb   :  { %4293 = vmatpush1.bf16.msra.mxu0 %v7630_v22  ;;  %4357 = vmatpush1.bf16.msra.mxu1 %v7631_v23  ;;  %v7639_v22 = vld [vmem:[#allocation19_spill] sm:$0xff]  ;;  %v7640_v23 = vld [vmem:[#allocation20_spill] sm:$0xff] }
 0x5ec   :  { %4359 = vmatprep.subr.bf16.mxu0 %v7632_v16  ;;  %4423 = vmatprep.subr.bf16.mxu1 %v7633_v31  ;;  %v7641_v16 = vld [vmem:[#allocation21_spill] sm:$0xff]  ;;  %v7642_v31 = vld [vmem:[#allocation22_spill] sm:$0xff] }
 0x5ee   :  { %2094 = vmatmul.mubr.f32.vlgmr.msra.gmra.mrb[18].mxu0 %v6321_v62  ;;  %2165 = vmatmul.mubr.f32.vlgmr.msra.gmra.mrb[18].mxu1 %v6321_v62  ;;  %v7644_v62 = vld [vmem:[#allocation24_spill] sm:$0xff] }
 0x5ef   :  { %4361 = vmatpush1.bf16.msra.mxu0 %v7634_v28  ;;  %4425 = vmatpush1.bf16.msra.mxu1 %v7635_v14  ;;  %v7645_v28 = vld [vmem:[#allocation25_spill] sm:$0xff]  ;;  %v7646_v14 = vld [vmem:[#allocation26_spill] sm:$0xff] }
 0x5f0   :  { %4363 = vmatprep.subr.bf16.mxu0 %v7636_v24  ;;  %4427 = vmatprep.subr.bf16.mxu1 %v7637_v53  ;;  %v7647_v24 = vld [vmem:[#allocation27_spill] sm:$0xff]  ;;  %v7648_v53 = vld [vmem:[#allocation28_spill] sm:$0xff] }
 0x5f3   :  { %4365 = vmatpush1.bf16.msra.mxu0 %v7638_v19  ;;  %4429 = vmatpush1.bf16.msra.mxu1 %v7639_v22  ;;  %v7649_v19 = vld [vmem:[#allocation29_spill] sm:$0xff]  ;;  %v7650_v22 = vld [vmem:[#allocation30_spill] sm:$0xff] }
 0x5f4   :  { %4367 = vmatprep.subr.bf16.mxu0 %v7640_v23  ;;  %4431 = vmatprep.subr.bf16.mxu1 %v7641_v16  ;;  %v7651_v23 = vld [vmem:[#allocation31_spill] sm:$0xff]  ;;  %v7652_v16 = vld [vmem:[#allocation32_spill] sm:$0xff] }
 0x5f7   :  { %4369 = vmatpush1.bf16.msra.mxu0 %v7642_v31  ;;  %4433 = vmatpush1.bf16.msra.mxu1 %v7643_v15  ;;  %v7653_v31 = vld [vmem:[#allocation33_spill] sm:$0xff]  ;;  %v7654_v15 = vld [vmem:[#allocation34_spill] sm:$0xff] }
 0x5f8   :  { %4371 = vmatprep.subr.bf16.mxu0 %v7644_v62  ;;  %4435 = vmatprep.subr.bf16.mxu1 %v7645_v28  ;;  %v7655_v62 = vld [vmem:[#allocation35_spill] sm:$0xff]  ;;  %v7656_v28 = vld [vmem:[#allocation36_spill] sm:$0xff] }
 0x5fb   :  { %4373 = vmatpush1.bf16.msra.mxu0 %v7646_v14  ;;  %4437 = vmatpush1.bf16.msra.mxu1 %v7647_v24  ;;  %v7657_v14 = vld [vmem:[#allocation37_spill] sm:$0xff]  ;;  %v7658_v24 = vld [vmem:[#allocation38_spill] sm:$0xff] }
 0x5fc   :  { %4375 = vmatprep.subr.bf16.mxu0 %v7648_v53  ;;  %4439 = vmatprep.subr.bf16.mxu1 %v7649_v19  ;;  %v7659_v53 = vld [vmem:[#allocation39_spill] sm:$0xff]  ;;  %v7660_v19 = vld [vmem:[#allocation40_spill] sm:$0xff] }
 0x5ff   :  { %4377 = vmatpush1.bf16.msra.mxu0 %v7650_v22  ;;  %4441 = vmatpush1.bf16.msra.mxu1 %v7651_v23  ;;  %v7661_v22 = vld [vmem:[#allocation41_spill] sm:$0xff]  ;;  %v7662_v23 = vld [vmem:[#allocation42_spill] sm:$0xff] }
 0x600   :  { %4379 = vmatprep.subr.bf16.mxu0 %v7652_v16  ;;  %4443 = vmatprep.subr.bf16.mxu1 %v7653_v31  ;;  %v7663_v16 = vld [vmem:[#allocation43_spill] sm:$0xff]  ;;  %v7664_v31 = vld [vmem:[#allocation44_spill] sm:$0xff] }
 0x603   :  { %4381 = vmatpush1.bf16.msra.mxu0 %v7654_v15  ;;  %4445 = vmatpush1.bf16.msra.mxu1 %v7655_v62  ;;  %v7665_v15 = vld [vmem:[#allocation45_spill] sm:$0xff]  ;;  %v7666_v62 = vld [vmem:[#allocation46_spill] sm:$0xff] }
 0x604   :  { %4383 = vmatprep.subr.bf16.mxu0 %v7656_v28  ;;  %4447 = vmatprep.subr.bf16.mxu1 %v7657_v14  ;;  %v7667_v28 = vld [vmem:[#allocation47_spill] sm:$0xff]  ;;  %v7668_v14 = vld [vmem:[#allocation48_spill] sm:$0xff] }
 0x607   :  { %4385 = vmatpush1.bf16.msra.mxu0 %v7658_v24  ;;  %4449 = vmatpush1.bf16.msra.mxu1 %v7659_v53  ;;  %v7669_v24 = vld [vmem:[#allocation49_spill] sm:$0xff]  ;;  %v7670_v53 = vld [vmem:[#allocation50_spill] sm:$0xff] }
 0x608   :  { %4387 = vmatprep.subr.bf16.mxu0 %v7660_v19  ;;  %4451 = vmatprep.subr.bf16.mxu1 %v7661_v22  ;;  %v7671_v19 = vld [vmem:[#allocation51_spill] sm:$0xff]  ;;  %v7672_v22 = vld [vmem:[#allocation52_spill] sm:$0xff] }
 0x60b   :  { %4389 = vmatpush1.bf16.msra.mxu0 %v7662_v23  ;;  %4453 = vmatpush1.bf16.msra.mxu1 %v7663_v16  ;;  %v7673_v23 = vld [vmem:[#allocation53_spill] sm:$0xff]  ;;  %v7674_v16 = vld [vmem:[#allocation54_spill] sm:$0xff] }
 0x60c   :  { %4391 = vmatprep.subr.bf16.mxu0 %v7664_v31  ;;  %4455 = vmatprep.subr.bf16.mxu1 %v7665_v15  ;;  %v7675_v31 = vld [vmem:[#allocation55_spill] sm:$0xff]  ;;  %v7676_v15 = vld [vmem:[#allocation56_spill] sm:$0xff] }
 0x60f   :  { %4393 = vmatpush1.bf16.msra.mxu0 %v7666_v62  ;;  %4457 = vmatpush1.bf16.msra.mxu1 %v7667_v28  ;;  %v7677_v62 = vld [vmem:[#allocation57_spill] sm:$0xff]  ;;  %v7678_v28 = vld [vmem:[#allocation58_spill] sm:$0xff] }
 0x610   :  { %4395 = vmatprep.subr.bf16.mxu0 %v7668_v14  ;;  %4459 = vmatprep.subr.bf16.mxu1 %v7669_v24  ;;  %v7679_v14 = vld [vmem:[#allocation59_spill] sm:$0xff]  ;;  %v7680_v24 = vld [vmem:[#allocation60_spill] sm:$0xff] }
 0x613   :  { %4397 = vmatpush1.bf16.msra.mxu0 %v7670_v53  ;;  %4461 = vmatpush1.bf16.msra.mxu1 %v7671_v19  ;;  %v7681_v53 = vld [vmem:[#allocation61_spill] sm:$0xff]  ;;  %v7682_v19 = vld [vmem:[#allocation62_spill] sm:$0xff] }
 0x614   :  { %4399 = vmatprep.subr.bf16.mxu0 %v7672_v22  ;;  %4463 = vmatprep.subr.bf16.mxu1 %v7673_v23  ;;  %v7683_v22 = vld [vmem:[#allocation63_spill] sm:$0xff]  ;;  %v7684_v23 = vld [vmem:[#allocation64_spill] sm:$0xff] }
 0x617   :  { %4401 = vmatpush1.bf16.msra.mxu0 %v7674_v16  ;;  %4465 = vmatpush1.bf16.msra.mxu1 %v7675_v31  ;;  %v7685_v16 = vld [vmem:[#allocation65_spill] sm:$0xff]  ;;  %v7686_v31 = vld [vmem:[#allocation66_spill] sm:$0xff] }
 0x618   :  { %4403 = vmatprep.subr.bf16.mxu0 %v7676_v15  ;;  %4467 = vmatprep.subr.bf16.mxu1 %v7677_v62  ;;  %v7687_v15 = vld [vmem:[#allocation67_spill] sm:$0xff]  ;;  %v7688_v62 = vld [vmem:[#allocation68_spill] sm:$0xff] }
 0x61b   :  { %4405 = vmatpush1.bf16.msra.mxu0 %v7678_v28  ;;  %4469 = vmatpush1.bf16.msra.mxu1 %v7679_v14  ;;  %v7689_v28 = vld [vmem:[#allocation69_spill] sm:$0xff]  ;;  %v7690_v14 = vld [vmem:[#allocation70_spill] sm:$0xff] }
 0x61c   :  { %4407 = vmatprep.subr.bf16.mxu0 %v7680_v24  ;;  %4471 = vmatprep.subr.bf16.mxu1 %v7681_v53  ;;  %v7691_v24 = vld [vmem:[#allocation71_spill] sm:$0xff]  ;;  %v7692_v53 = vld [vmem:[#allocation72_spill] sm:$0xff] }
 0x61f   :  { %4409 = vmatpush1.bf16.msra.mxu0 %v7682_v19  ;;  %4473 = vmatpush1.bf16.msra.mxu1 %v7683_v22  ;;  %v7693_v19 = vld [vmem:[#allocation73_spill] sm:$0xff]  ;;  %v7694_v22 = vld [vmem:[#allocation74_spill] sm:$0xff] }
 0x620   :  { %4411 = vmatprep.subr.bf16.mxu0 %v7684_v23  ;;  %4475 = vmatprep.subr.bf16.mxu1 %v7685_v16  ;;  %v7695_v23 = vld [vmem:[#allocation75_spill] sm:$0xff]  ;;  %v7696_v16 = vld [vmem:[#allocation76_spill] sm:$0xff] }
 0x623   :  { %4413 = vmatpush1.bf16.msra.mxu0 %v7686_v31  ;;  %4477 = vmatpush1.bf16.msra.mxu1 %v7687_v15  ;;  %v7697_v31 = vld [vmem:[#allocation77_spill] sm:$0xff] }
 0x624   :  { %4415 = vmatprep.subr.bf16.mxu0 %v7688_v62  ;;  %4479 = vmatprep.subr.bf16.mxu1 %v7689_v28 }
 0x627   :  { %4417 = vmatpush1.bf16.msra.mxu0 %v7690_v14  ;;  %4481 = vmatpush1.bf16.msra.mxu1 %v7691_v24 }
 0x628   :  { %4419 = vmatprep.subr.bf16.mxu0 %v7692_v53  ;;  %4483 = vmatprep.subr.bf16.mxu1 %v7693_v19  ;;  %v7700_v19 = vld [vmem:[#allocation79_spill] sm:$0xff] }
 0x62b   :  { %4421 = vmatpush1.bf16.msra.mxu0 %v7694_v22  ;;  %4485 = vmatpush1.bf16.msra.mxu1 %v7695_v23  ;;  %v7701_v23 = vld [vmem:[#allocation151_spill] sm:$0xff] }
 0x62c   :  { %4487 = vmatprep.subr.bf16.mxu0 %v7696_v16  ;;  %4551 = vmatprep.subr.bf16.mxu1 %v7697_v31 }
 0x681   :  { %v1953_v15 = vpop.f32.mrb[16].mxu0  ;;  %v2024_v62 = vpop.f32.mrb[16].mxu1 }
 0x682   :  { %v2171_v28 = vadd.f32 %v1953_v15, %v7698_v0  ;;  %v1955_v7 = vpop.f32.mrb[17].mxu0  ;;  %v2026_v14 = vpop.f32.mrb[17].mxu1  ;;  %v2173_v20 = vadd.f32 %v2024_v62, %v7700_v19  ;;  %v7711_v19 = vld [vmem:[#allocation87_spill] sm:$0xff] }
 0x683   :  { %v2172_v24 = vadd.f32 %v1955_v7, %v7699_v39  ;;  %v2174_v22 = vadd.f32 %v2026_v14, %v7701_v23  ;;  %v7702_v7 = vld [vmem:[#allocation90_spill] sm:$0xff] }
 0x684   :  { %v2175_v52 = vmul.f32 0.5, %v2171_v28 }
 0x685   :  { %v2179_v53 = vmul.f32 0.5, %v2172_v24  ;;  %v2184_v16 = vmul.f32 0.5, %v2174_v22 }
 0x686   :  { %5093 = vtanh.f32 %v2175_v52 }
 0x687   :  { %5095 = vtanh.f32 %v2179_v53 }
 0x688   :  { %5097 = vtanh.f32 %v2173_v20 }
 0x689   :  { %5099 = vtanh.f32 %v2184_v16  ;;  %v7705_v16 = vld [vmem:[#allocation91_spill] sm:$0xff] }
 0x690   :  { %v5094_v46 = vpop.eup %5093 }
 0x691   :  { %v5096_v31 = vpop.eup %5095  ;;  %v2177_v21 = vmul.f32 0.5, %v5094_v46  ;;  %v7704_v46 = vld [vmem:[#allocation10_spill] sm:$0xff] }
 0x692   :  { %v2181_v54 = vmul.f32 0.5, %v5096_v31  ;;  %v5098_v0 = vpop.eup %5097  ;;  %v99_v31 = vsub.s32 6, %v7704_v46 }
 0x693   :  { %v2178_v15 = vadd.f32 0.5, %v2177_v21  ;;  %v5100_v52 = vpop.eup %5099 }
 0x694   :  { %v2182_v41 = vadd.f32 0.5, %v2181_v54  ;;  %v2186_v20 = vmul.f32 0.5, %v5100_v52  ;;  %v100_v21 = vrot.slane %v7705_v16, %v99_v31  ;;  %v96_v54 = vpop.permute.xlu1 %95  ;;  %v7710_v52 = vld [vmem:[#allocation85_spill] sm:$0xff] }
 0x695   :  { %v2189_v5 = vmul.f32 %v5098_v0, %v2178_v15  ;;  %v7706_v0 = vld [vmem:[#allocation80_spill] sm:$0xff]  ;;  %v156_v31 = vmul.f32 %v7712_v17, %v96_v54 }
 0x696   :  { %v2188_v28 = vmul.f32 %v2182_v41, %v7702_v7  ;;  %v2187_v53 = vadd.f32 0.5, %v2186_v20  ;;  %102 = vbcast.lane.b32.xlu0 %v100_v21, 256  ;;  %v153_v62 = vmul.f32 %v7706_v0, %v96_v54  ;;  %v7707_v41 = vld [vmem:[#allocation81_spill] sm:$0xff]  ;;  %v7708_v15 = vld [vmem:[#allocation84_spill] sm:$0xff] }
 0x698   :  { %v6460_v24 = vadd.f32 %v2189_v5, %v2188_v28  ;;  %v154_v5 = vmul.f32 %v7707_v41, %v96_v54  ;;  %v207_v7 = vadd.f32 %v7708_v15, %v153_v62  ;;  %v7709_v28 = vld [vmem:[#allocation83_spill] sm:$0xff]  ;;  %v210_v62 = vadd.f32 %v7296_v43, %v156_v31  ;;  %v7722_v31 = vld [vmem:[#allocation137_spill] sm:$0xff] }
 0x69a   :  { %7703 = vst [vmem:[#allocation92_spill] sm:$0xff] %v6460_v24  ;;  %5101 = vtanh.f32 %v6460_v24  ;;  %v155_v24 = vmul.f32 %v7709_v28, %v96_v54  ;;  %v208_v20 = vadd.f32 %v7710_v52, %v154_v5 }
 0x69c   :  { %v209_v39 = vadd.f32 %v7711_v19, %v155_v24 }
 0x6a4   :  { %v5102_v14 = vpop.eup %5101 }
 0x6a5   :  { %v2192_v22 = vmul.f32 %v5102_v14, %v2187_v53 }
 0x6a7   :  { %2284 = vmatprep.mubr.f32.mxu0 %v2192_v22  ;;  %2355 = vmatprep.mubr.f32.mxu1 %v2192_v22 }
 0x6c1   :  { %v2095_v23 = vpop.f32.mrb[18].mxu0  ;;  %v2166_v53 = vpop.f32.mrb[18].mxu1 }
 0x6c2   :  { %v2198_v14 = vadd.f32 %v2095_v23, %v207_v7  ;;  %v2097_v46 = vpop.f32.mrb[19].mxu0  ;;  %v2168_v21 = vpop.f32.mrb[19].mxu1  ;;  %v2200_v41 = vadd.f32 %v2166_v53, %v209_v39  ;;  %v7720_v53 = vld [vmem:[#allocation135_spill] sm:$0xff] }
 0x6c3   :  { %v2199_v16 = vadd.f32 %v2097_v46, %v208_v20  ;;  %v2201_v28 = vadd.f32 %v2168_v21, %v210_v62  ;;  %v7719_v20 = vld [vmem:[#allocation134_spill] sm:$0xff]  ;;  %v7724_v62 = vld [vmem:[#allocation139_spill] sm:$0xff] }
 0x6c4   :  { %v2202_v50 = vmul.f32 0.5, %v2198_v14  ;;  %v7721_v14 = vld [vmem:[#allocation136_spill] sm:$0xff]  ;;  %v7723_v21 = vld [vmem:[#allocation138_spill] sm:$0xff] }
 0x6c5   :  { %v2206_v0 = vmul.f32 0.5, %v2199_v16  ;;  %v2211_v5 = vmul.f32 0.5, %v2201_v28 }
 0x6c6   :  { %5103 = vtanh.f32 %v2202_v50 }
 0x6c7   :  { %5105 = vtanh.f32 %v2206_v0 }
 0x6c8   :  { %5107 = vtanh.f32 %v2200_v41 }
 0x6c9   :  { %5109 = vtanh.f32 %v2211_v5  ;;  %v7725_v5 = vld [vmem:[#allocation140_spill] sm:$0xff] }
 0x6d0   :  { %v5104_v52 = vpop.eup %5103 }
 0x6d1   :  { %v5106_v15 = vpop.eup %5105  ;;  %v2204_v23 = vmul.f32 0.5, %v5104_v52  ;;  %v7718_v52 = vld [vmem:[#allocation133_spill] sm:$0xff] }
 0x6d2   :  { %v2208_v7 = vmul.f32 0.5, %v5106_v15  ;;  %v5108_v19 = vpop.eup %5107  ;;  %v7717_v15 = vld [vmem:[#allocation132_spill] sm:$0xff] }
 0x6d3   :  { %v2205_v24 = vadd.f32 0.5, %v2204_v23  ;;  %v5110_v50 = vpop.eup %5109  ;;  %v7726_v23 = vld [vmem:[#allocation141_spill] sm:$0xff] }
 0x6d4   :  { %v2209_v54 = vadd.f32 0.5, %v2208_v7  ;;  %v2213_v39 = vmul.f32 0.5, %v5110_v50  ;;  %v7727_v7 = vld [vmem:[#allocation142_spill] sm:$0xff] }
 0x6d5   :  { %v2216_v17 = vmul.f32 %v5108_v19, %v2205_v24  ;;  %v7715_v19 = vld [vmem:[#allocation130_spill] sm:$0xff]  ;;  %v7728_v24 = vld [vmem:[#allocation143_spill] sm:$0xff] }
 0x6d6   :  { %v2215_v46 = vmul.f32 %v2209_v54, %v6318_v38  ;;  %v2214_v0 = vadd.f32 0.5, %v2213_v39  ;;  %v7713_v38 = vld [vmem:[#allocation128_spill] sm:$0xff]  ;;  %v7731_v50 = vld [vmem:[#allocation146_spill] sm:$0xff]  ;;  %v7732_v39 = vld [vmem:[#allocation147_spill] sm:$0xff] }
 0x6d7   :  { %v7729_v54 = vld [vmem:[#allocation144_spill] sm:$0xff] }
 0x6d8   :  { %v6474_v16 = vadd.f32 %v2216_v17, %v2215_v46  ;;  %v7714_v17 = vld [vmem:[#allocation129_spill] sm:$0xff] }
 0x6d9   :  { %v7730_v46 = vld [vmem:[#allocation145_spill] sm:$0xff] }
 0x6da   :  { %5111 = vtanh.f32 %v6474_v16 }
 0x6e4   :  { %v5112_v41 = vpop.eup %5111 }
 0x6e5   :  { %v6477_v28 = vmul.f32 %v5112_v41, %v2214_v0  ;;  %v7733_v0 = vld [vmem:[#allocation148_spill] sm:$0xff]  ;;  %v7734_v41 = vld [vmem:[#allocation149_spill] sm:$0xff] }
 0x6e7   :  { %2285 = vmatmul.mubr.f32.vlgmr.msra.gmra.mrb[20].mxu0 %v6477_v28  ;;  %2356 = vmatmul.mubr.f32.vlgmr.msra.gmra.mrb[20].mxu1 %v6477_v28 }
 0x6e8   :  { %4489 = vmatpush1.bf16.msra.mxu0 %v5553_v11  ;;  %4553 = vmatpush1.bf16.msra.mxu1 %v7298_v2 }
 0x6e9   :  { %2426 = vmatprep.mubr.f32.mxu0 %v2192_v22  ;;  %2497 = vmatprep.mubr.f32.mxu1 %v2192_v22  ;;  %v7716_v22 = vld [vmem:[#allocation131_spill] sm:$0xff] }
 0x6ea   :  { %4491 = vmatprep.subr.bf16.mxu0 %v7299_v51  ;;  %4555 = vmatprep.subr.bf16.mxu1 %v7300_v4 }
 0x6ec   :  { %4493 = vmatpush1.bf16.msra.mxu0 %v7301_v37  ;;  %4557 = vmatpush1.bf16.msra.mxu1 %v7302_v36 }
 0x6ed   :  { %4495 = vmatprep.subr.bf16.mxu0 %v7303_v58  ;;  %4559 = vmatprep.subr.bf16.mxu1 %v7304_v1 }
 0x6f0   :  { %4497 = vmatpush1.bf16.msra.mxu0 %v7305_v63  ;;  %4561 = vmatpush1.bf16.msra.mxu1 %v7306_v6 }
 0x6f1   :  { %4499 = vmatprep.subr.bf16.mxu0 %v7307_v59  ;;  %4563 = vmatprep.subr.bf16.mxu1 %v7401_v29 }
 0x6f4   :  { %4501 = vmatpush1.bf16.msra.mxu0 %v7402_v40  ;;  %4565 = vmatpush1.bf16.msra.mxu1 %v7403_v42 }
 0x6f5   :  { %4503 = vmatprep.subr.bf16.mxu0 %v7404_v8  ;;  %4567 = vmatprep.subr.bf16.mxu1 %v7405_v30 }
 0x6f8   :  { %4505 = vmatpush1.bf16.msra.mxu0 %v7406_v57  ;;  %4569 = vmatpush1.bf16.msra.mxu1 %v7407_v49 }
 0x6f9   :  { %4507 = vmatprep.subr.bf16.mxu0 %v7408_v27  ;;  %4571 = vmatprep.subr.bf16.mxu1 %v7409_v33 }
 0x6fc   :  { %4509 = vmatpush1.bf16.msra.mxu0 %v7410_v45  ;;  %4573 = vmatpush1.bf16.msra.mxu1 %v7411_v12 }
 0x6fd   :  { %4511 = vmatprep.subr.bf16.mxu0 %v7505_v18  ;;  %4575 = vmatprep.subr.bf16.mxu1 %v7506_v3 }
 0x700   :  { %4513 = vmatpush1.bf16.msra.mxu0 %v7507_v13  ;;  %4577 = vmatpush1.bf16.msra.mxu1 %v7508_v10 }
 0x701   :  { %4515 = vmatprep.subr.bf16.mxu0 %v7509_v55  ;;  %4579 = vmatprep.subr.bf16.mxu1 %v7510_v47 }
 0x704   :  { %4517 = vmatpush1.bf16.msra.mxu0 %v7418_v56  ;;  %4581 = vmatpush1.bf16.msra.mxu1 %v7419_v25 }
 0x705   :  { %4519 = vmatprep.subr.bf16.mxu0 %v7420_v61  ;;  %4583 = vmatprep.subr.bf16.mxu1 %v7421_v9 }
 0x708   :  { %4521 = vmatpush1.bf16.msra.mxu0 %v7422_v35  ;;  %4585 = vmatpush1.bf16.msra.mxu1 %v7423_v60 }
 0x709   :  { %4523 = vmatprep.subr.bf16.mxu0 %v7424_v34  ;;  %4587 = vmatprep.subr.bf16.mxu1 %v7425_v26 }
 0x70c   :  { %4525 = vmatpush1.bf16.msra.mxu0 %v7426_v48  ;;  %4589 = vmatpush1.bf16.msra.mxu1 %v7427_v32 }
 0x70d   :  { %4527 = vmatprep.subr.bf16.mxu0 %v7428_v44  ;;  %4591 = vmatprep.subr.bf16.mxu1 %v7713_v38 }
 0x710   :  { %4529 = vmatpush1.bf16.msra.mxu0 %v7714_v17  ;;  %4593 = vmatpush1.bf16.msra.mxu1 %v7715_v19  ;;  %v7816_v17 = vld [vmem:[#allocation86_spill] sm:$0xff] }
 0x711   :  { %4531 = vmatprep.subr.bf16.mxu0 %v7716_v22  ;;  %4595 = vmatprep.subr.bf16.mxu1 %v7717_v15 }
 0x714   :  { %4533 = vmatpush1.bf16.msra.mxu0 %v7718_v52  ;;  %4597 = vmatpush1.bf16.msra.mxu1 %v7719_v20 }
 0x715   :  { %4535 = vmatprep.subr.bf16.mxu0 %v7720_v53  ;;  %4599 = vmatprep.subr.bf16.mxu1 %v7721_v14 }
 0x718   :  { %4537 = vmatpush1.bf16.msra.mxu0 %v7722_v31  ;;  %4601 = vmatpush1.bf16.msra.mxu1 %v7723_v21  ;;  %v7803_v31 = vld [vmem:[#allocation78_spill] sm:$0xff] }
 0x719   :  { %4539 = vmatprep.subr.bf16.mxu0 %v7724_v62  ;;  %4603 = vmatprep.subr.bf16.mxu1 %v7725_v5  ;;  %v7735_v62 = vld [vmem:[#allocation150_spill] sm:$0xff]  ;;  %v7736_v5 = vld [vmem:[#allocation12_spill] sm:$0xff] }
 0x71c   :  { %4541 = vmatpush1.bf16.msra.mxu0 %v7726_v23  ;;  %4605 = vmatpush1.bf16.msra.mxu1 %v7727_v7  ;;  %v7737_v23 = vld [vmem:[#allocation13_spill] sm:$0xff]  ;;  %v7802_v7 = vld [vmem:[#allocation11_spill] sm:$0xff] }
 0x71d   :  { %4543 = vmatprep.subr.bf16.mxu0 %v7728_v24  ;;  %4607 = vmatprep.subr.bf16.mxu1 %v7729_v54  ;;  %v7738_v54 = vld [vmem:[#allocation14_spill] sm:$0xff]  ;;  %v7747_v24 = vld [vmem:[#allocation23_spill] sm:$0xff] }
 0x720   :  { %4545 = vmatpush1.bf16.msra.mxu0 %v7730_v46  ;;  %4609 = vmatpush1.bf16.msra.mxu1 %v7731_v50  ;;  %v7739_v46 = vld [vmem:[#allocation15_spill] sm:$0xff]  ;;  %v7740_v50 = vld [vmem:[#allocation16_spill] sm:$0xff] }
 0x721   :  { %4547 = vmatprep.subr.bf16.mxu0 %v7732_v39  ;;  %4611 = vmatprep.subr.bf16.mxu1 %v7733_v0  ;;  %v7741_v39 = vld [vmem:[#allocation17_spill] sm:$0xff]  ;;  %v7742_v0 = vld [vmem:[#allocation18_spill] sm:$0xff] }
 0x724   :  { %4549 = vmatpush1.bf16.msra.mxu0 %v7734_v41  ;;  %4613 = vmatpush1.bf16.msra.mxu1 %v7735_v62  ;;  %v7743_v41 = vld [vmem:[#allocation19_spill] sm:$0xff]  ;;  %v7744_v62 = vld [vmem:[#allocation20_spill] sm:$0xff] }
 0x725   :  { %4615 = vmatprep.subr.bf16.mxu0 %v7736_v5  ;;  %4679 = vmatprep.subr.bf16.mxu1 %v7737_v23  ;;  %v7745_v5 = vld [vmem:[#allocation21_spill] sm:$0xff]  ;;  %v7746_v23 = vld [vmem:[#allocation22_spill] sm:$0xff] }
 0x727   :  { %2427 = vmatmul.mubr.f32.vlgmr.msra.gmra.mrb[22].mxu0 %v6477_v28  ;;  %2498 = vmatmul.mubr.f32.vlgmr.msra.gmra.mrb[22].mxu1 %v6477_v28  ;;  %v7748_v28 = vld [vmem:[#allocation24_spill] sm:$0xff] }
 0x728   :  { %4617 = vmatpush1.bf16.msra.mxu0 %v7738_v54  ;;  %4681 = vmatpush1.bf16.msra.mxu1 %v7739_v46  ;;  %v7749_v54 = vld [vmem:[#allocation25_spill] sm:$0xff]  ;;  %v7750_v46 = vld [vmem:[#allocation26_spill] sm:$0xff] }
 0x729   :  { %4619 = vmatprep.subr.bf16.mxu0 %v7740_v50  ;;  %4683 = vmatprep.subr.bf16.mxu1 %v7741_v39  ;;  %v7751_v50 = vld [vmem:[#allocation27_spill] sm:$0xff]  ;;  %v7752_v39 = vld [vmem:[#allocation28_spill] sm:$0xff] }
 0x72c   :  { %4621 = vmatpush1.bf16.msra.mxu0 %v7742_v0  ;;  %4685 = vmatpush1.bf16.msra.mxu1 %v7743_v41  ;;  %v7753_v0 = vld [vmem:[#allocation29_spill] sm:$0xff]  ;;  %v7754_v41 = vld [vmem:[#allocation30_spill] sm:$0xff] }
 0x72d   :  { %4623 = vmatprep.subr.bf16.mxu0 %v7744_v62  ;;  %4687 = vmatprep.subr.bf16.mxu1 %v7745_v5  ;;  %v7755_v62 = vld [vmem:[#allocation31_spill] sm:$0xff]  ;;  %v7756_v5 = vld [vmem:[#allocation32_spill] sm:$0xff] }
 0x730   :  { %4625 = vmatpush1.bf16.msra.mxu0 %v7746_v23  ;;  %4689 = vmatpush1.bf16.msra.mxu1 %v7747_v24  ;;  %v7757_v23 = vld [vmem:[#allocation33_spill] sm:$0xff]  ;;  %v7758_v24 = vld [vmem:[#allocation34_spill] sm:$0xff] }
 0x731   :  { %4627 = vmatprep.subr.bf16.mxu0 %v7748_v28  ;;  %4691 = vmatprep.subr.bf16.mxu1 %v7749_v54  ;;  %v7759_v28 = vld [vmem:[#allocation35_spill] sm:$0xff]  ;;  %v7760_v54 = vld [vmem:[#allocation36_spill] sm:$0xff] }
 0x734   :  { %4629 = vmatpush1.bf16.msra.mxu0 %v7750_v46  ;;  %4693 = vmatpush1.bf16.msra.mxu1 %v7751_v50  ;;  %v7761_v46 = vld [vmem:[#allocation37_spill] sm:$0xff]  ;;  %v7762_v50 = vld [vmem:[#allocation38_spill] sm:$0xff] }
 0x735   :  { %4631 = vmatprep.subr.bf16.mxu0 %v7752_v39  ;;  %4695 = vmatprep.subr.bf16.mxu1 %v7753_v0  ;;  %v7763_v39 = vld [vmem:[#allocation39_spill] sm:$0xff]  ;;  %v7764_v0 = vld [vmem:[#allocation40_spill] sm:$0xff] }
 0x738   :  { %4633 = vmatpush1.bf16.msra.mxu0 %v7754_v41  ;;  %4697 = vmatpush1.bf16.msra.mxu1 %v7755_v62  ;;  %v7765_v41 = vld [vmem:[#allocation41_spill] sm:$0xff]  ;;  %v7766_v62 = vld [vmem:[#allocation42_spill] sm:$0xff] }
 0x739   :  { %4635 = vmatprep.subr.bf16.mxu0 %v7756_v5  ;;  %4699 = vmatprep.subr.bf16.mxu1 %v7757_v23  ;;  %v7767_v5 = vld [vmem:[#allocation43_spill] sm:$0xff]  ;;  %v7768_v23 = vld [vmem:[#allocation44_spill] sm:$0xff] }
 0x73c   :  { %4637 = vmatpush1.bf16.msra.mxu0 %v7758_v24  ;;  %4701 = vmatpush1.bf16.msra.mxu1 %v7759_v28  ;;  %v7769_v24 = vld [vmem:[#allocation45_spill] sm:$0xff]  ;;  %v7770_v28 = vld [vmem:[#allocation46_spill] sm:$0xff] }
 0x73d   :  { %4639 = vmatprep.subr.bf16.mxu0 %v7760_v54  ;;  %4703 = vmatprep.subr.bf16.mxu1 %v7761_v46  ;;  %v7771_v54 = vld [vmem:[#allocation47_spill] sm:$0xff]  ;;  %v7772_v46 = vld [vmem:[#allocation48_spill] sm:$0xff] }
 0x740   :  { %4641 = vmatpush1.bf16.msra.mxu0 %v7762_v50  ;;  %4705 = vmatpush1.bf16.msra.mxu1 %v7763_v39  ;;  %v7773_v50 = vld [vmem:[#allocation49_spill] sm:$0xff]  ;;  %v7774_v39 = vld [vmem:[#allocation50_spill] sm:$0xff] }
 0x741   :  { %4643 = vmatprep.subr.bf16.mxu0 %v7764_v0  ;;  %4707 = vmatprep.subr.bf16.mxu1 %v7765_v41  ;;  %v7775_v0 = vld [vmem:[#allocation51_spill] sm:$0xff]  ;;  %v7776_v41 = vld [vmem:[#allocation52_spill] sm:$0xff] }
 0x744   :  { %4645 = vmatpush1.bf16.msra.mxu0 %v7766_v62  ;;  %4709 = vmatpush1.bf16.msra.mxu1 %v7767_v5  ;;  %v7777_v62 = vld [vmem:[#allocation53_spill] sm:$0xff]  ;;  %v7778_v5 = vld [vmem:[#allocation54_spill] sm:$0xff] }
 0x745   :  { %4647 = vmatprep.subr.bf16.mxu0 %v7768_v23  ;;  %4711 = vmatprep.subr.bf16.mxu1 %v7769_v24  ;;  %v7779_v23 = vld [vmem:[#allocation55_spill] sm:$0xff]  ;;  %v7780_v24 = vld [vmem:[#allocation56_spill] sm:$0xff] }
 0x748   :  { %4649 = vmatpush1.bf16.msra.mxu0 %v7770_v28  ;;  %4713 = vmatpush1.bf16.msra.mxu1 %v7771_v54  ;;  %v7781_v28 = vld [vmem:[#allocation57_spill] sm:$0xff]  ;;  %v7782_v54 = vld [vmem:[#allocation58_spill] sm:$0xff] }
 0x749   :  { %4651 = vmatprep.subr.bf16.mxu0 %v7772_v46  ;;  %4715 = vmatprep.subr.bf16.mxu1 %v7773_v50  ;;  %v7783_v46 = vld [vmem:[#allocation59_spill] sm:$0xff]  ;;  %v7784_v50 = vld [vmem:[#allocation60_spill] sm:$0xff] }
 0x74c   :  { %4653 = vmatpush1.bf16.msra.mxu0 %v7774_v39  ;;  %4717 = vmatpush1.bf16.msra.mxu1 %v7775_v0  ;;  %v7785_v39 = vld [vmem:[#allocation61_spill] sm:$0xff]  ;;  %v7786_v0 = vld [vmem:[#allocation62_spill] sm:$0xff] }
 0x74d   :  { %4655 = vmatprep.subr.bf16.mxu0 %v7776_v41  ;;  %4719 = vmatprep.subr.bf16.mxu1 %v7777_v62  ;;  %v7787_v41 = vld [vmem:[#allocation63_spill] sm:$0xff]  ;;  %v7788_v62 = vld [vmem:[#allocation64_spill] sm:$0xff] }
 0x750   :  { %4657 = vmatpush1.bf16.msra.mxu0 %v7778_v5  ;;  %4721 = vmatpush1.bf16.msra.mxu1 %v7779_v23  ;;  %v7789_v5 = vld [vmem:[#allocation65_spill] sm:$0xff]  ;;  %v7790_v23 = vld [vmem:[#allocation66_spill] sm:$0xff] }
 0x751   :  { %4659 = vmatprep.subr.bf16.mxu0 %v7780_v24  ;;  %4723 = vmatprep.subr.bf16.mxu1 %v7781_v28  ;;  %v7791_v24 = vld [vmem:[#allocation67_spill] sm:$0xff]  ;;  %v7792_v28 = vld [vmem:[#allocation68_spill] sm:$0xff] }
 0x754   :  { %4661 = vmatpush1.bf16.msra.mxu0 %v7782_v54  ;;  %4725 = vmatpush1.bf16.msra.mxu1 %v7783_v46  ;;  %v7793_v54 = vld [vmem:[#allocation69_spill] sm:$0xff]  ;;  %v7794_v46 = vld [vmem:[#allocation70_spill] sm:$0xff] }
 0x755   :  { %4663 = vmatprep.subr.bf16.mxu0 %v7784_v50  ;;  %4727 = vmatprep.subr.bf16.mxu1 %v7785_v39  ;;  %v7795_v50 = vld [vmem:[#allocation71_spill] sm:$0xff]  ;;  %v7796_v39 = vld [vmem:[#allocation72_spill] sm:$0xff] }
 0x758   :  { %4665 = vmatpush1.bf16.msra.mxu0 %v7786_v0  ;;  %4729 = vmatpush1.bf16.msra.mxu1 %v7787_v41  ;;  %v7797_v0 = vld [vmem:[#allocation73_spill] sm:$0xff]  ;;  %v7798_v41 = vld [vmem:[#allocation74_spill] sm:$0xff] }
 0x759   :  { %4667 = vmatprep.subr.bf16.mxu0 %v7788_v62  ;;  %4731 = vmatprep.subr.bf16.mxu1 %v7789_v5  ;;  %v7799_v62 = vld [vmem:[#allocation75_spill] sm:$0xff]  ;;  %v7800_v5 = vld [vmem:[#allocation76_spill] sm:$0xff] }
 0x75c   :  { %4669 = vmatpush1.bf16.msra.mxu0 %v7790_v23  ;;  %4733 = vmatpush1.bf16.msra.mxu1 %v7791_v24  ;;  %v7801_v23 = vld [vmem:[#allocation77_spill] sm:$0xff] }
 0x75d   :  { %4671 = vmatprep.subr.bf16.mxu0 %v7792_v28  ;;  %4735 = vmatprep.subr.bf16.mxu1 %v7793_v54 }
 0x760   :  { %4673 = vmatpush1.bf16.msra.mxu0 %v7794_v46  ;;  %4737 = vmatpush1.bf16.msra.mxu1 %v7795_v50 }
 0x761   :  { %4675 = vmatprep.subr.bf16.mxu0 %v7796_v39  ;;  %4739 = vmatprep.subr.bf16.mxu1 %v7797_v0  ;;  %v7804_v0 = vld [vmem:[#allocation79_spill] sm:$0xff] }
 0x764   :  { %4677 = vmatpush1.bf16.msra.mxu0 %v7798_v41  ;;  %4741 = vmatpush1.bf16.msra.mxu1 %v7799_v62  ;;  %v7805_v62 = vld [vmem:[#allocation151_spill] sm:$0xff] }
 0x765   :  { %4743 = vmatprep.subr.bf16.mxu0 %v7800_v5  ;;  %4807 = vmatprep.subr.bf16.mxu1 %v7801_v23 }
 0x7ba   :  { %v2286_v24 = vpop.f32.mrb[20].mxu0  ;;  %v2357_v28 = vpop.f32.mrb[20].mxu1 }
 0x7bb   :  { %v2504_v54 = vadd.f32 %v2286_v24, %v7802_v7  ;;  %v2288_v21 = vpop.f32.mrb[21].mxu0  ;;  %v2359_v46 = vpop.f32.mrb[21].mxu1  ;;  %v2506_v53 = vadd.f32 %v2357_v28, %v7804_v0  ;;  %v7815_v0 = vld [vmem:[#allocation87_spill] sm:$0xff] }
 0x7bc   :  { %v2505_v50 = vadd.f32 %v2288_v21, %v7803_v31  ;;  %v2507_v41 = vadd.f32 %v2359_v46, %v7805_v62  ;;  %v7806_v21 = vld [vmem:[#allocation92_spill] sm:$0xff] }
 0x7bd   :  { %v2508_v14 = vmul.f32 0.5, %v2504_v54 }
 0x7be   :  { %v2512_v39 = vmul.f32 0.5, %v2505_v50  ;;  %v2517_v5 = vmul.f32 0.5, %v2507_v41 }
 0x7bf   :  { %5113 = vtanh.f32 %v2508_v14 }
 0x7c0   :  { %5115 = vtanh.f32 %v2512_v39 }
 0x7c1   :  { %5117 = vtanh.f32 %v2506_v53 }
 0x7c2   :  { %5119 = vtanh.f32 %v2517_v5  ;;  %v7809_v5 = vld [vmem:[#allocation91_spill] sm:$0xff] }
 0x7c9   :  { %v5114_v20 = vpop.eup %5113 }
 0x7ca   :  { %v5116_v23 = vpop.eup %5115  ;;  %v2510_v52 = vmul.f32 0.5, %v5114_v20  ;;  %v7808_v20 = vld [vmem:[#allocation10_spill] sm:$0xff] }
 0x7cb   :  { %v2514_v15 = vmul.f32 0.5, %v5116_v23  ;;  %v5118_v7 = vpop.eup %5117  ;;  %v106_v28 = vsub.s32 7, %v7808_v20 }
 0x7cc   :  { %v2511_v24 = vadd.f32 0.5, %v2510_v52  ;;  %v5120_v14 = vpop.eup %5119 }
 0x7cd   :  { %v2515_v22 = vadd.f32 0.5, %v2514_v15  ;;  %v2519_v53 = vmul.f32 0.5, %v5120_v14  ;;  %v107_v52 = vrot.slane %v7809_v5, %v106_v28  ;;  %v103_v15 = vpop.permute.xlu0 %102  ;;  %v7814_v14 = vld [vmem:[#allocation85_spill] sm:$0xff] }
 0x7ce   :  { %v2522_v19 = vmul.f32 %v5118_v7, %v2511_v24  ;;  %v7810_v7 = vld [vmem:[#allocation80_spill] sm:$0xff]  ;;  %v160_v28 = vmul.f32 %v7816_v17, %v103_v15 }
 0x7cf   :  { %v2521_v54 = vmul.f32 %v2515_v22, %v7806_v21  ;;  %v2520_v39 = vadd.f32 0.5, %v2519_v53  ;;  %109 = vbcast.lane.b32.xlu1 %v107_v52, 256  ;;  %v157_v23 = vmul.f32 %v7810_v7, %v103_v15  ;;  %v7811_v22 = vld [vmem:[#allocation81_spill] sm:$0xff]  ;;  %v7812_v24 = vld [vmem:[#allocation84_spill] sm:$0xff] }
 0x7d1   :  { %v6616_v50 = vadd.f32 %v2522_v19, %v2521_v54  ;;  %v158_v19 = vmul.f32 %v7811_v22, %v103_v15  ;;  %v211_v21 = vadd.f32 %v7812_v24, %v157_v23  ;;  %v7813_v54 = vld [vmem:[#allocation83_spill] sm:$0xff]  ;;  %v214_v23 = vadd.f32 %v7296_v43, %v160_v28  ;;  %v7864_v28 = vld [vmem:[#allocation36_spill] sm:$0xff] }
 0x7d3   :  { %7807 = vst [vmem:[#allocation93_spill] sm:$0xff] %v6616_v50  ;;  %5121 = vtanh.f32 %v6616_v50  ;;  %v159_v50 = vmul.f32 %v7813_v54, %v103_v15  ;;  %v212_v53 = vadd.f32 %v7814_v14, %v158_v19 }
 0x7d5   :  { %v213_v31 = vadd.f32 %v7815_v0, %v159_v50 }
 0x7dd   :  { %v5122_v46 = vpop.eup %5121 }
 0x7de   :  { %v2525_v41 = vmul.f32 %v5122_v46, %v2520_v39 }
 0x7e0   :  { %2617 = vmatprep.mubr.f32.mxu0 %v2525_v41  ;;  %2688 = vmatprep.mubr.f32.mxu1 %v2525_v41 }
 0x7fa   :  { %v2428_v62 = vpop.f32.mrb[22].mxu0  ;;  %v2499_v39 = vpop.f32.mrb[22].mxu1 }
 0x7fb   :  { %v2531_v46 = vadd.f32 %v2428_v62, %v211_v21  ;;  %v2430_v20 = vpop.f32.mrb[23].mxu0  ;;  %v2501_v5 = vpop.f32.mrb[23].mxu1  ;;  %v2533_v22 = vadd.f32 %v2499_v39, %v213_v31  ;;  %v7862_v39 = vld [vmem:[#allocation34_spill] sm:$0xff] }
 0x7fc   :  { %v2532_v52 = vadd.f32 %v2430_v20, %v212_v53  ;;  %v2534_v24 = vadd.f32 %v2501_v5, %v214_v23  ;;  %v7863_v20 = vld [vmem:[#allocation35_spill] sm:$0xff]  ;;  %v7865_v5 = vld [vmem:[#allocation37_spill] sm:$0xff] }
 0x7fd   :  { %v2535_v38 = vmul.f32 0.5, %v2531_v46  ;;  %v7867_v23 = vld [vmem:[#allocation39_spill] sm:$0xff] }
 0x7fe   :  { %v2539_v7 = vmul.f32 0.5, %v2532_v52  ;;  %v2544_v19 = vmul.f32 0.5, %v2534_v24  ;;  %v7866_v52 = vld [vmem:[#allocation38_spill] sm:$0xff] }
 0x7ff   :  { %5123 = vtanh.f32 %v2535_v38 }
 0x800   :  { %5125 = vtanh.f32 %v2539_v7 }
 0x801   :  { %5127 = vtanh.f32 %v2533_v22 }
 0x802   :  { %5129 = vtanh.f32 %v2544_v19  ;;  %v7868_v19 = vld [vmem:[#allocation40_spill] sm:$0xff] }
 0x809   :  { %v5124_v14 = vpop.eup %5123 }
 0x80a   :  { %v5126_v54 = vpop.eup %5125  ;;  %v2537_v62 = vmul.f32 0.5, %v5124_v14  ;;  %v7861_v14 = vld [vmem:[#allocation33_spill] sm:$0xff] }
 0x80b   :  { %v2541_v21 = vmul.f32 0.5, %v5126_v54  ;;  %v5128_v0 = vpop.eup %5127  ;;  %v7860_v54 = vld [vmem:[#allocation32_spill] sm:$0xff] }
 0x80c   :  { %v2538_v50 = vadd.f32 0.5, %v2537_v62  ;;  %v5130_v38 = vpop.eup %5129  ;;  %v7869_v62 = vld [vmem:[#allocation41_spill] sm:$0xff] }
 0x80d   :  { %v2542_v15 = vadd.f32 0.5, %v2541_v21  ;;  %v2546_v31 = vmul.f32 0.5, %v5130_v38  ;;  %v7870_v21 = vld [vmem:[#allocation42_spill] sm:$0xff] }
 0x80e   :  { %v2549_v17 = vmul.f32 %v5128_v0, %v2538_v50  ;;  %v7858_v0 = vld [vmem:[#allocation30_spill] sm:$0xff]  ;;  %v7871_v50 = vld [vmem:[#allocation43_spill] sm:$0xff] }
 0x80f   :  { %v2548_v53 = vmul.f32 %v2542_v15, %v6474_v16  ;;  %v2547_v7 = vadd.f32 0.5, %v2546_v31  ;;  %v7856_v16 = vld [vmem:[#allocation28_spill] sm:$0xff]  ;;  %v7874_v38 = vld [vmem:[#allocation46_spill] sm:$0xff]  ;;  %v7875_v31 = vld [vmem:[#allocation47_spill] sm:$0xff] }
 0x810   :  { %v7872_v15 = vld [vmem:[#allocation44_spill] sm:$0xff] }
 0x811   :  { %v6630_v46 = vadd.f32 %v2549_v17, %v2548_v53  ;;  %v7857_v17 = vld [vmem:[#allocation29_spill] sm:$0xff] }
 0x812   :  { %v7873_v53 = vld [vmem:[#allocation45_spill] sm:$0xff] }
 0x813   :  { %5131 = vtanh.f32 %v6630_v46 }
 0x81d   :  { %v5132_v22 = vpop.eup %5131 }
 0x81e   :  { %v6633_v24 = vmul.f32 %v5132_v22, %v2547_v7  ;;  %v7876_v7 = vld [vmem:[#allocation48_spill] sm:$0xff]  ;;  %v7877_v22 = vld [vmem:[#allocation49_spill] sm:$0xff] }
 0x820   :  { %2618 = vmatmul.mubr.f32.vlgmr.msra.gmra.mrb[24].mxu0 %v6633_v24  ;;  %2689 = vmatmul.mubr.f32.vlgmr.msra.gmra.mrb[24].mxu1 %v6633_v24 }
 0x821   :  { %4745 = vmatpush1.bf16.msra.mxu0 %v5553_v11  ;;  %4809 = vmatpush1.bf16.msra.mxu1 %v7298_v2  ;;  %v7817_v11 = vld [vmem:[#allocation128_spill] sm:$0xff]  ;;  %v7818_v2 = vld [vmem:[#allocation129_spill] sm:$0xff] }
 0x822   :  { %2759 = vmatprep.mubr.f32.mxu0 %v2525_v41  ;;  %2830 = vmatprep.mubr.f32.mxu1 %v2525_v41  ;;  %v7859_v41 = vld [vmem:[#allocation31_spill] sm:$0xff] }
 0x823   :  { %4747 = vmatprep.subr.bf16.mxu0 %v7299_v51  ;;  %4811 = vmatprep.subr.bf16.mxu1 %v7300_v4  ;;  %v7819_v51 = vld [vmem:[#allocation130_spill] sm:$0xff]  ;;  %v7820_v4 = vld [vmem:[#allocation131_spill] sm:$0xff] }
 0x825   :  { %4749 = vmatpush1.bf16.msra.mxu0 %v7301_v37  ;;  %4813 = vmatpush1.bf16.msra.mxu1 %v7302_v36  ;;  %v7821_v37 = vld [vmem:[#allocation132_spill] sm:$0xff]  ;;  %v7822_v36 = vld [vmem:[#allocation133_spill] sm:$0xff] }
 0x826   :  { %4751 = vmatprep.subr.bf16.mxu0 %v7303_v58  ;;  %4815 = vmatprep.subr.bf16.mxu1 %v7304_v1  ;;  %v7823_v58 = vld [vmem:[#allocation134_spill] sm:$0xff]  ;;  %v7824_v1 = vld [vmem:[#allocation135_spill] sm:$0xff] }
 0x829   :  { %4753 = vmatpush1.bf16.msra.mxu0 %v7305_v63  ;;  %4817 = vmatpush1.bf16.msra.mxu1 %v7306_v6  ;;  %v7825_v63 = vld [vmem:[#allocation136_spill] sm:$0xff]  ;;  %v7826_v6 = vld [vmem:[#allocation137_spill] sm:$0xff] }
 0x82a   :  { %4755 = vmatprep.subr.bf16.mxu0 %v7307_v59  ;;  %4819 = vmatprep.subr.bf16.mxu1 %v7401_v29  ;;  %v7827_v59 = vld [vmem:[#allocation138_spill] sm:$0xff]  ;;  %v7828_v29 = vld [vmem:[#allocation139_spill] sm:$0xff] }
 0x82d   :  { %4757 = vmatpush1.bf16.msra.mxu0 %v7402_v40  ;;  %4821 = vmatpush1.bf16.msra.mxu1 %v7403_v42  ;;  %v7829_v40 = vld [vmem:[#allocation140_spill] sm:$0xff]  ;;  %v7830_v42 = vld [vmem:[#allocation141_spill] sm:$0xff] }
 0x82e   :  { %4759 = vmatprep.subr.bf16.mxu0 %v7404_v8  ;;  %4823 = vmatprep.subr.bf16.mxu1 %v7405_v30  ;;  %v7831_v8 = vld [vmem:[#allocation142_spill] sm:$0xff]  ;;  %v7832_v30 = vld [vmem:[#allocation143_spill] sm:$0xff] }
 0x831   :  { %4761 = vmatpush1.bf16.msra.mxu0 %v7406_v57  ;;  %4825 = vmatpush1.bf16.msra.mxu1 %v7407_v49  ;;  %v7833_v57 = vld [vmem:[#allocation144_spill] sm:$0xff]  ;;  %v7834_v49 = vld [vmem:[#allocation145_spill] sm:$0xff] }
 0x832   :  { %4763 = vmatprep.subr.bf16.mxu0 %v7408_v27  ;;  %4827 = vmatprep.subr.bf16.mxu1 %v7409_v33  ;;  %v7835_v27 = vld [vmem:[#allocation146_spill] sm:$0xff]  ;;  %v7836_v33 = vld [vmem:[#allocation147_spill] sm:$0xff] }
 0x835   :  { %4765 = vmatpush1.bf16.msra.mxu0 %v7410_v45  ;;  %4829 = vmatpush1.bf16.msra.mxu1 %v7411_v12  ;;  %v7837_v45 = vld [vmem:[#allocation148_spill] sm:$0xff]  ;;  %v7838_v12 = vld [vmem:[#allocation149_spill] sm:$0xff] }
 0x836   :  { %4767 = vmatprep.subr.bf16.mxu0 %v7505_v18  ;;  %4831 = vmatprep.subr.bf16.mxu1 %v7506_v3  ;;  %v7850_v18 = vld [vmem:[#allocation22_spill] sm:$0xff]  ;;  %v7851_v3 = vld [vmem:[#allocation23_spill] sm:$0xff] }
 0x839   :  { %4769 = vmatpush1.bf16.msra.mxu0 %v7507_v13  ;;  %4833 = vmatpush1.bf16.msra.mxu1 %v7508_v10  ;;  %v7852_v13 = vld [vmem:[#allocation24_spill] sm:$0xff]  ;;  %v7853_v10 = vld [vmem:[#allocation25_spill] sm:$0xff] }
 0x83a   :  { %4771 = vmatprep.subr.bf16.mxu0 %v7509_v55  ;;  %4835 = vmatprep.subr.bf16.mxu1 %v7510_v47  ;;  %v7854_v55 = vld [vmem:[#allocation26_spill] sm:$0xff]  ;;  %v7855_v47 = vld [vmem:[#allocation27_spill] sm:$0xff] }
 0x83d   :  { %4773 = vmatpush1.bf16.msra.mxu0 %v7418_v56  ;;  %4837 = vmatpush1.bf16.msra.mxu1 %v7419_v25  ;;  %v7845_v56 = vld [vmem:[#allocation17_spill] sm:$0xff]  ;;  %v7846_v25 = vld [vmem:[#allocation18_spill] sm:$0xff] }
 0x83e   :  { %4775 = vmatprep.subr.bf16.mxu0 %v7420_v61  ;;  %4839 = vmatprep.subr.bf16.mxu1 %v7421_v9  ;;  %v7847_v61 = vld [vmem:[#allocation19_spill] sm:$0xff]  ;;  %v7848_v9 = vld [vmem:[#allocation20_spill] sm:$0xff] }
 0x841   :  { %4777 = vmatpush1.bf16.msra.mxu0 %v7422_v35  ;;  %4841 = vmatpush1.bf16.msra.mxu1 %v7423_v60  ;;  %v7839_v60 = vld [vmem:[#allocation150_spill] sm:$0xff]  ;;  %v7849_v35 = vld [vmem:[#allocation21_spill] sm:$0xff] }
 0x842   :  { %4779 = vmatprep.subr.bf16.mxu0 %v7424_v34  ;;  %4843 = vmatprep.subr.bf16.mxu1 %v7425_v26  ;;  %v7840_v34 = vld [vmem:[#allocation12_spill] sm:$0xff]  ;;  %v7841_v26 = vld [vmem:[#allocation13_spill] sm:$0xff] }
 0x845   :  { %4781 = vmatpush1.bf16.msra.mxu0 %v7426_v48  ;;  %4845 = vmatpush1.bf16.msra.mxu1 %v7427_v32  ;;  %v7842_v48 = vld [vmem:[#allocation14_spill] sm:$0xff]  ;;  %v7843_v32 = vld [vmem:[#allocation15_spill] sm:$0xff] }
 0x846   :  { %4783 = vmatprep.subr.bf16.mxu0 %v7428_v44  ;;  %4847 = vmatprep.subr.bf16.mxu1 %v7817_v11  ;;  %v7844_v44 = vld [vmem:[#allocation16_spill] sm:$0xff]  ;;  %v7879_v11 = vld [vmem:[#allocation51_spill] sm:$0xff] }
 0x849   :  { %4785 = vmatpush1.bf16.msra.mxu0 %v7818_v2  ;;  %4849 = vmatpush1.bf16.msra.mxu1 %v7819_v51  ;;  %v7880_v2 = vld [vmem:[#allocation52_spill] sm:$0xff]  ;;  %v7881_v51 = vld [vmem:[#allocation53_spill] sm:$0xff] }
 0x84a   :  { %4787 = vmatprep.subr.bf16.mxu0 %v7820_v4  ;;  %4851 = vmatprep.subr.bf16.mxu1 %v7821_v37  ;;  %v7882_v4 = vld [vmem:[#allocation54_spill] sm:$0xff]  ;;  %v7883_v37 = vld [vmem:[#allocation55_spill] sm:$0xff] }
 0x84d   :  { %4789 = vmatpush1.bf16.msra.mxu0 %v7822_v36  ;;  %4853 = vmatpush1.bf16.msra.mxu1 %v7823_v58  ;;  %v7884_v36 = vld [vmem:[#allocation56_spill] sm:$0xff]  ;;  %v7885_v58 = vld [vmem:[#allocation57_spill] sm:$0xff] }
 0x84e   :  { %4791 = vmatprep.subr.bf16.mxu0 %v7824_v1  ;;  %4855 = vmatprep.subr.bf16.mxu1 %v7825_v63  ;;  %v7886_v1 = vld [vmem:[#allocation58_spill] sm:$0xff]  ;;  %v7887_v63 = vld [vmem:[#allocation59_spill] sm:$0xff] }
 0x851   :  { %4793 = vmatpush1.bf16.msra.mxu0 %v7826_v6  ;;  %4857 = vmatpush1.bf16.msra.mxu1 %v7827_v59  ;;  %v7888_v6 = vld [vmem:[#allocation60_spill] sm:$0xff]  ;;  %v7889_v59 = vld [vmem:[#allocation61_spill] sm:$0xff] }
 0x852   :  { %4795 = vmatprep.subr.bf16.mxu0 %v7828_v29  ;;  %4859 = vmatprep.subr.bf16.mxu1 %v7829_v40  ;;  %v7890_v29 = vld [vmem:[#allocation62_spill] sm:$0xff]  ;;  %v7891_v40 = vld [vmem:[#allocation63_spill] sm:$0xff] }
 0x855   :  { %4797 = vmatpush1.bf16.msra.mxu0 %v7830_v42  ;;  %4861 = vmatpush1.bf16.msra.mxu1 %v7831_v8  ;;  %v7892_v42 = vld [vmem:[#allocation64_spill] sm:$0xff]  ;;  %v7893_v8 = vld [vmem:[#allocation65_spill] sm:$0xff] }
 0x856   :  { %4799 = vmatprep.subr.bf16.mxu0 %v7832_v30  ;;  %4863 = vmatprep.subr.bf16.mxu1 %v7833_v57  ;;  %v7894_v30 = vld [vmem:[#allocation66_spill] sm:$0xff]  ;;  %v7895_v57 = vld [vmem:[#allocation67_spill] sm:$0xff] }
 0x859   :  { %4801 = vmatpush1.bf16.msra.mxu0 %v7834_v49  ;;  %4865 = vmatpush1.bf16.msra.mxu1 %v7835_v27  ;;  %v7896_v49 = vld [vmem:[#allocation68_spill] sm:$0xff]  ;;  %v7897_v27 = vld [vmem:[#allocation69_spill] sm:$0xff] }
 0x85a   :  { %4803 = vmatprep.subr.bf16.mxu0 %v7836_v33  ;;  %4867 = vmatprep.subr.bf16.mxu1 %v7837_v45  ;;  %v7898_v33 = vld [vmem:[#allocation70_spill] sm:$0xff]  ;;  %v7899_v45 = vld [vmem:[#allocation71_spill] sm:$0xff] }
 0x85d   :  { %4805 = vmatpush1.bf16.msra.mxu0 %v7838_v12  ;;  %4869 = vmatpush1.bf16.msra.mxu1 %v7839_v60  ;;  %v7900_v12 = vld [vmem:[#allocation72_spill] sm:$0xff]  ;;  %v7901_v60 = vld [vmem:[#allocation73_spill] sm:$0xff] }
 0x85e   :  { %4871 = vmatprep.subr.bf16.mxu0 %v7840_v34  ;;  %4935 = vmatprep.subr.bf16.mxu1 %v7841_v26  ;;  %v7902_v34 = vld [vmem:[#allocation74_spill] sm:$0xff]  ;;  %v7903_v26 = vld [vmem:[#allocation75_spill] sm:$0xff] }
 0x860   :  { %2760 = vmatmul.mubr.f32.vlgmr.msra.gmra.mrb[26].mxu0 %v6633_v24  ;;  %2831 = vmatmul.mubr.f32.vlgmr.msra.gmra.mrb[26].mxu1 %v6633_v24  ;;  %v7878_v24 = vld [vmem:[#allocation50_spill] sm:$0xff] }
 0x861   :  { %4873 = vmatpush1.bf16.msra.mxu0 %v7842_v48  ;;  %4937 = vmatpush1.bf16.msra.mxu1 %v7843_v32 }
 0x862   :  { %4875 = vmatprep.subr.bf16.mxu0 %v7844_v44  ;;  %4939 = vmatprep.subr.bf16.mxu1 %v7845_v56  ;;  %v7904_v44 = vld [vmem:[#allocation11_spill] sm:$0xff] }
 0x865   :  { %4877 = vmatpush1.bf16.msra.mxu0 %v7846_v25  ;;  %4941 = vmatpush1.bf16.msra.mxu1 %v7847_v61 }
 0x866   :  { %4879 = vmatprep.subr.bf16.mxu0 %v7848_v9  ;;  %4943 = vmatprep.subr.bf16.mxu1 %v7849_v35  ;;  %v7905_v9 = vld [vmem:[#allocation78_spill] sm:$0xff] }
 0x869   :  { %4881 = vmatpush1.bf16.msra.mxu0 %v7850_v18  ;;  %4945 = vmatpush1.bf16.msra.mxu1 %v7851_v3 }
 0x86a   :  { %4883 = vmatprep.subr.bf16.mxu0 %v7852_v13  ;;  %4947 = vmatprep.subr.bf16.mxu1 %v7853_v10  ;;  %v7906_v13 = vld [vmem:[#allocation79_spill] sm:$0xff] }
 0x86d   :  { %4885 = vmatpush1.bf16.msra.mxu0 %v7854_v55  ;;  %4949 = vmatpush1.bf16.msra.mxu1 %v7855_v47  ;;  %v7907_v55 = vld [vmem:[#allocation151_spill] sm:$0xff] }
 0x86e   :  { %4887 = vmatprep.subr.bf16.mxu0 %v7856_v16  ;;  %4951 = vmatprep.subr.bf16.mxu1 %v7857_v17 }
 0x871   :  { %4889 = vmatpush1.bf16.msra.mxu0 %v7858_v0  ;;  %4953 = vmatpush1.bf16.msra.mxu1 %v7859_v41 }
 0x872   :  { %4891 = vmatprep.subr.bf16.mxu0 %v7860_v54  ;;  %4955 = vmatprep.subr.bf16.mxu1 %v7861_v14 }
 0x875   :  { %4893 = vmatpush1.bf16.msra.mxu0 %v7862_v39  ;;  %4957 = vmatpush1.bf16.msra.mxu1 %v7863_v20 }
 0x876   :  { %4895 = vmatprep.subr.bf16.mxu0 %v7864_v28  ;;  %4959 = vmatprep.subr.bf16.mxu1 %v7865_v5  ;;  %v7908_v5 = vld [vmem:[#allocation93_spill] sm:$0xff] }
 0x879   :  { %4897 = vmatpush1.bf16.msra.mxu0 %v7866_v52  ;;  %4961 = vmatpush1.bf16.msra.mxu1 %v7867_v23 }
 0x87a   :  { %4899 = vmatprep.subr.bf16.mxu0 %v7868_v19  ;;  %4963 = vmatprep.subr.bf16.mxu1 %v7869_v62 }
 0x87d   :  { %4901 = vmatpush1.bf16.msra.mxu0 %v7870_v21  ;;  %4965 = vmatpush1.bf16.msra.mxu1 %v7871_v50 }
 0x87e   :  { %4903 = vmatprep.subr.bf16.mxu0 %v7872_v15  ;;  %4967 = vmatprep.subr.bf16.mxu1 %v7873_v53  ;;  %v110_v53 = vpop.permute.xlu1 %109 }
 0x881   :  { %4905 = vmatpush1.bf16.msra.mxu0 %v7874_v38  ;;  %4969 = vmatpush1.bf16.msra.mxu1 %v7875_v31  ;;  %v7909_v38 = vld [vmem:[#allocation80_spill] sm:$0xff] }
 0x882   :  { %4907 = vmatprep.subr.bf16.mxu0 %v7876_v7  ;;  %4971 = vmatprep.subr.bf16.mxu1 %v7877_v22  ;;  %v161_v31 = vmul.f32 %v7909_v38, %v110_v53  ;;  %v7910_v7 = vld [vmem:[#allocation81_spill] sm:$0xff] }
 0x883   :  { %v162_v22 = vmul.f32 %v7910_v7, %v110_v53 }
 0x885   :  { %4909 = vmatpush1.bf16.msra.mxu0 %v7878_v24  ;;  %4973 = vmatpush1.bf16.msra.mxu1 %v7879_v11  ;;  %v7911_v24 = vld [vmem:[#allocation83_spill] sm:$0xff] }
 0x886   :  { %4911 = vmatprep.subr.bf16.mxu0 %v7880_v2  ;;  %4975 = vmatprep.subr.bf16.mxu1 %v7881_v51  ;;  %v163_v11 = vmul.f32 %v7911_v24, %v110_v53  ;;  %v7912_v2 = vld [vmem:[#allocation84_spill] sm:$0xff] }
 0x887   :  { %v215_v51 = vadd.f32 %v7912_v2, %v161_v31  ;;  %v3077_v2 = vld [vmem:[#allocation3] ss:$0 sm:$0xff] }
 0x889   :  { %4913 = vmatpush1.bf16.msra.mxu0 %v7882_v4  ;;  %4977 = vmatpush1.bf16.msra.mxu1 %v7883_v37  ;;  %v7913_v4 = vld [vmem:[#allocation85_spill] sm:$0xff] }
 0x88a   :  { %4915 = vmatprep.subr.bf16.mxu0 %v7884_v36  ;;  %4979 = vmatprep.subr.bf16.mxu1 %v7885_v58  ;;  %v216_v37 = vadd.f32 %v7913_v4, %v162_v22 }
 0x88d   :  { %4917 = vmatpush1.bf16.msra.mxu0 %v7886_v1  ;;  %4981 = vmatpush1.bf16.msra.mxu1 %v7887_v63  ;;  %v7914_v1 = vld [vmem:[#allocation86_spill] sm:$0xff] }
 0x88e   :  { %4919 = vmatprep.subr.bf16.mxu0 %v7888_v6  ;;  %4983 = vmatprep.subr.bf16.mxu1 %v7889_v59  ;;  %v164_v63 = vmul.f32 %v7914_v1, %v110_v53  ;;  %v7915_v59 = vld [vmem:[#allocation87_spill] sm:$0xff] }
 0x891   :  { %4921 = vmatpush1.bf16.msra.mxu0 %v7890_v29  ;;  %4985 = vmatpush1.bf16.msra.mxu1 %v7891_v40  ;;  %v217_v29 = vadd.f32 %v7915_v59, %v163_v11 }
 0x892   :  { %4923 = vmatprep.subr.bf16.mxu0 %v7892_v42  ;;  %4987 = vmatprep.subr.bf16.mxu1 %v7893_v8 }
 0x895   :  { %4925 = vmatpush1.bf16.msra.mxu0 %v7894_v30  ;;  %4989 = vmatpush1.bf16.msra.mxu1 %v7895_v57 }
 0x896   :  { %4927 = vmatprep.subr.bf16.mxu0 %v7896_v49  ;;  %4991 = vmatprep.subr.bf16.mxu1 %v7897_v27  ;;  %v218_v27 = vadd.f32 %v7296_v43, %v164_v63 }
 0x899   :  { %4929 = vmatpush1.bf16.msra.mxu0 %v7898_v33  ;;  %4993 = vmatpush1.bf16.msra.mxu1 %v7899_v45 }
 0x89a   :  { %4931 = vmatprep.subr.bf16.mxu0 %v7900_v12  ;;  %4995 = vmatprep.subr.bf16.mxu1 %v7901_v60 }
 0x89d   :  { %4933 = vmatpush1.bf16.msra.mxu0 %v7902_v34  ;;  %4997 = vmatpush1.bf16.msra.mxu1 %v7903_v26 }
 0x8f3   :  { %v2619_v48 = vpop.f32.mrb[24].mxu0  ;;  %v2690_v32 = vpop.f32.mrb[24].mxu1 }
 0x8f4   :  { %v2837_v56 = vadd.f32 %v2619_v48, %v7904_v44  ;;  %v2621_v25 = vpop.f32.mrb[25].mxu0  ;;  %v2692_v61 = vpop.f32.mrb[25].mxu1  ;;  %v2839_v10 = vadd.f32 %v2690_v32, %v7906_v13 }
 0x8f5   :  { %v2838_v35 = vadd.f32 %v2621_v25, %v7905_v9  ;;  %v2840_v47 = vadd.f32 %v2692_v61, %v7907_v55 }
 0x8f6   :  { %v2841_v18 = vmul.f32 0.5, %v2837_v56 }
 0x8f7   :  { %v2845_v3 = vmul.f32 0.5, %v2838_v35  ;;  %v2850_v16 = vmul.f32 0.5, %v2840_v47 }
 0x8f8   :  { %5133 = vtanh.f32 %v2841_v18 }
 0x8f9   :  { %5135 = vtanh.f32 %v2845_v3 }
 0x8fa   :  { %5137 = vtanh.f32 %v2839_v10 }
 0x8fb   :  { %5139 = vtanh.f32 %v2850_v16 }
 0x902   :  { %v5134_v17 = vpop.eup %5133 }
 0x903   :  { %v5136_v0 = vpop.eup %5135  ;;  %v2843_v41 = vmul.f32 0.5, %v5134_v17 }
 0x904   :  { %v2847_v54 = vmul.f32 0.5, %v5136_v0  ;;  %v5138_v39 = vpop.eup %5137 }
 0x905   :  { %v2844_v14 = vadd.f32 0.5, %v2843_v41  ;;  %v5140_v19 = vpop.eup %5139 }
 0x906   :  { %v2848_v20 = vadd.f32 0.5, %v2847_v54  ;;  %v2852_v62 = vmul.f32 0.5, %v5140_v19 }
 0x907   :  { %v2855_v28 = vmul.f32 %v5138_v39, %v2844_v14 }
 0x908   :  { %v2854_v52 = vmul.f32 %v2848_v20, %v7908_v5  ;;  %v2853_v21 = vadd.f32 0.5, %v2852_v62 }
 0x90a   :  { %v6770_v23 = vadd.f32 %v2855_v28, %v2854_v52 }
 0x90c   :  { %5141 = vtanh.f32 %v6770_v23 }
 0x916   :  { %v5142_v50 = vpop.eup %5141 }
 0x917   :  { %v2858_v15 = vmul.f32 %v5142_v50, %v2853_v21 }
 0x919   :  { %2950 = vmatprep.mubr.f32.mxu0 %v2858_v15  ;;  %3021 = vmatprep.mubr.f32.mxu1 %v2858_v15 }
 0x933   :  { %v2761_v36 = vpop.f32.mrb[26].mxu0  ;;  %v2832_v58 = vpop.f32.mrb[26].mxu1 }
 0x934   :  { %v2864_v6 = vadd.f32 %v2761_v36, %v215_v51  ;;  %v2763_v40 = vpop.f32.mrb[27].mxu0  ;;  %v2834_v42 = vpop.f32.mrb[27].mxu1  ;;  %v2866_v49 = vadd.f32 %v2832_v58, %v217_v29 }
 0x935   :  { %v2865_v8 = vadd.f32 %v2763_v40, %v216_v37  ;;  %v2867_v33 = vadd.f32 %v2834_v42, %v218_v27 }
 0x936   :  { %v2868_v30 = vmul.f32 0.5, %v2864_v6 }
 0x937   :  { %v2872_v57 = vmul.f32 0.5, %v2865_v8  ;;  %v2877_v45 = vmul.f32 0.5, %v2867_v33 }
 0x938   :  { %5143 = vtanh.f32 %v2868_v30 }
 0x939   :  { %5145 = vtanh.f32 %v2872_v57 }
 0x93a   :  { %5147 = vtanh.f32 %v2866_v49 }
 0x93b   :  { %5149 = vtanh.f32 %v2877_v45 }
 0x942   :  { %v5144_v12 = vpop.eup %5143 }
 0x943   :  { %v5146_v60 = vpop.eup %5145  ;;  %v2870_v34 = vmul.f32 0.5, %v5144_v12 }
 0x944   :  { %v2874_v26 = vmul.f32 0.5, %v5146_v60  ;;  %v5148_v32 = vpop.eup %5147 }
 0x945   :  { %v2871_v48 = vadd.f32 0.5, %v2870_v34  ;;  %v5150_v18 = vpop.eup %5149 }
 0x946   :  { %v2875_v56 = vadd.f32 0.5, %v2874_v26  ;;  %v2879_v3 = vmul.f32 0.5, %v5150_v18 }
 0x947   :  { %v2882_v25 = vmul.f32 %v5148_v32, %v2871_v48 }
 0x948   :  { %v2881_v61 = vmul.f32 %v2875_v56, %v6630_v46  ;;  %v2880_v43 = vadd.f32 0.5, %v2879_v3 }
 0x94a   :  { %v2883_v35 = vadd.f32 %v2882_v25, %v2881_v61 }
 0x94c   :  { %5151 = vtanh.f32 %v2883_v35 }
 0x956   :  { %v5152_v10 = vpop.eup %5151 }
 0x957   :  { %v2885_v47 = vmul.f32 %v5152_v10, %v2880_v43 }
 0x959   :  { %2951 = vmatmul.mubr.f32.vlgmr.msra.gmra.mrb[28].mxu0 %v2885_v47  ;;  %3022 = vmatmul.mubr.f32.vlgmr.msra.gmra.mrb[28].mxu1 %v2885_v47 }
 0xa2c   :  { %v2952_v16 = vpop.f32.mrb[28].mxu0  ;;  %v3023_v17 = vpop.f32.mrb[28].mxu1 }
 0xa2d   :  { %v3028_v0 = vadd.f32 %v2952_v16, %v7904_v44  ;;  %v2954_v41 = vpop.f32.mrb[29].mxu0  ;;  %v3025_v54 = vpop.f32.mrb[29].mxu1  ;;  %v3030_v46 = vadd.f32 %v3023_v17, %v7906_v13 }
 0xa2e   :  { %v3029_v14 = vadd.f32 %v2954_v41, %v7905_v9  ;;  %v3031_v28 = vadd.f32 %v3025_v54, %v7907_v55  ;;  %v3076_v55 = vld [vmem:[%s6798_s5] ss:$0 sm:$0xff] }
 0xa2f   :  { %v3032_v39 = vmul.f32 0.5, %v3028_v0 }
 0xa30   :  { %v3036_v20 = vmul.f32 0.5, %v3029_v14  ;;  %v3041_v5 = vmul.f32 0.5, %v3031_v28 }
 0xa31   :  { %5153 = vtanh.f32 %v3032_v39 }
 0xa32   :  { %5155 = vtanh.f32 %v3036_v20 }
 0xa33   :  { %5157 = vtanh.f32 %v3030_v46 }
 0xa34   :  { %5159 = vtanh.f32 %v3041_v5 }
 0xa3b   :  { %v5154_v52 = vpop.eup %5153 }
 0xa3c   :  { %v5156_v19 = vpop.eup %5155  ;;  %v3034_v62 = vmul.f32 0.5, %v5154_v52 }
 0xa3d   :  { %v3038_v21 = vmul.f32 0.5, %v5156_v19  ;;  %v5158_v50 = vpop.eup %5157 }
 0xa3e   :  { %v3035_v44 = vadd.f32 0.5, %v3034_v62  ;;  %v5160_v31 = vpop.eup %5159 }
 0xa3f   :  { %v3039_v15 = vadd.f32 0.5, %v3038_v21  ;;  %v3043_v13 = vmul.f32 0.5, %v5160_v31 }
 0xa40   :  { %v3046_v53 = vmul.f32 %v5158_v50, %v3035_v44 }
 0xa41   :  { %v3045_v9 = vmul.f32 %v3039_v15, %v6770_v23  ;;  %v3044_v7 = vadd.f32 0.5, %v3043_v13 }
 0xa43   :  { %v3047_v38 = vadd.f32 %v3046_v53, %v3045_v9 }
 0xa45   :  { %5161 = vtanh.f32 %v3047_v38 }
 0xa4f   :  { %v5162_v22 = vpop.eup %5161 }
 0xa50   :  { %v3049_v24 = vmul.f32 %v5162_v22, %v3044_v7 }
 0xa52   :  { %v3057_v11 = vmul.f32 %v3076_v55, %v3049_v24 }
 0xa54   :  { %3058 = vadd.xlane.f32.xlu0 %v3057_v11 }
 0xae1   :  { %v3059_v51 = vpop.xlane.xlu0 %3058 }
 0xae2   :  { %v3067_v4 = vadd.f32 %v3077_v2, %v3059_v51 }
 0xae4   :  { %3069 = vst.msk [vmem:[%s6800_s7] sm:$0xff] %vm3068_vm0, %v3067_v4 }
 0xae5   :  { %3074 = vsyncpa [#allocation5], 1 }
 0xae6   :  { %3075 = vsyncpa [#allocation7], 1 }

</bundles_post_ra>
